<compile_context>
chip_gen: v5e
topology: v5e:2x2
jax: 0.10.0
libtpu: 0.0.40
codegen_flags: <defaults>
</compile_context>

<pallas_src>
import functools

import jax
import jax.numpy as jnp
from jax.experimental import pallas as pl
from jax.experimental.pallas import tpu as pltpu


_LANE = 128
_SUBLANE = 8

# Tile-sizing budget: double-buffered (lane-padded) input + double-buffered output
# must fit here.  Chosen to fit comfortably under v7x's 64 MiB physical VMEM
# (v5e / v6e have 128 MiB physical).
_VMEM_TILE_BUDGET = 40 * 1024 * 1024
# Scoped VMEM limit handed to Mosaic: well above the 16/32 MiB scoped defaults
# that would otherwise gate the tile, with headroom below v7x's 64 MiB physical.
_VMEM_LIMIT_BYTES = 48 * 1024 * 1024


def _round_up(x, m):
    return ((x + m - 1) // m) * m


def _landscape_kernel(pd_ref, sp_ref, out_ref):
    # pd_ref : (TN, 2)      tile of persistence-diagram points [birth, death]
    # sp_ref : (1, L_pad)   diagonal sample positions (broadcast over rows)
    # out_ref: (TN, L_pad)  lane-dense output tile
    pd = pd_ref[...].astype(jnp.float32)
    birth = pd[:, 0:1]                        # (TN, 1)
    death = pd[:, 1:2]                        # (TN, 1)
    half_life = 0.5 * (death - birth)         # (TN, 1)
    midpoint = 0.5 * (death + birth)          # (TN, 1)
    sp = sp_ref[...].astype(jnp.float32)      # (1, L_pad)
    val = half_life - jnp.abs(sp - midpoint)  # broadcast -> (TN, L_pad)
    # Compute in f32, cast only at the store (bf16 by default halves HBM writes).
    out_ref[...] = jnp.maximum(val, 0.0).astype(out_ref.dtype)


def _pick_row_tile(total_rows, l_pad, out_bytes, row_tile):
    """Largest row tile that (a) fits the VMEM budget with double-buffering,
    (b) doesn't exceed the caller's row_tile, (c) doesn't over-pad tiny batches.

    VMEM bytes per tile row (double-buffered):
      input  (tile, 2) f32 is lane-padded to 128 lanes -> 2 * 512 B   (hidden 64x)
      output (tile, l_pad) out_dtype                    -> 2 * l_pad * out_bytes
    """
    bytes_per_row = 2 * (_LANE * 4) + 2 * (l_pad * out_bytes)
    budget_rows = max(_VMEM_TILE_BUDGET // bytes_per_row, _SUBLANE)
    want_rows = _round_up(max(total_rows, 1), 1024)  # don't over-pad small batches
    tile = min(int(row_tile), int(budget_rows), int(want_rows))
    return max((tile // _SUBLANE) * _SUBLANE, _SUBLANE)


def _landscape_slab(pd_all, sp_pad, *, row_tile, out_dtype):
    """pd_all: (n_pad, 2) f32 with n_pad % row_tile == 0.
    sp_pad: (1, l_pad) f32 with l_pad % 128 == 0.  Returns (n_pad, l_pad)."""
    n_pad = pd_all.shape[0]
    l_pad = sp_pad.shape[1]
    out_bytes = jnp.dtype(out_dtype).itemsize
    cost = pl.CostEstimate(
        flops=4 * n_pad * l_pad,
        transcendentals=0,
        bytes_accessed=n_pad * l_pad * out_bytes + n_pad * 2 * 4 + l_pad * 4,
    )
    return pl.pallas_call(
        _landscape_kernel,
        out_shape=jax.ShapeDtypeStruct((n_pad, l_pad), out_dtype),
        grid_spec=pltpu.PrefetchScalarGridSpec(
            num_scalar_prefetch=0,
            grid=(n_pad // row_tile,),
            in_specs=[
                # last dim (=2) equals the full array dim -> allowed; row_tile % 8 == 0.
                # NOTE: in VMEM this buffer is lane-padded 2 -> 128 lanes; its cost is
                # budgeted explicitly in _pick_row_tile (see review item on hidden 64x).
                pl.BlockSpec((row_tile, 2), lambda i: (i, 0)),
                # sp is tiny and lane-dense; same block every step.
                pl.BlockSpec((1, l_pad), lambda i: (0, 0)),
            ],
            out_specs=pl.BlockSpec((row_tile, l_pad), lambda i: (i, 0)),
        ),
        compiler_params=pltpu.CompilerParams(
            # Rows are independent.
            # TODO(synk): on v7x, confirm both TensorCores pick up this axis; if a
            # profile shows a single TC, switch to pltpu.CORE_PARALLEL here.
            dimension_semantics=("parallel",),
            vmem_limit_bytes=_VMEM_LIMIT_BYTES,
        ),
        cost_estimate=cost,
    )(pd_all, sp_pad)


@functools.partial(jax.jit, static_argnames=("row_tile", "out_dtype", "split"))
def _landscape_impl(pd_tuple, sp, *, row_tile, out_dtype, split):
    """Concat/pad prep + kernel (+ optional per-diagram split) in ONE dispatch."""
    lens = tuple(int(p.shape[0]) for p in pd_tuple)      # static under jit
    total = sum(lens)
    l = int(sp.shape[1])
    l_pad = _round_up(l, _LANE)
    out_bytes = jnp.dtype(out_dtype).itemsize

    tile = _pick_row_tile(total, l_pad, out_bytes, row_tile)
    n_pad = _round_up(total, tile)

    sp_pad = jnp.pad(sp.astype(jnp.float32), ((0, 0), (0, l_pad - l)))
    pd_all = jnp.concatenate(
        [p.astype(jnp.float32).reshape(-1, 2) for p in pd_tuple], axis=0
    )
    # Zero-padded rows give relu(0 - |sp - 0|) ... actually relu(-|sp|) = 0 exactly.
    pd_all = jnp.pad(pd_all, ((0, n_pad - total), (0, 0)))

    slab = _landscape_slab(pd_all, sp_pad, row_tile=tile, out_dtype=out_dtype)

    if not split:
        return slab
    outs = []
    off = 0
    for n in lens:
        outs.append(slab[off:off + n, :l])
        off += n
    return tuple(outs)


def landscape_layer(pd_points_list, sp, *, row_tile=8192, out_dtype=jnp.bfloat16):
    """Mirrors LandscapeLayer.forward: list of (N_b, 2) -> list of (N_b, L).

    Default output dtype is bf16 (kernel is HBM-write-bound); pass
    out_dtype=jnp.float32 for exact torch-module precision.  Prefer
    landscape_layer_padded() downstream to avoid per-diagram output copies.
    """
    l = int(sp.shape[1])
    if len(pd_points_list) == 0:
        return []
    if sum(int(p.shape[0]) for p in pd_points_list) == 0:
        return [jnp.zeros((int(p.shape[0]), l), dtype=out_dtype) for p in pd_points_list]
    outs = _landscape_impl(
        tuple(pd_points_list), sp, row_tile=int(row_tile), out_dtype=out_dtype, split=True
    )
    return list(outs)


def landscape_layer_padded(pd_points_list, sp, *, row_tile=8192, out_dtype=jnp.bfloat16):
    """Fast path (no per-diagram output copies).

    Returns (slab, offsets): slab is the padded (n_pad, L_pad) kernel output,
    offsets[b] = (row_start, n_rows) for diagram b, and the valid columns are
    slab[:, :sp.shape[1]].
    """
    l = int(sp.shape[1])
    lens = [int(p.shape[0]) for p in pd_points_list]
    offsets = []
    off = 0
    for n in lens:
        offsets.append((off, n))
        off += n
    if len(pd_points_list) == 0 or sum(lens) == 0:
        return jnp.zeros((sum(lens), _round_up(l, _LANE)), dtype=out_dtype), offsets
    slab = _landscape_impl(
        tuple(pd_points_list), sp, row_tile=int(row_tile), out_dtype=out_dtype, split=False
    )
    return slab, offsets


def _reference(pd_points_list, sp):
    out = []
    for inp in pd_points_list:
        v = 0.5 * (inp[:, 1:2] - inp[:, 0:1]) - jnp.abs(
            sp - 0.5 * (inp[:, 1:2] + inp[:, 0:1])
        )
        out.append(jnp.maximum(v, 0.0))
    return out


if __name__ == "__main__":
    key = jax.random.PRNGKey(0)
    k_sp, k_a, k_b = jax.random.split(key, 3)

    lsample_num = 100
    # nn.Parameter(torch.rand(1, lsample_num)) -> uniform [0, 1)
    sp = jax.random.uniform(k_sp, (1, lsample_num), dtype=jnp.float32)

    # Batch of 2 "point clouds" with different numbers of H1 PD points.
    pd0_raw = jax.random.uniform(k_a, (16, 2), dtype=jnp.float32)
    pd1_raw = jax.random.uniform(k_b, (8, 2), dtype=jnp.float32)
    # Make (birth, death) well-formed: death >= birth.
    pd0 = jnp.stack([jnp.min(pd0_raw, axis=1), jnp.max(pd0_raw, axis=1)], axis=1)
    pd1 = jnp.stack([jnp.min(pd1_raw, axis=1), jnp.max(pd1_raw, axis=1)], axis=1)
    pd_points = [pd0, pd1]

    refs = _reference(pd_points, sp)

    # 1) Default fast path: bf16 output (write-bound kernel -> half the HBM bytes).
    outs_bf16 = landscape_layer(pd_points, sp)
    outs_bf16 = [jax.block_until_ready(o) for o in outs_bf16]
    for o, r in zip(outs_bf16, refs):
        assert o.shape == r.shape, f"shape mismatch {o.shape} vs {r.shape}"
        assert o.dtype == jnp.bfloat16
        assert jnp.allclose(o.astype(jnp.float32), r, atol=1e-2), "bf16 mismatch vs reference"

    # 2) Exact torch-precision path.
    outs_f32 = landscape_layer(pd_points, sp, out_dtype=jnp.float32)
    outs_f32 = [jax.block_until_ready(o) for o in outs_f32]
    for o, r in zip(outs_f32, refs):
        assert o.shape == r.shape
        assert jnp.allclose(o, r, atol=1e-6), "f32 mismatch vs reference"

    # 3) Padded fast path: no per-diagram output copies (slab + offsets).
    slab, offsets = landscape_layer_padded(pd_points, sp, out_dtype=jnp.float32)
    slab = jax.block_until_ready(slab)
    for (off, n), r in zip(offsets, refs):
        assert jnp.allclose(slab[off:off + n, :lsample_num], r, atol=1e-6), "slab mismatch"

    print("KERNEL_OK")
</pallas_src>

<mosaic_0001>
module attributes {stable_mosaic.version = 11 : i64} {
  func.func @_landscape_kernel(%arg0: i32, %arg1: memref<1024x2xf32, #tpu.memory_space<vmem>>, %arg2: memref<1x128xf32, #tpu.memory_space<vmem>>, %arg3: memref<1024x128xbf16, #tpu.memory_space<vmem>>) attributes {dimension_semantics = [#tpu.dimension_semantics<parallel>], iteration_bounds = array<i64: 1>, scalar_prefetch = 0 : i64, scratch_operands = 0 : i64, tpu.core_type = #tpu.core_type<tc>, window_params = [{transform_indices = @transform_0, window_bounds = array<i64: 1024, 2>}, {pipeline_mode = #tpu.pipeline_mode<synchronous>, transform_indices = @transform_1, window_bounds = array<i64: 1, 128>}, {transform_indices = @transform_2, window_bounds = array<i64: 1024, 128>}]} {
    %c0 = arith.constant 0 : index
    %c0_0 = arith.constant 0 : index
    %0 = vector.load %arg1[%c0, %c0_0] : memref<1024x2xf32, #tpu.memory_space<vmem>>, vector<1024x2xf32>
    %1 = vector.extract_strided_slice %0 {offsets = [0, 0], sizes = [1024, 1], strides = [1, 1]} : vector<1024x2xf32> to vector<1024x1xf32>
    %2 = vector.extract_strided_slice %0 {offsets = [0, 1], sizes = [1024, 1], strides = [1, 1]} : vector<1024x2xf32> to vector<1024x1xf32>
    %3 = arith.subf %2, %1 : vector<1024x1xf32>
    %cst = arith.constant 5.000000e-01 : f32
    %4 = vector.broadcast %cst : f32 to vector<1024x1xf32>
    %5 = arith.mulf %4, %3 : vector<1024x1xf32>
    %6 = arith.addf %2, %1 : vector<1024x1xf32>
    %cst_1 = arith.constant 5.000000e-01 : f32
    %7 = vector.broadcast %cst_1 : f32 to vector<1024x1xf32>
    %8 = arith.mulf %7, %6 : vector<1024x1xf32>
    %c0_2 = arith.constant 0 : index
    %c0_3 = arith.constant 0 : index
    %9 = vector.load %arg2[%c0_2, %c0_3] : memref<1x128xf32, #tpu.memory_space<vmem>>, vector<1x128xf32>
    %10 = vector.broadcast %9 : vector<1x128xf32> to vector<1024x128xf32>
    %11 = vector.broadcast %8 : vector<1024x1xf32> to vector<1024x128xf32>
    %12 = arith.subf %10, %11 : vector<1024x128xf32>
    %13 = math.absf %12 : vector<1024x128xf32>
    %14 = vector.broadcast %5 : vector<1024x1xf32> to vector<1024x128xf32>
    %15 = arith.subf %14, %13 : vector<1024x128xf32>
    %cst_4 = arith.constant 0.000000e+00 : f32
    %16 = vector.broadcast %cst_4 : f32 to vector<1024x128xf32>
    %17 = arith.maximumf %15, %16 : vector<1024x128xf32>
    %18 = arith.truncf %17 : vector<1024x128xf32> to vector<1024x128xbf16>
    %c0_5 = arith.constant 0 : index
    %c0_6 = arith.constant 0 : index
    %19 = vector.load %arg3[%c0_5, %c0_6] : memref<1024x128xbf16, #tpu.memory_space<vmem>>, vector<1024x128xbf16>
    tpu.vector_store %arg3[%c0_5, %c0_6], %18 {strides = array<i32>} : memref<1024x128xbf16, #tpu.memory_space<vmem>>, vector<1024x128xbf16>,
    return
  }
  func.func @transform_0(%arg0: i32) -> (i32, i32) {
    %c0_i32 = arith.constant 0 : i32
    %c0_i32_0 = arith.constant 0 : i32
    return %arg0, %c0_i32 : i32, i32
  }
  func.func @transform_1(%arg0: i32) -> (i32, i32) {
    %c0_i32 = arith.constant 0 : i32
    %c0_i32_0 = arith.constant 0 : i32
    %c0_i32_1 = arith.constant 0 : i32
    return %c0_i32, %c0_i32_0 : i32, i32
  }
  func.func @transform_2(%arg0: i32) -> (i32, i32) {
    %c0_i32 = arith.constant 0 : i32
    %c0_i32_0 = arith.constant 0 : i32
    return %arg0, %c0_i32 : i32, i32
  }
}

</mosaic_0001>

<bundles_post_ra>
// kernel: _landscape_impl.1
= control target key start
LH: loop header
LB: loop body
LE: loop exit
PB: predicated region body
PF: predicated region fallthrough
CT: control target
= control target key end

     0   :  { %s3737_s15 = smov 1   ;;  %s6478_s0 = inlined_call_operand.vmem [shape: f32[1024,2], index: 0, kind: input, shape index: {}]   ;;  %s6479_s1 = inlined_call_operand.vmem [shape: f32[1,128], index: 1, kind: input, shape index: {}]   ;;  %s6480_s2 = inlined_call_operand.vmem [shape: bf16[1024,128], index: 2, kind: output, shape index: {}]  }
   0x1   :  { %v3757_v0 = vld [vmem:[%s6478_s0 + $0x20] sm:$0xff]  ;;  %v3762_v1 = vld [vmem:[%s6478_s0 + $0x10] sm:$0xff]  ;;  %v3778_v3 = vld [vmem:[%s6478_s0 + $0x28] sm:$0xff] }
   0x2   :  { %v3767_v2 = vld [vmem:[%s6478_s0] sm:$0xff]  ;;  %275 = vrot.lane.b32.xlu2 %v3757_v0, %s3737_s15  ;;  %271 = vrot.lane.b32.xlu1 %v3762_v1, %s3737_s15  ;;  %v3783_v4 = vld [vmem:[%s6478_s0 + $0x18] sm:$0xff] }
   0x3   :  { %267 = vrot.lane.b32.xlu0 %v3767_v2, %s3737_s15  ;;  %v3788_v5 = vld [vmem:[%s6478_s0 + $0x8] sm:$0xff]  ;;  %v3799_v6 = vld [vmem:[%s6478_s0 + $0x40] sm:$0xff]  ;;  %v3804_v7 = vld [vmem:[%s6478_s0 + $0x38] sm:$0xff] }
   0x4   :  { %v3809_v8 = vld [vmem:[%s6478_s0 + $0x30] sm:$0xff]  ;;  %v3820_v9 = vld [vmem:[%s6478_s0 + $0x58] sm:$0xff]  ;;  %v3830_v11 = vld [vmem:[%s6478_s0 + $0x48] sm:$0xff] }
   0x5   :  { %v3825_v10 = vld [vmem:[%s6478_s0 + $0x50] sm:$0xff]  ;;  %v3846_v13 = vld [vmem:[%s6478_s0 + $0x68] sm:$0xff]  ;;  %v3851_v14 = vld [vmem:[%s6478_s0 + $0x60] sm:$0xff] }
   0x6   :  { %v3841_v12 = vld [vmem:[%s6478_s0 + $0x70] sm:$0xff]  ;;  %v3862_v15 = vld [vmem:[%s6478_s0 + $0x88] sm:$0xff]  ;;  %v3867_v16 = vld [vmem:[%s6478_s0 + $0x80] sm:$0xff] }
   0x7   :  { %v3872_v17 = vld [vmem:[%s6478_s0 + $0x78] sm:$0xff]  ;;  %v3883_v18 = vld [vmem:[%s6478_s0 + $0xa0] sm:$0xff]  ;;  %v3893_v20 = vld [vmem:[%s6478_s0 + $0x90] sm:$0xff] }
   0x8   :  { %v3888_v19 = vld [vmem:[%s6478_s0 + $0x98] sm:$0xff]  ;;  %v3909_v22 = vld [vmem:[%s6478_s0 + $0xb0] sm:$0xff]  ;;  %v3914_v23 = vld [vmem:[%s6478_s0 + $0xa8] sm:$0xff] }
   0x9   :  { %v3904_v21 = vld [vmem:[%s6478_s0 + $0xb8] sm:$0xff]  ;;  %v3925_v24 = vld [vmem:[%s6478_s0 + $0xd0] sm:$0xff]  ;;  %v3930_v25 = vld [vmem:[%s6478_s0 + $0xc8] sm:$0xff] }
   0xa   :  { %277 = vrot.lane.b32.xlu2 %v3778_v3, %s3737_s15  ;;  %273 = vrot.lane.b32.xlu1 %v3783_v4, %s3737_s15  ;;  %v3935_v26 = vld [vmem:[%s6478_s0 + $0xc0] sm:$0xff]  ;;  %v3946_v27 = vld [vmem:[%s6478_s0 + $0xe8] sm:$0xff] }
   0xb   :  { %269 = vrot.lane.b32.xlu0 %v3788_v5, %s3737_s15  ;;  %6694 = vst [vmem:[#allocation2_spill] sm:$0xff] %v3946_v27  ;;  %v3951_v28 = vld [vmem:[%s6478_s0 + $0xe0] sm:$0xff]  ;;  %v3956_v29 = vld [vmem:[%s6478_s0 + $0xd8] sm:$0xff]  ;;  %v3977_v32 = vld [vmem:[%s6478_s0 + $0xf0] sm:$0xff] }
   0xc   :  { %6695 = vst [vmem:[#allocation3_spill] sm:$0xff] %v3951_v28  ;;  %v3967_v30 = vld [vmem:[%s6478_s0 + $0x100] sm:$0xff]  ;;  %v3972_v31 = vld [vmem:[%s6478_s0 + $0xf8] sm:$0xff]  ;;  %v3993_v34 = vld [vmem:[%s6478_s0 + $0x110] sm:$0xff] }
   0xd   :  { %6696 = vst [vmem:[#allocation4_spill] sm:$0xff] %v3967_v30  ;;  %v3988_v33 = vld [vmem:[%s6478_s0 + $0x118] sm:$0xff]  ;;  %v3998_v35 = vld [vmem:[%s6478_s0 + $0x108] sm:$0xff]  ;;  %v4011_v37 = vld [vmem:[%s6478_s0 + $0x130] sm:$0xff] }
   0xe   :  { %6697 = vst [vmem:[#allocation5_spill] sm:$0xff] %v3972_v31  ;;  %v4016_v38 = vld [vmem:[%s6478_s0 + $0x128] sm:$0xff]  ;;  %v4021_v39 = vld [vmem:[%s6478_s0 + $0x120] sm:$0xff]  ;;  %v4044_v43 = vld [vmem:[%s6478_s0 + $0x138] sm:$0xff] }
   0xf   :  { %6698 = vst [vmem:[#allocation6_spill] sm:$0xff] %v3977_v32  ;;  %v4034_v41 = vld [vmem:[%s6478_s0 + $0x148] sm:$0xff]  ;;  %v4039_v42 = vld [vmem:[%s6478_s0 + $0x140] sm:$0xff]  ;;  %v4062_v46 = vld [vmem:[%s6478_s0 + $0x158] sm:$0xff] }
  0x10   :  { %6699 = vst [vmem:[#allocation7_spill] sm:$0xff] %v3988_v33  ;;  %v4057_v45 = vld [vmem:[%s6478_s0 + $0x160] sm:$0xff]  ;;  %v4067_v47 = vld [vmem:[%s6478_s0 + $0x150] sm:$0xff]  ;;  %v4084_v51 = vld [vmem:[%s6478_s0 + $0x178] sm:$0xff] }
  0x11   :  { %6700 = vst [vmem:[#allocation8_spill] sm:$0xff] %v3993_v34  ;;  %v4089_v52 = vld [vmem:[%s6478_s0 + $0x170] sm:$0xff]  ;;  %v4094_v53 = vld [vmem:[%s6478_s0 + $0x168] sm:$0xff]  ;;  %v4121_v59 = vld [vmem:[%s6478_s0 + $0x180] sm:$0xff] }
  0x12   :  { %283 = vrot.lane.b32.xlu2 %v3799_v6, %s3737_s15  ;;  %281 = vrot.lane.b32.xlu1 %v3804_v7, %s3737_s15  ;;  %6701 = vst [vmem:[#allocation9_spill] sm:$0xff] %v3998_v35  ;;  %v4111_v57 = vld [vmem:[%s6478_s0 + $0x190] sm:$0xff]  ;;  %v4116_v58 = vld [vmem:[%s6478_s0 + $0x188] sm:$0xff] }
  0x13   :  { %279 = vrot.lane.b32.xlu0 %v3809_v8, %s3737_s15  ;;  %6702 = vst [vmem:[#allocation10_spill] sm:$0xff] %v4011_v37  ;;  %v4138_v63 = vld [vmem:[%s6478_s0 + $0x1a8] sm:$0xff] }
  0x14   :  { %6703 = vst [vmem:[#allocation11_spill] sm:$0xff] %v4016_v38 }
  0x15   :  { %6704 = vst [vmem:[#allocation12_spill] sm:$0xff] %v4021_v39 }
  0x16   :  { %6705 = vst [vmem:[#allocation13_spill] sm:$0xff] %v4034_v41 }
  0x17   :  { %6706 = vst [vmem:[#allocation14_spill] sm:$0xff] %v4039_v42 }
  0x18   :  { %6707 = vst [vmem:[#allocation15_spill] sm:$0xff] %v4044_v43 }
  0x19   :  { %6709 = vst [vmem:[#allocation17_spill] sm:$0xff] %v4057_v45 }
  0x1a   :  { %289 = vrot.lane.b32.xlu2 %v3820_v9, %s3737_s15  ;;  %287 = vrot.lane.b32.xlu1 %v3825_v10, %s3737_s15  ;;  %6710 = vst [vmem:[#allocation18_spill] sm:$0xff] %v4062_v46 }
  0x1b   :  { %285 = vrot.lane.b32.xlu0 %v3830_v11, %s3737_s15  ;;  %6711 = vst [vmem:[#allocation19_spill] sm:$0xff] %v4067_v47 }
  0x1c   :  { %6715 = vst [vmem:[#allocation23_spill] sm:$0xff] %v4084_v51 }
  0x1d   :  { %6716 = vst [vmem:[#allocation24_spill] sm:$0xff] %v4089_v52 }
  0x1e   :  { %6717 = vst [vmem:[#allocation25_spill] sm:$0xff] %v4094_v53 }
  0x1f   :  { %6721 = vst [vmem:[#allocation29_spill] sm:$0xff] %v4111_v57 }
  0x20   :  { %6722 = vst [vmem:[#allocation30_spill] sm:$0xff] %v4116_v58 }
  0x21   :  { %6723 = vst [vmem:[#allocation31_spill] sm:$0xff] %v4121_v59 }
  0x22   :  { %295 = vrot.lane.b32.xlu2 %v3841_v12, %s3737_s15  ;;  %293 = vrot.lane.b32.xlu1 %v3846_v13, %s3737_s15  ;;  %6725 = vst [vmem:[#allocation33_spill] sm:$0xff] %v4138_v63 }
  0x23   :  { %291 = vrot.lane.b32.xlu0 %v3851_v14, %s3737_s15 }
  0x2a   :  { %301 = vrot.lane.b32.xlu2 %v3862_v15, %s3737_s15  ;;  %299 = vrot.lane.b32.xlu1 %v3867_v16, %s3737_s15 }
  0x2b   :  { %297 = vrot.lane.b32.xlu0 %v3872_v17, %s3737_s15 }
  0x32   :  { %307 = vrot.lane.b32.xlu2 %v3883_v18, %s3737_s15  ;;  %305 = vrot.lane.b32.xlu1 %v3888_v19, %s3737_s15 }
  0x33   :  { %303 = vrot.lane.b32.xlu0 %v3893_v20, %s3737_s15 }
  0x3a   :  { %313 = vrot.lane.b32.xlu2 %v3904_v21, %s3737_s15  ;;  %311 = vrot.lane.b32.xlu1 %v3909_v22, %s3737_s15 }
  0x3b   :  { %309 = vrot.lane.b32.xlu0 %v3914_v23, %s3737_s15 }
  0x42   :  { %319 = vrot.lane.b32.xlu2 %v3925_v24, %s3737_s15  ;;  %317 = vrot.lane.b32.xlu1 %v3930_v25, %s3737_s15 }
  0x43   :  { %315 = vrot.lane.b32.xlu0 %v3935_v26, %s3737_s15 }
  0x4a   :  { %325 = vrot.lane.b32.xlu2 %v3946_v27, %s3737_s15  ;;  %323 = vrot.lane.b32.xlu1 %v3951_v28, %s3737_s15  ;;  %v4327_v28 = vld [vmem:[%s6478_s0 + $0x250] sm:$0xff]  ;;  %v4732_v27 = vld [vmem:[%s6478_s0 + $0x3b8] sm:$0xff] }
  0x4b   :  { %321 = vrot.lane.b32.xlu0 %v3956_v29, %s3737_s15  ;;  %6767 = vst [vmem:[#allocation75_spill] sm:$0xff] %v4327_v28 }
  0x4c   :  { %6857 = vst [vmem:[#allocation165_spill] sm:$0xff] %v4732_v27 }
  0x52   :  { %331 = vrot.lane.b32.xlu2 %v3967_v30, %s3737_s15  ;;  %329 = vrot.lane.b32.xlu1 %v3972_v31, %s3737_s15  ;;  %v4300_v30 = vld [vmem:[%s6478_s0 + $0x238] sm:$0xff] }
  0x53   :  { %327 = vrot.lane.b32.xlu0 %v3977_v32, %s3737_s15  ;;  %6761 = vst [vmem:[#allocation69_spill] sm:$0xff] %v4300_v30 }
  0x5a   :  { %337 = vrot.lane.b32.xlu2 %v3988_v33, %s3737_s15  ;;  %335 = vrot.lane.b32.xlu1 %v3993_v34, %s3737_s15 }
  0x5b   :  { %333 = vrot.lane.b32.xlu0 %v3998_v35, %s3737_s15  ;;  %v4273_v35 = vld [vmem:[%s6478_s0 + $0x220] sm:$0xff] }
  0x5c   :  { %v4006_v36 = vpop.permute.xlu2 %275  ;;  %6755 = vst [vmem:[#allocation63_spill] sm:$0xff] %v4273_v35 }
  0x62   :  { %343 = vrot.lane.b32.xlu2 %v4011_v37, %s3737_s15  ;;  %341 = vrot.lane.b32.xlu1 %v4016_v38, %s3737_s15 }
  0x63   :  { %339 = vrot.lane.b32.xlu0 %v4021_v39, %s3737_s15  ;;  %v4246_v39 = vld [vmem:[%s6478_s0 + $0x208] sm:$0xff] }
  0x64   :  { %v4029_v40 = vpop.permute.xlu2 %277  ;;  %6749 = vst [vmem:[#allocation57_spill] sm:$0xff] %v4246_v39 }
  0x6a   :  { %349 = vrot.lane.b32.xlu2 %v4034_v41, %s3737_s15  ;;  %347 = vrot.lane.b32.xlu1 %v4039_v42, %s3737_s15 }
  0x6b   :  { %345 = vrot.lane.b32.xlu0 %v4044_v43, %s3737_s15  ;;  %v4219_v43 = vld [vmem:[%s6478_s0 + $0x1f0] sm:$0xff] }
  0x6c   :  { %v4052_v44 = vpop.permute.xlu2 %283  ;;  %6743 = vst [vmem:[#allocation51_spill] sm:$0xff] %v4219_v43 }
  0x6d   :  { %6708 = vst [vmem:[#allocation16_spill] sm:$0xff] %v4052_v44 }
  0x72   :  { %355 = vrot.lane.b32.xlu2 %v4057_v45, %s3737_s15  ;;  %353 = vrot.lane.b32.xlu1 %v4062_v46, %s3737_s15 }
  0x73   :  { %351 = vrot.lane.b32.xlu0 %v4067_v47, %s3737_s15  ;;  %v4192_v47 = vld [vmem:[%s6478_s0 + $0x1d8] sm:$0xff] }
  0x74   :  { %v4075_v48 = vpop.permute.xlu2 %289  ;;  %v4077_v49 = vpop.permute.xlu1 %271  ;;  %6737 = vst [vmem:[#allocation45_spill] sm:$0xff] %v4192_v47 }
  0x75   :  { %6712 = vst [vmem:[#allocation20_spill] sm:$0xff] %v4075_v48  ;;  %v4079_v50 = vpop.permute.xlu0 %267 }
  0x76   :  { %6713 = vst [vmem:[#allocation21_spill] sm:$0xff] %v4077_v49 }
  0x77   :  { %6714 = vst [vmem:[#allocation22_spill] sm:$0xff] %v4079_v50 }
  0x7a   :  { %361 = vrot.lane.b32.xlu2 %v4084_v51, %s3737_s15  ;;  %359 = vrot.lane.b32.xlu1 %v4089_v52, %s3737_s15 }
  0x7b   :  { %357 = vrot.lane.b32.xlu0 %v4094_v53, %s3737_s15  ;;  %v4165_v53 = vld [vmem:[%s6478_s0 + $0x1c0] sm:$0xff] }
  0x7c   :  { %v4102_v54 = vpop.permute.xlu2 %295  ;;  %v4104_v55 = vpop.permute.xlu1 %273  ;;  %6731 = vst [vmem:[#allocation39_spill] sm:$0xff] %v4165_v53 }
  0x7d   :  { %6718 = vst [vmem:[#allocation26_spill] sm:$0xff] %v4102_v54  ;;  %v4106_v56 = vpop.permute.xlu0 %269 }
  0x7e   :  { %6719 = vst [vmem:[#allocation27_spill] sm:$0xff] %v4104_v55 }
  0x7f   :  { %6720 = vst [vmem:[#allocation28_spill] sm:$0xff] %v4106_v56 }
  0x82   :  { %367 = vrot.lane.b32.xlu2 %v4111_v57, %s3737_s15  ;;  %365 = vrot.lane.b32.xlu1 %v4116_v58, %s3737_s15  ;;  %v4143_v57 = vld [vmem:[%s6478_s0 + $0x1a0] sm:$0xff]  ;;  %v4148_v58 = vld [vmem:[%s6478_s0 + $0x198] sm:$0xff] }
  0x83   :  { %363 = vrot.lane.b32.xlu0 %v4121_v59, %s3737_s15  ;;  %6726 = vst [vmem:[#allocation34_spill] sm:$0xff] %v4143_v57 }
  0x84   :  { %v4129_v60 = vpop.permute.xlu2 %301  ;;  %v4131_v61 = vpop.permute.xlu1 %281  ;;  %6727 = vst [vmem:[#allocation35_spill] sm:$0xff] %v4148_v58 }
  0x85   :  { %6724 = vst [vmem:[#allocation32_spill] sm:$0xff] %v4129_v60  ;;  %v4133_v62 = vpop.permute.xlu0 %279 }
  0x8a   :  { %373 = vrot.lane.b32.xlu2 %v4138_v63, %s3737_s15  ;;  %371 = vrot.lane.b32.xlu1 %v4143_v57, %s3737_s15  ;;  %v4170_v63 = vld [vmem:[%s6478_s0 + $0x1b8] sm:$0xff]  ;;  %v4175_v57 = vld [vmem:[%s6478_s0 + $0x1b0] sm:$0xff] }
  0x8b   :  { %369 = vrot.lane.b32.xlu0 %v4148_v58, %s3737_s15  ;;  %6732 = vst [vmem:[#allocation40_spill] sm:$0xff] %v4170_v63 }
  0x8c   :  { %v4156_v59 = vpop.permute.xlu2 %307  ;;  %v4158_v52 = vpop.permute.xlu1 %287  ;;  %6733 = vst [vmem:[#allocation41_spill] sm:$0xff] %v4175_v57 }
  0x8d   :  { %6728 = vst [vmem:[#allocation36_spill] sm:$0xff] %v4156_v59  ;;  %v4160_v51 = vpop.permute.xlu0 %285 }
  0x8e   :  { %6729 = vst [vmem:[#allocation37_spill] sm:$0xff] %v4158_v52 }
  0x8f   :  { %6730 = vst [vmem:[#allocation38_spill] sm:$0xff] %v4160_v51 }
  0x92   :  { %379 = vrot.lane.b32.xlu2 %v4165_v53, %s3737_s15  ;;  %377 = vrot.lane.b32.xlu1 %v4170_v63, %s3737_s15  ;;  %v4197_v53 = vld [vmem:[%s6478_s0 + $0x1d0] sm:$0xff]  ;;  %v4202_v63 = vld [vmem:[%s6478_s0 + $0x1c8] sm:$0xff] }
  0x93   :  { %375 = vrot.lane.b32.xlu0 %v4175_v57, %s3737_s15  ;;  %6738 = vst [vmem:[#allocation46_spill] sm:$0xff] %v4197_v53 }
  0x94   :  { %v4183_v58 = vpop.permute.xlu2 %313  ;;  %v4185_v46 = vpop.permute.xlu1 %293  ;;  %6739 = vst [vmem:[#allocation47_spill] sm:$0xff] %v4202_v63 }
  0x95   :  { %6734 = vst [vmem:[#allocation42_spill] sm:$0xff] %v4183_v58  ;;  %v4187_v45 = vpop.permute.xlu0 %291 }
  0x96   :  { %6735 = vst [vmem:[#allocation43_spill] sm:$0xff] %v4185_v46 }
  0x97   :  { %6736 = vst [vmem:[#allocation44_spill] sm:$0xff] %v4187_v45 }
  0x9a   :  { %385 = vrot.lane.b32.xlu2 %v4192_v47, %s3737_s15  ;;  %383 = vrot.lane.b32.xlu1 %v4197_v53, %s3737_s15  ;;  %v4224_v47 = vld [vmem:[%s6478_s0 + $0x1e8] sm:$0xff]  ;;  %v4229_v53 = vld [vmem:[%s6478_s0 + $0x1e0] sm:$0xff] }
  0x9b   :  { %381 = vrot.lane.b32.xlu0 %v4202_v63, %s3737_s15  ;;  %6744 = vst [vmem:[#allocation52_spill] sm:$0xff] %v4224_v47 }
  0x9c   :  { %v4210_v57 = vpop.permute.xlu2 %319  ;;  %v4212_v42 = vpop.permute.xlu1 %299  ;;  %6745 = vst [vmem:[#allocation53_spill] sm:$0xff] %v4229_v53 }
  0x9d   :  { %6740 = vst [vmem:[#allocation48_spill] sm:$0xff] %v4210_v57  ;;  %v4214_v41 = vpop.permute.xlu0 %297 }
  0x9e   :  { %6741 = vst [vmem:[#allocation49_spill] sm:$0xff] %v4212_v42 }
  0x9f   :  { %6742 = vst [vmem:[#allocation50_spill] sm:$0xff] %v4214_v41 }
  0xa2   :  { %391 = vrot.lane.b32.xlu2 %v4219_v43, %s3737_s15  ;;  %389 = vrot.lane.b32.xlu1 %v4224_v47, %s3737_s15  ;;  %v4251_v43 = vld [vmem:[%s6478_s0 + $0x200] sm:$0xff]  ;;  %v4256_v47 = vld [vmem:[%s6478_s0 + $0x1f8] sm:$0xff] }
  0xa3   :  { %387 = vrot.lane.b32.xlu0 %v4229_v53, %s3737_s15  ;;  %6750 = vst [vmem:[#allocation58_spill] sm:$0xff] %v4251_v43 }
  0xa4   :  { %v4237_v63 = vpop.permute.xlu2 %325  ;;  %v4239_v38 = vpop.permute.xlu1 %305  ;;  %6751 = vst [vmem:[#allocation59_spill] sm:$0xff] %v4256_v47 }
  0xa5   :  { %6746 = vst [vmem:[#allocation54_spill] sm:$0xff] %v4237_v63  ;;  %v4241_v37 = vpop.permute.xlu0 %303  ;;  %v4354_v63 = vld [vmem:[%s6478_s0 + $0x268] sm:$0xff] }
  0xa6   :  { %6747 = vst [vmem:[#allocation55_spill] sm:$0xff] %v4239_v38 }
  0xa7   :  { %6748 = vst [vmem:[#allocation56_spill] sm:$0xff] %v4241_v37 }
  0xa8   :  { %6773 = vst [vmem:[#allocation81_spill] sm:$0xff] %v4354_v63 }
  0xaa   :  { %397 = vrot.lane.b32.xlu2 %v4246_v39, %s3737_s15  ;;  %395 = vrot.lane.b32.xlu1 %v4251_v43, %s3737_s15  ;;  %v4278_v39 = vld [vmem:[%s6478_s0 + $0x218] sm:$0xff]  ;;  %v4283_v43 = vld [vmem:[%s6478_s0 + $0x210] sm:$0xff] }
  0xab   :  { %393 = vrot.lane.b32.xlu0 %v4256_v47, %s3737_s15  ;;  %6756 = vst [vmem:[#allocation64_spill] sm:$0xff] %v4278_v39 }
  0xac   :  { %v4264_v53 = vpop.permute.xlu2 %331  ;;  %v4266_v34 = vpop.permute.xlu1 %311  ;;  %6757 = vst [vmem:[#allocation65_spill] sm:$0xff] %v4283_v43 }
  0xad   :  { %6752 = vst [vmem:[#allocation60_spill] sm:$0xff] %v4264_v53  ;;  %v4268_v33 = vpop.permute.xlu0 %309 }
  0xae   :  { %6753 = vst [vmem:[#allocation61_spill] sm:$0xff] %v4266_v34 }
  0xaf   :  { %6754 = vst [vmem:[#allocation62_spill] sm:$0xff] %v4268_v33 }
  0xb2   :  { %403 = vrot.lane.b32.xlu2 %v4273_v35, %s3737_s15  ;;  %401 = vrot.lane.b32.xlu1 %v4278_v39, %s3737_s15  ;;  %v4305_v35 = vld [vmem:[%s6478_s0 + $0x230] sm:$0xff]  ;;  %v4310_v39 = vld [vmem:[%s6478_s0 + $0x228] sm:$0xff] }
  0xb3   :  { %399 = vrot.lane.b32.xlu0 %v4283_v43, %s3737_s15  ;;  %6762 = vst [vmem:[#allocation70_spill] sm:$0xff] %v4305_v35 }
  0xb4   :  { %v4291_v47 = vpop.permute.xlu2 %337  ;;  %v4293_v31 = vpop.permute.xlu1 %317  ;;  %6763 = vst [vmem:[#allocation71_spill] sm:$0xff] %v4310_v39 }
  0xb5   :  { %6758 = vst [vmem:[#allocation66_spill] sm:$0xff] %v4291_v47  ;;  %v4295_v53 = vpop.permute.xlu0 %315 }
  0xb6   :  { %6759 = vst [vmem:[#allocation67_spill] sm:$0xff] %v4293_v31 }
  0xb7   :  { %6760 = vst [vmem:[#allocation68_spill] sm:$0xff] %v4295_v53 }
  0xba   :  { %409 = vrot.lane.b32.xlu2 %v4300_v30, %s3737_s15  ;;  %407 = vrot.lane.b32.xlu1 %v4305_v35, %s3737_s15  ;;  %v4332_v30 = vld [vmem:[%s6478_s0 + $0x248] sm:$0xff]  ;;  %v4337_v35 = vld [vmem:[%s6478_s0 + $0x240] sm:$0xff] }
  0xbb   :  { %405 = vrot.lane.b32.xlu0 %v4310_v39, %s3737_s15  ;;  %6768 = vst [vmem:[#allocation76_spill] sm:$0xff] %v4332_v30 }
  0xbc   :  { %v4318_v43 = vpop.permute.xlu2 %343  ;;  %v4320_v47 = vpop.permute.xlu1 %323  ;;  %6769 = vst [vmem:[#allocation77_spill] sm:$0xff] %v4337_v35 }
  0xbd   :  { %6764 = vst [vmem:[#allocation72_spill] sm:$0xff] %v4318_v43  ;;  %v4322_v32 = vpop.permute.xlu0 %321 }
  0xbe   :  { %6765 = vst [vmem:[#allocation73_spill] sm:$0xff] %v4320_v47 }
  0xbf   :  { %6766 = vst [vmem:[#allocation74_spill] sm:$0xff] %v4322_v32 }
  0xc2   :  { %415 = vrot.lane.b32.xlu2 %v4327_v28, %s3737_s15  ;;  %413 = vrot.lane.b32.xlu1 %v4332_v30, %s3737_s15  ;;  %v4359_v28 = vld [vmem:[%s6478_s0 + $0x260] sm:$0xff]  ;;  %v4364_v30 = vld [vmem:[%s6478_s0 + $0x258] sm:$0xff] }
  0xc3   :  { %411 = vrot.lane.b32.xlu0 %v4337_v35, %s3737_s15  ;;  %6774 = vst [vmem:[#allocation82_spill] sm:$0xff] %v4359_v28 }
  0xc4   :  { %v4345_v39 = vpop.permute.xlu2 %349  ;;  %v4347_v43 = vpop.permute.xlu1 %329  ;;  %6775 = vst [vmem:[#allocation83_spill] sm:$0xff] %v4364_v30 }
  0xc5   :  { %6770 = vst [vmem:[#allocation78_spill] sm:$0xff] %v4345_v39  ;;  %v4349_v47 = vpop.permute.xlu0 %327 }
  0xc6   :  { %6771 = vst [vmem:[#allocation79_spill] sm:$0xff] %v4347_v43 }
  0xc7   :  { %6772 = vst [vmem:[#allocation80_spill] sm:$0xff] %v4349_v47  ;;  %v4381_v47 = vld [vmem:[%s6478_s0 + $0x280] sm:$0xff] }
  0xc8   :  { %6779 = vst [vmem:[#allocation87_spill] sm:$0xff] %v4381_v47 }
  0xca   :  { %421 = vrot.lane.b32.xlu2 %v4354_v63, %s3737_s15  ;;  %419 = vrot.lane.b32.xlu1 %v4359_v28, %s3737_s15  ;;  %v4386_v63 = vld [vmem:[%s6478_s0 + $0x278] sm:$0xff]  ;;  %v4391_v28 = vld [vmem:[%s6478_s0 + $0x270] sm:$0xff] }
  0xcb   :  { %417 = vrot.lane.b32.xlu0 %v4364_v30, %s3737_s15  ;;  %6780 = vst [vmem:[#allocation88_spill] sm:$0xff] %v4386_v63 }
  0xcc   :  { %v4372_v35 = vpop.permute.xlu2 %355  ;;  %v4374_v39 = vpop.permute.xlu1 %335  ;;  %6781 = vst [vmem:[#allocation89_spill] sm:$0xff] %v4391_v28 }
  0xcd   :  { %6776 = vst [vmem:[#allocation84_spill] sm:$0xff] %v4372_v35  ;;  %v4376_v43 = vpop.permute.xlu0 %333 }
  0xce   :  { %6777 = vst [vmem:[#allocation85_spill] sm:$0xff] %v4374_v39 }
  0xcf   :  { %6778 = vst [vmem:[#allocation86_spill] sm:$0xff] %v4376_v43  ;;  %v4408_v43 = vld [vmem:[%s6478_s0 + $0x298] sm:$0xff] }
  0xd0   :  { %6785 = vst [vmem:[#allocation93_spill] sm:$0xff] %v4408_v43 }
  0xd2   :  { %427 = vrot.lane.b32.xlu2 %v4381_v47, %s3737_s15  ;;  %425 = vrot.lane.b32.xlu1 %v4386_v63, %s3737_s15  ;;  %v4413_v47 = vld [vmem:[%s6478_s0 + $0x290] sm:$0xff]  ;;  %v4418_v63 = vld [vmem:[%s6478_s0 + $0x288] sm:$0xff] }
  0xd3   :  { %423 = vrot.lane.b32.xlu0 %v4391_v28, %s3737_s15  ;;  %6786 = vst [vmem:[#allocation94_spill] sm:$0xff] %v4413_v47 }
  0xd4   :  { %v4399_v30 = vpop.permute.xlu2 %361  ;;  %v4401_v35 = vpop.permute.xlu1 %341  ;;  %6787 = vst [vmem:[#allocation95_spill] sm:$0xff] %v4418_v63 }
  0xd5   :  { %6782 = vst [vmem:[#allocation90_spill] sm:$0xff] %v4399_v30  ;;  %v4403_v39 = vpop.permute.xlu0 %339 }
  0xd6   :  { %6783 = vst [vmem:[#allocation91_spill] sm:$0xff] %v4401_v35 }
  0xd7   :  { %6784 = vst [vmem:[#allocation92_spill] sm:$0xff] %v4403_v39  ;;  %v4435_v39 = vld [vmem:[%s6478_s0 + $0x2b0] sm:$0xff] }
  0xd8   :  { %6791 = vst [vmem:[#allocation99_spill] sm:$0xff] %v4435_v39 }
  0xda   :  { %433 = vrot.lane.b32.xlu2 %v4408_v43, %s3737_s15  ;;  %431 = vrot.lane.b32.xlu1 %v4413_v47, %s3737_s15  ;;  %v4440_v43 = vld [vmem:[%s6478_s0 + $0x2a8] sm:$0xff]  ;;  %v4445_v47 = vld [vmem:[%s6478_s0 + $0x2a0] sm:$0xff] }
  0xdb   :  { %429 = vrot.lane.b32.xlu0 %v4418_v63, %s3737_s15  ;;  %6792 = vst [vmem:[#allocation100_spill] sm:$0xff] %v4440_v43 }
  0xdc   :  { %v4426_v28 = vpop.permute.xlu2 %367  ;;  %v4428_v30 = vpop.permute.xlu1 %347  ;;  %6793 = vst [vmem:[#allocation101_spill] sm:$0xff] %v4445_v47 }
  0xdd   :  { %6788 = vst [vmem:[#allocation96_spill] sm:$0xff] %v4426_v28  ;;  %v4430_v35 = vpop.permute.xlu0 %345 }
  0xde   :  { %6789 = vst [vmem:[#allocation97_spill] sm:$0xff] %v4428_v30 }
  0xdf   :  { %6790 = vst [vmem:[#allocation98_spill] sm:$0xff] %v4430_v35  ;;  %v4462_v35 = vld [vmem:[%s6478_s0 + $0x2c8] sm:$0xff] }
  0xe0   :  { %6797 = vst [vmem:[#allocation105_spill] sm:$0xff] %v4462_v35 }
  0xe2   :  { %439 = vrot.lane.b32.xlu2 %v4435_v39, %s3737_s15  ;;  %437 = vrot.lane.b32.xlu1 %v4440_v43, %s3737_s15  ;;  %v4467_v39 = vld [vmem:[%s6478_s0 + $0x2c0] sm:$0xff]  ;;  %v4472_v43 = vld [vmem:[%s6478_s0 + $0x2b8] sm:$0xff] }
  0xe3   :  { %435 = vrot.lane.b32.xlu0 %v4445_v47, %s3737_s15  ;;  %6798 = vst [vmem:[#allocation106_spill] sm:$0xff] %v4467_v39 }
  0xe4   :  { %v4453_v63 = vpop.permute.xlu2 %373  ;;  %v4455_v28 = vpop.permute.xlu1 %353  ;;  %6799 = vst [vmem:[#allocation107_spill] sm:$0xff] %v4472_v43 }
  0xe5   :  { %6794 = vst [vmem:[#allocation102_spill] sm:$0xff] %v4453_v63  ;;  %v4457_v30 = vpop.permute.xlu0 %351 }
  0xe6   :  { %6795 = vst [vmem:[#allocation103_spill] sm:$0xff] %v4455_v28 }
  0xe7   :  { %6796 = vst [vmem:[#allocation104_spill] sm:$0xff] %v4457_v30  ;;  %v4489_v30 = vld [vmem:[%s6478_s0 + $0x2e0] sm:$0xff] }
  0xe8   :  { %6803 = vst [vmem:[#allocation111_spill] sm:$0xff] %v4489_v30 }
  0xea   :  { %445 = vrot.lane.b32.xlu2 %v4462_v35, %s3737_s15  ;;  %443 = vrot.lane.b32.xlu1 %v4467_v39, %s3737_s15  ;;  %v4494_v35 = vld [vmem:[%s6478_s0 + $0x2d8] sm:$0xff]  ;;  %v4499_v39 = vld [vmem:[%s6478_s0 + $0x2d0] sm:$0xff] }
  0xeb   :  { %441 = vrot.lane.b32.xlu0 %v4472_v43, %s3737_s15  ;;  %6804 = vst [vmem:[#allocation112_spill] sm:$0xff] %v4494_v35 }
  0xec   :  { %v4480_v47 = vpop.permute.xlu2 %379  ;;  %v4482_v63 = vpop.permute.xlu1 %359  ;;  %6805 = vst [vmem:[#allocation113_spill] sm:$0xff] %v4499_v39 }
  0xed   :  { %6800 = vst [vmem:[#allocation108_spill] sm:$0xff] %v4480_v47  ;;  %v4484_v28 = vpop.permute.xlu0 %357 }
  0xee   :  { %6801 = vst [vmem:[#allocation109_spill] sm:$0xff] %v4482_v63 }
  0xef   :  { %6802 = vst [vmem:[#allocation110_spill] sm:$0xff] %v4484_v28  ;;  %v4516_v28 = vld [vmem:[%s6478_s0 + $0x2f8] sm:$0xff] }
  0xf0   :  { %6809 = vst [vmem:[#allocation117_spill] sm:$0xff] %v4516_v28 }
  0xf2   :  { %451 = vrot.lane.b32.xlu2 %v4489_v30, %s3737_s15  ;;  %449 = vrot.lane.b32.xlu1 %v4494_v35, %s3737_s15  ;;  %v4521_v30 = vld [vmem:[%s6478_s0 + $0x2f0] sm:$0xff]  ;;  %v4526_v35 = vld [vmem:[%s6478_s0 + $0x2e8] sm:$0xff] }
  0xf3   :  { %447 = vrot.lane.b32.xlu0 %v4499_v39, %s3737_s15  ;;  %6810 = vst [vmem:[#allocation118_spill] sm:$0xff] %v4521_v30 }
  0xf4   :  { %v4507_v43 = vpop.permute.xlu2 %385  ;;  %v4509_v47 = vpop.permute.xlu1 %365  ;;  %6811 = vst [vmem:[#allocation119_spill] sm:$0xff] %v4526_v35 }
  0xf5   :  { %6806 = vst [vmem:[#allocation114_spill] sm:$0xff] %v4507_v43  ;;  %v4511_v63 = vpop.permute.xlu0 %363 }
  0xf6   :  { %6807 = vst [vmem:[#allocation115_spill] sm:$0xff] %v4509_v47 }
  0xf7   :  { %6808 = vst [vmem:[#allocation116_spill] sm:$0xff] %v4511_v63  ;;  %v4543_v63 = vld [vmem:[%s6478_s0 + $0x310] sm:$0xff] }
  0xf8   :  { %6815 = vst [vmem:[#allocation123_spill] sm:$0xff] %v4543_v63 }
  0xfa   :  { %457 = vrot.lane.b32.xlu2 %v4516_v28, %s3737_s15  ;;  %455 = vrot.lane.b32.xlu1 %v4521_v30, %s3737_s15  ;;  %v4548_v28 = vld [vmem:[%s6478_s0 + $0x308] sm:$0xff]  ;;  %v4553_v30 = vld [vmem:[%s6478_s0 + $0x300] sm:$0xff] }
  0xfb   :  { %453 = vrot.lane.b32.xlu0 %v4526_v35, %s3737_s15  ;;  %6816 = vst [vmem:[#allocation124_spill] sm:$0xff] %v4548_v28 }
  0xfc   :  { %v4534_v39 = vpop.permute.xlu2 %391  ;;  %v4536_v43 = vpop.permute.xlu1 %371  ;;  %6817 = vst [vmem:[#allocation125_spill] sm:$0xff] %v4553_v30 }
  0xfd   :  { %6812 = vst [vmem:[#allocation120_spill] sm:$0xff] %v4534_v39  ;;  %v4538_v47 = vpop.permute.xlu0 %369 }
  0xfe   :  { %6813 = vst [vmem:[#allocation121_spill] sm:$0xff] %v4536_v43 }
  0xff   :  { %6814 = vst [vmem:[#allocation122_spill] sm:$0xff] %v4538_v47  ;;  %v4570_v47 = vld [vmem:[%s6478_s0 + $0x328] sm:$0xff] }
 0x100   :  { %6821 = vst [vmem:[#allocation129_spill] sm:$0xff] %v4570_v47 }
 0x102   :  { %463 = vrot.lane.b32.xlu2 %v4543_v63, %s3737_s15  ;;  %461 = vrot.lane.b32.xlu1 %v4548_v28, %s3737_s15  ;;  %v4575_v63 = vld [vmem:[%s6478_s0 + $0x320] sm:$0xff]  ;;  %v4580_v28 = vld [vmem:[%s6478_s0 + $0x318] sm:$0xff] }
 0x103   :  { %459 = vrot.lane.b32.xlu0 %v4553_v30, %s3737_s15  ;;  %6822 = vst [vmem:[#allocation130_spill] sm:$0xff] %v4575_v63 }
 0x104   :  { %v4561_v35 = vpop.permute.xlu2 %397  ;;  %v4563_v39 = vpop.permute.xlu1 %377  ;;  %6823 = vst [vmem:[#allocation131_spill] sm:$0xff] %v4580_v28 }
 0x105   :  { %6818 = vst [vmem:[#allocation126_spill] sm:$0xff] %v4561_v35  ;;  %v4565_v43 = vpop.permute.xlu0 %375 }
 0x106   :  { %6819 = vst [vmem:[#allocation127_spill] sm:$0xff] %v4563_v39 }
 0x107   :  { %6820 = vst [vmem:[#allocation128_spill] sm:$0xff] %v4565_v43  ;;  %v4597_v43 = vld [vmem:[%s6478_s0 + $0x340] sm:$0xff] }
 0x108   :  { %6827 = vst [vmem:[#allocation135_spill] sm:$0xff] %v4597_v43 }
 0x10a   :  { %469 = vrot.lane.b32.xlu2 %v4570_v47, %s3737_s15  ;;  %467 = vrot.lane.b32.xlu1 %v4575_v63, %s3737_s15  ;;  %v4602_v47 = vld [vmem:[%s6478_s0 + $0x338] sm:$0xff]  ;;  %v4607_v63 = vld [vmem:[%s6478_s0 + $0x330] sm:$0xff] }
 0x10b   :  { %465 = vrot.lane.b32.xlu0 %v4580_v28, %s3737_s15  ;;  %6828 = vst [vmem:[#allocation136_spill] sm:$0xff] %v4602_v47 }
 0x10c   :  { %v4588_v30 = vpop.permute.xlu2 %403  ;;  %v4590_v35 = vpop.permute.xlu1 %383  ;;  %6829 = vst [vmem:[#allocation137_spill] sm:$0xff] %v4607_v63 }
 0x10d   :  { %6824 = vst [vmem:[#allocation132_spill] sm:$0xff] %v4588_v30  ;;  %v4592_v39 = vpop.permute.xlu0 %381 }
 0x10e   :  { %6825 = vst [vmem:[#allocation133_spill] sm:$0xff] %v4590_v35 }
 0x10f   :  { %6826 = vst [vmem:[#allocation134_spill] sm:$0xff] %v4592_v39  ;;  %v4624_v39 = vld [vmem:[%s6478_s0 + $0x358] sm:$0xff] }
 0x110   :  { %6833 = vst [vmem:[#allocation141_spill] sm:$0xff] %v4624_v39 }
 0x112   :  { %475 = vrot.lane.b32.xlu2 %v4597_v43, %s3737_s15  ;;  %473 = vrot.lane.b32.xlu1 %v4602_v47, %s3737_s15  ;;  %v4629_v43 = vld [vmem:[%s6478_s0 + $0x350] sm:$0xff]  ;;  %v4634_v47 = vld [vmem:[%s6478_s0 + $0x348] sm:$0xff] }
 0x113   :  { %471 = vrot.lane.b32.xlu0 %v4607_v63, %s3737_s15  ;;  %6834 = vst [vmem:[#allocation142_spill] sm:$0xff] %v4629_v43 }
 0x114   :  { %v4615_v28 = vpop.permute.xlu2 %409  ;;  %v4617_v30 = vpop.permute.xlu1 %389  ;;  %6835 = vst [vmem:[#allocation143_spill] sm:$0xff] %v4634_v47 }
 0x115   :  { %6830 = vst [vmem:[#allocation138_spill] sm:$0xff] %v4615_v28  ;;  %v4619_v35 = vpop.permute.xlu0 %387 }
 0x116   :  { %6831 = vst [vmem:[#allocation139_spill] sm:$0xff] %v4617_v30 }
 0x117   :  { %6832 = vst [vmem:[#allocation140_spill] sm:$0xff] %v4619_v35  ;;  %v4651_v35 = vld [vmem:[%s6478_s0 + $0x370] sm:$0xff] }
 0x118   :  { %6839 = vst [vmem:[#allocation147_spill] sm:$0xff] %v4651_v35 }
 0x11a   :  { %481 = vrot.lane.b32.xlu2 %v4624_v39, %s3737_s15  ;;  %479 = vrot.lane.b32.xlu1 %v4629_v43, %s3737_s15  ;;  %v4656_v39 = vld [vmem:[%s6478_s0 + $0x368] sm:$0xff]  ;;  %v4661_v43 = vld [vmem:[%s6478_s0 + $0x360] sm:$0xff] }
 0x11b   :  { %477 = vrot.lane.b32.xlu0 %v4634_v47, %s3737_s15  ;;  %6840 = vst [vmem:[#allocation148_spill] sm:$0xff] %v4656_v39 }
 0x11c   :  { %v4642_v63 = vpop.permute.xlu2 %415  ;;  %v4644_v28 = vpop.permute.xlu1 %395  ;;  %6841 = vst [vmem:[#allocation149_spill] sm:$0xff] %v4661_v43 }
 0x11d   :  { %6836 = vst [vmem:[#allocation144_spill] sm:$0xff] %v4642_v63  ;;  %v4646_v30 = vpop.permute.xlu0 %393 }
 0x11e   :  { %6837 = vst [vmem:[#allocation145_spill] sm:$0xff] %v4644_v28 }
 0x11f   :  { %6838 = vst [vmem:[#allocation146_spill] sm:$0xff] %v4646_v30  ;;  %v4678_v30 = vld [vmem:[%s6478_s0 + $0x388] sm:$0xff] }
 0x120   :  { %6845 = vst [vmem:[#allocation153_spill] sm:$0xff] %v4678_v30 }
 0x122   :  { %487 = vrot.lane.b32.xlu2 %v4651_v35, %s3737_s15  ;;  %485 = vrot.lane.b32.xlu1 %v4656_v39, %s3737_s15  ;;  %v4683_v35 = vld [vmem:[%s6478_s0 + $0x380] sm:$0xff]  ;;  %v4688_v39 = vld [vmem:[%s6478_s0 + $0x378] sm:$0xff] }
 0x123   :  { %483 = vrot.lane.b32.xlu0 %v4661_v43, %s3737_s15  ;;  %6846 = vst [vmem:[#allocation154_spill] sm:$0xff] %v4683_v35 }
 0x124   :  { %v4669_v47 = vpop.permute.xlu2 %421  ;;  %v4671_v63 = vpop.permute.xlu1 %401  ;;  %6847 = vst [vmem:[#allocation155_spill] sm:$0xff] %v4688_v39 }
 0x125   :  { %6842 = vst [vmem:[#allocation150_spill] sm:$0xff] %v4669_v47  ;;  %v4673_v28 = vpop.permute.xlu0 %399 }
 0x126   :  { %6843 = vst [vmem:[#allocation151_spill] sm:$0xff] %v4671_v63 }
 0x127   :  { %6844 = vst [vmem:[#allocation152_spill] sm:$0xff] %v4673_v28  ;;  %v4705_v28 = vld [vmem:[%s6478_s0 + $0x3a0] sm:$0xff] }
 0x128   :  { %6851 = vst [vmem:[#allocation159_spill] sm:$0xff] %v4705_v28 }
 0x12a   :  { %493 = vrot.lane.b32.xlu2 %v4678_v30, %s3737_s15  ;;  %491 = vrot.lane.b32.xlu1 %v4683_v35, %s3737_s15  ;;  %v4710_v30 = vld [vmem:[%s6478_s0 + $0x398] sm:$0xff]  ;;  %v4715_v35 = vld [vmem:[%s6478_s0 + $0x390] sm:$0xff] }
 0x12b   :  { %489 = vrot.lane.b32.xlu0 %v4688_v39, %s3737_s15  ;;  %6852 = vst [vmem:[#allocation160_spill] sm:$0xff] %v4710_v30  ;;  %v3738_v39 = vmov 1  }
 0x12c   :  { %v4696_v43 = vpop.permute.xlu2 %427  ;;  %v4698_v47 = vpop.permute.xlu1 %407  ;;  %6853 = vst [vmem:[#allocation161_spill] sm:$0xff] %v4715_v35  ;;  %3604 = vset.pattern.permute.xlu2 %v3738_v39  ;;  %3606 = vset.pattern.permute.xlu1 %v3738_v39 }
 0x12d   :  { %6848 = vst [vmem:[#allocation156_spill] sm:$0xff] %v4696_v43  ;;  %v4700_v63 = vpop.permute.xlu0 %405  ;;  %3605 = vset.pattern.permute.xlu0 %v3738_v39 }
 0x12e   :  { %6849 = vst [vmem:[#allocation157_spill] sm:$0xff] %v4698_v47 }
 0x12f   :  { %6850 = vst [vmem:[#allocation158_spill] sm:$0xff] %v4700_v63 }
 0x132   :  { %499 = vrot.lane.b32.xlu2 %v4705_v28, %s3737_s15  ;;  %497 = vrot.lane.b32.xlu1 %v4710_v30, %s3737_s15  ;;  %v4737_v28 = vld [vmem:[%s6478_s0 + $0x3b0] sm:$0xff]  ;;  %v4742_v30 = vld [vmem:[%s6478_s0 + $0x3a8] sm:$0xff] }
 0x133   :  { %495 = vrot.lane.b32.xlu0 %v4715_v35, %s3737_s15  ;;  %6858 = vst [vmem:[#allocation166_spill] sm:$0xff] %v4737_v28 }
 0x134   :  { %v4723_v43 = vpop.permute.xlu2 %433  ;;  %v4725_v47 = vpop.permute.xlu1 %413  ;;  %6859 = vst [vmem:[#allocation167_spill] sm:$0xff] %v4742_v30 }
 0x135   :  { %6854 = vst [vmem:[#allocation162_spill] sm:$0xff] %v4723_v43  ;;  %v4727_v63 = vpop.permute.xlu0 %411 }
 0x136   :  { %6855 = vst [vmem:[#allocation163_spill] sm:$0xff] %v4725_v47  ;;  %v4759_v47 = vld [vmem:[%s6478_s0 + $0x3d0] sm:$0xff] }
 0x137   :  { %6856 = vst [vmem:[#allocation164_spill] sm:$0xff] %v4727_v63  ;;  %v4815_v63 = vld [vmem:[%s6478_s0 + $0x3f8] sm:$0xff] }
 0x138   :  { %6863 = vst [vmem:[#allocation171_spill] sm:$0xff] %v4759_v47 }
 0x139   :  { %6875 = vst [vmem:[#allocation183_spill] sm:$0xff] %v4815_v63 }
 0x13a   :  { %505 = vrot.lane.b32.xlu2 %v4732_v27, %s3737_s15  ;;  %503 = vrot.lane.b32.xlu1 %v4737_v28, %s3737_s15  ;;  %v4764_v27 = vld [vmem:[%s6478_s0 + $0x3c8] sm:$0xff]  ;;  %v4769_v28 = vld [vmem:[%s6478_s0 + $0x3c0] sm:$0xff] }
 0x13b   :  { %501 = vrot.lane.b32.xlu0 %v4742_v30, %s3737_s15  ;;  %6864 = vst [vmem:[#allocation172_spill] sm:$0xff] %v4764_v27 }
 0x13c   :  { %v4750_v39 = vpop.permute.xlu2 %439  ;;  %v4752_v35 = vpop.permute.xlu1 %419  ;;  %6865 = vst [vmem:[#allocation173_spill] sm:$0xff] %v4769_v28 }
 0x13d   :  { %6860 = vst [vmem:[#allocation168_spill] sm:$0xff] %v4750_v39  ;;  %v4754_v43 = vpop.permute.xlu0 %417 }
 0x13e   :  { %6861 = vst [vmem:[#allocation169_spill] sm:$0xff] %v4752_v35 }
 0x13f   :  { %6862 = vst [vmem:[#allocation170_spill] sm:$0xff] %v4754_v43  ;;  %v4786_v43 = vld [vmem:[%s6478_s0 + $0x3e8] sm:$0xff] }
 0x140   :  { %6869 = vst [vmem:[#allocation177_spill] sm:$0xff] %v4786_v43 }
 0x142   :  { %511 = vrot.lane.b32.xlu2 %v4759_v47, %s3737_s15  ;;  %509 = vrot.lane.b32.xlu1 %v4764_v27, %s3737_s15  ;;  %v4791_v47 = vld [vmem:[%s6478_s0 + $0x3e0] sm:$0xff]  ;;  %v4796_v27 = vld [vmem:[%s6478_s0 + $0x3d8] sm:$0xff] }
 0x143   :  { %507 = vrot.lane.b32.xlu0 %v4769_v28, %s3737_s15  ;;  %6870 = vst [vmem:[#allocation178_spill] sm:$0xff] %v4791_v47  ;;  %v907_v28 = vadd.f32 %v4079_v50, %v3767_v2  ;;  %v909_v2 = vadd.f32 %v4077_v49, %v3762_v1  ;;  %v910_v50 = vadd.f32 %v4104_v55, %v3783_v4 }
 0x144   :  { %v4777_v30 = vpop.permute.xlu2 %445  ;;  %v4779_v39 = vpop.permute.xlu1 %425  ;;  %6871 = vst [vmem:[#allocation179_spill] sm:$0xff] %v4796_v27  ;;  %v911_v1 = vadd.f32 %v4006_v36, %v3757_v0  ;;  %v912_v4 = vadd.f32 %v4029_v40, %v3778_v3  ;;  %v915_v0 = vadd.f32 %v4052_v44, %v3799_v6  ;;  %v914_v3 = vadd.f32 %v4131_v61, %v3804_v7 }
 0x145   :  { %6866 = vst [vmem:[#allocation174_spill] sm:$0xff] %v4777_v30  ;;  %v4781_v35 = vpop.permute.xlu0 %423  ;;  %v918_v6 = vadd.f32 %v4075_v48, %v3820_v9  ;;  %v917_v7 = vadd.f32 %v4158_v52, %v3825_v10  ;;  %v921_v9 = vadd.f32 %v4102_v54, %v3841_v12  ;;  %v920_v10 = vadd.f32 %v4185_v46, %v3846_v13  ;;  %v6935_v46 = vld [vmem:[#allocation19_spill] sm:$0xff]  ;;  %v6944_v48 = vld [vmem:[#allocation25_spill] sm:$0xff] }
 0x146   :  { %6867 = vst [vmem:[#allocation175_spill] sm:$0xff] %v4779_v39  ;;  %v924_v12 = vadd.f32 %v4129_v60, %v3862_v15  ;;  %v923_v13 = vadd.f32 %v4212_v42, %v3867_v16  ;;  %v927_v15 = vadd.f32 %v4156_v59, %v3883_v18  ;;  %v926_v16 = vadd.f32 %v4239_v38, %v3888_v19  ;;  %v6908_v59 = vld [vmem:[#allocation9_spill] sm:$0xff]  ;;  %v6917_v60 = vld [vmem:[#allocation12_spill] sm:$0xff] }
 0x147   :  { %6868 = vst [vmem:[#allocation176_spill] sm:$0xff] %v4781_v35  ;;  %v930_v18 = vadd.f32 %v4183_v58, %v3904_v21  ;;  %v929_v19 = vadd.f32 %v4266_v34, %v3909_v22  ;;  %v933_v21 = vadd.f32 %v4210_v57, %v3925_v24  ;;  %v932_v22 = vadd.f32 %v4293_v31, %v3930_v25  ;;  %v6896_v24 = vld [vmem:[#allocation54_spill] sm:$0xff]  ;;  %v6898_v25 = vld [vmem:[#allocation73_spill] sm:$0xff] }
 0x148   :  { %v6900_v58 = vld [vmem:[#allocation6_spill] sm:$0xff] }
 0x14a   :  { %517 = vrot.lane.b32.xlu2 %v4786_v43, %s3737_s15  ;;  %515 = vrot.lane.b32.xlu1 %v4791_v47, %s3737_s15  ;;  %v4820_v47 = vld [vmem:[%s6478_s0 + $0x3f0] sm:$0xff]  ;;  %v1035_v43 = vmul.f32 0.5, %v907_v28  ;;  %v908_v28 = vadd.f32 %v4106_v56, %v3788_v5  ;;  %v913_v5 = vadd.f32 %v4133_v62, %v3809_v8  ;;  %v916_v8 = vadd.f32 %v4160_v51, %v3830_v11  ;;  %v6953_v51 = vld [vmem:[#allocation31_spill] sm:$0xff] }
 0x14b   :  { %513 = vrot.lane.b32.xlu0 %v4796_v27, %s3737_s15  ;;  %v919_v11 = vadd.f32 %v4187_v45, %v3851_v14  ;;  %v922_v14 = vadd.f32 %v4214_v41, %v3872_v17  ;;  %v925_v17 = vadd.f32 %v4241_v37, %v3893_v20  ;;  %v928_v20 = vadd.f32 %v4268_v33, %v3914_v23  ;;  %v6926_v41 = vld [vmem:[#allocation15_spill] sm:$0xff] }
 0x14c   :  { %v4806_v30 = vpop.permute.xlu2 %451  ;;  %v4808_v39 = vpop.permute.xlu1 %431  ;;  %v931_v23 = vadd.f32 %v4295_v53, %v3935_v26  ;;  %v934_v26 = vadd.f32 %v4322_v32, %v3956_v29  ;;  %v6901_v29 = vld [vmem:[#allocation80_spill] sm:$0xff] }
 0x14d   :  { %6872 = vst [vmem:[#allocation180_spill] sm:$0xff] %v4806_v30  ;;  %v4810_v35 = vpop.permute.xlu0 %429  ;;  %v937_v32 = vadd.f32 %v6901_v29, %v6900_v58  ;;  %v6909_v58 = vld [vmem:[#allocation86_spill] sm:$0xff] }
 0x14e   :  { %6873 = vst [vmem:[#allocation181_spill] sm:$0xff] %v4808_v39  ;;  %v940_v29 = vadd.f32 %v6909_v58, %v6908_v59  ;;  %v6918_v59 = vld [vmem:[#allocation92_spill] sm:$0xff] }
 0x14f   :  { %6874 = vst [vmem:[#allocation182_spill] sm:$0xff] %v4810_v35  ;;  %v1036_v35 = vmul.f32 0.5, %v908_v28  ;;  %v943_v58 = vadd.f32 %v6918_v59, %v6917_v60  ;;  %v6927_v60 = vld [vmem:[#allocation98_spill] sm:$0xff] }
 0x150   :  { %v946_v59 = vadd.f32 %v6927_v60, %v6926_v41  ;;  %v6936_v41 = vld [vmem:[#allocation104_spill] sm:$0xff] }
 0x151   :  { %v949_v60 = vadd.f32 %v6936_v41, %v6935_v46  ;;  %v6945_v46 = vld [vmem:[#allocation110_spill] sm:$0xff] }
 0x152   :  { %521 = vrot.lane.b32.xlu1 %v4815_v63, %s3737_s15  ;;  %1169 = vperm.xlu2 %3604, %v1035_v43   ;;  %v1037_v63 = vmul.f32 0.5, %v909_v2  ;;  %v1038_v43 = vmul.f32 0.5, %v910_v50  ;;  %v1039_v50 = vmul.f32 0.5, %v911_v1  ;;  %v1040_v2 = vmul.f32 0.5, %v912_v4 }
 0x153   :  { %519 = vrot.lane.b32.xlu0 %v4820_v47, %s3737_s15  ;;  %v1042_v1 = vmul.f32 0.5, %v914_v3  ;;  %v1043_v4 = vmul.f32 0.5, %v915_v0  ;;  %v1045_v0 = vmul.f32 0.5, %v917_v7  ;;  %v1046_v3 = vmul.f32 0.5, %v918_v6 }
 0x154   :  { %v4830_v27 = vpop.permute.xlu2 %457  ;;  %v4832_v30 = vpop.permute.xlu1 %437  ;;  %v1048_v6 = vmul.f32 0.5, %v920_v10  ;;  %v1049_v7 = vmul.f32 0.5, %v921_v9  ;;  %v1051_v9 = vmul.f32 0.5, %v923_v13  ;;  %v1052_v10 = vmul.f32 0.5, %v924_v12 }
 0x155   :  { %6876 = vst [vmem:[#allocation184_spill] sm:$0xff] %v4830_v27  ;;  %v4836_v39 = vpop.permute.xlu0 %435  ;;  %v1055_v12 = vmul.f32 0.5, %v927_v15  ;;  %v1054_v13 = vmul.f32 0.5, %v926_v16  ;;  %v1058_v15 = vmul.f32 0.5, %v930_v18  ;;  %v1057_v16 = vmul.f32 0.5, %v929_v19 }
 0x156   :  { %6877 = vst [vmem:[#allocation185_spill] sm:$0xff] %v4836_v39  ;;  %v1061_v18 = vmul.f32 0.5, %v933_v21  ;;  %v1060_v19 = vmul.f32 0.5, %v932_v22  ;;  %v952_v41 = vadd.f32 %v6945_v46, %v6944_v48  ;;  %v6954_v48 = vld [vmem:[#allocation116_spill] sm:$0xff] }
 0x157   :  { %v955_v46 = vadd.f32 %v6954_v48, %v6953_v51  ;;  %v6963_v51 = vld [vmem:[#allocation122_spill] sm:$0xff] }
 0x15a   :  { %1179 = vperm.xlu1 %3606, %v1037_v63   ;;  %1184 = vperm.xlu2 %3604, %v1038_v43   ;;  %v1041_v63 = vmul.f32 0.5, %v913_v5  ;;  %v1044_v5 = vmul.f32 0.5, %v916_v8  ;;  %v1047_v8 = vmul.f32 0.5, %v919_v11  ;;  %v1050_v11 = vmul.f32 0.5, %v922_v14 }
 0x15b   :  { %1174 = vperm.xlu0 %3605, %v1036_v35   ;;  %v1053_v14 = vmul.f32 0.5, %v925_v17  ;;  %v1056_v17 = vmul.f32 0.5, %v928_v20  ;;  %v1059_v20 = vmul.f32 0.5, %v931_v23  ;;  %v1062_v23 = vmul.f32 0.5, %v934_v26 }
 0x15c   :  { %v4842_v55 = vpop.permute.xlu2 %463  ;;  %v4844_v49 = vpop.permute.xlu1 %443  ;;  %v1065_v26 = vmul.f32 0.5, %v937_v32 }
 0x15d   :  { %6878 = vst [vmem:[#allocation186_spill] sm:$0xff] %v4842_v55  ;;  %v4848_v56 = vpop.permute.xlu0 %441 }
 0x15e   :  { %6879 = vst [vmem:[#allocation187_spill] sm:$0xff] %v4844_v49 }
 0x15f   :  { %6880 = vst [vmem:[#allocation188_spill] sm:$0xff] %v4848_v56 }
 0x162   :  { %1189 = vperm.xlu1 %3606, %v1039_v50   ;;  %1194 = vperm.xlu2 %3604, %v1040_v2  }
 0x163   :  { %1199 = vperm.xlu0 %3605, %v1041_v63  }
 0x164   :  { %v4854_v35 = vpop.permute.xlu2 %469  ;;  %v4856_v28 = vpop.permute.xlu1 %449 }
 0x165   :  { %6881 = vst [vmem:[#allocation189_spill] sm:$0xff] %v4854_v35  ;;  %v4860_v43 = vpop.permute.xlu0 %447 }
 0x166   :  { %6882 = vst [vmem:[#allocation190_spill] sm:$0xff] %v4860_v43 }
 0x16a   :  { %1204 = vperm.xlu1 %3606, %v1042_v1   ;;  %1209 = vperm.xlu2 %3604, %v1043_v4  }
 0x16b   :  { %1214 = vperm.xlu0 %3605, %v1044_v5  }
 0x16c   :  { %v4866_v50 = vpop.permute.xlu2 %475  ;;  %v4868_v2 = vpop.permute.xlu1 %455 }
 0x16d   :  { %6883 = vst [vmem:[#allocation191_spill] sm:$0xff] %v4866_v50  ;;  %v4872_v63 = vpop.permute.xlu0 %453 }
 0x16e   :  { %6884 = vst [vmem:[#allocation192_spill] sm:$0xff] %v4872_v63 }
 0x172   :  { %1219 = vperm.xlu1 %3606, %v1045_v0   ;;  %1224 = vperm.xlu2 %3604, %v1046_v3  }
 0x173   :  { %1229 = vperm.xlu0 %3605, %v1047_v8  }
 0x174   :  { %v4878_v1 = vpop.permute.xlu2 %481  ;;  %v4880_v4 = vpop.permute.xlu1 %461 }
 0x175   :  { %6885 = vst [vmem:[#allocation193_spill] sm:$0xff] %v4878_v1  ;;  %v4884_v5 = vpop.permute.xlu0 %459 }
 0x176   :  { %6886 = vst [vmem:[#allocation194_spill] sm:$0xff] %v4884_v5 }
 0x17a   :  { %1234 = vperm.xlu1 %3606, %v1048_v6   ;;  %1239 = vperm.xlu2 %3604, %v1049_v7  }
 0x17b   :  { %1244 = vperm.xlu0 %3605, %v1050_v11  }
 0x17c   :  { %v4890_v0 = vpop.permute.xlu2 %487  ;;  %v4892_v3 = vpop.permute.xlu1 %467 }
 0x17d   :  { %6887 = vst [vmem:[#allocation195_spill] sm:$0xff] %v4890_v0  ;;  %v4896_v8 = vpop.permute.xlu0 %465 }
 0x17e   :  { %6888 = vst [vmem:[#allocation196_spill] sm:$0xff] %v4896_v8 }
 0x182   :  { %1249 = vperm.xlu1 %3606, %v1051_v9   ;;  %1254 = vperm.xlu2 %3604, %v1052_v10  }
 0x183   :  { %1259 = vperm.xlu0 %3605, %v1053_v14  }
 0x184   :  { %v4902_v6 = vpop.permute.xlu2 %493  ;;  %v4904_v7 = vpop.permute.xlu1 %473 }
 0x185   :  { %6889 = vst [vmem:[#allocation197_spill] sm:$0xff] %v4902_v6  ;;  %v4908_v11 = vpop.permute.xlu0 %471 }
 0x186   :  { %6890 = vst [vmem:[#allocation198_spill] sm:$0xff] %v4908_v11 }
 0x18a   :  { %1264 = vperm.xlu1 %3606, %v1054_v13   ;;  %1269 = vperm.xlu2 %3604, %v1055_v12  }
 0x18b   :  { %1274 = vperm.xlu0 %3605, %v1056_v17  }
 0x18c   :  { %v4914_v9 = vpop.permute.xlu2 %499  ;;  %v4916_v10 = vpop.permute.xlu1 %479 }
 0x18d   :  { %6891 = vst [vmem:[#allocation199_spill] sm:$0xff] %v4914_v9  ;;  %v4920_v14 = vpop.permute.xlu0 %477 }
 0x18e   :  { %6892 = vst [vmem:[#allocation200_spill] sm:$0xff] %v4920_v14 }
 0x192   :  { %1279 = vperm.xlu1 %3606, %v1057_v16   ;;  %1284 = vperm.xlu2 %3604, %v1058_v15   ;;  %v6895_v15 = vld [vmem:[#allocation2_spill] sm:$0xff] }
 0x193   :  { %1289 = vperm.xlu0 %3605, %v1059_v20   ;;  %v936_v16 = vadd.f32 %v6896_v24, %v6895_v15  ;;  %v6897_v20 = vld [vmem:[#allocation3_spill] sm:$0xff]  ;;  %v6905_v15 = vld [vmem:[#allocation5_spill] sm:$0xff] }
 0x194   :  { %v4926_v12 = vpop.permute.xlu2 %505  ;;  %v4928_v13 = vpop.permute.xlu1 %485  ;;  %v935_v57 = vadd.f32 %v6898_v25, %v6897_v20  ;;  %v6906_v20 = vld [vmem:[#allocation79_spill] sm:$0xff] }
 0x195   :  { %6893 = vst [vmem:[#allocation201_spill] sm:$0xff] %v4926_v12  ;;  %v4932_v17 = vpop.permute.xlu0 %483  ;;  %v1064_v21 = vmul.f32 0.5, %v936_v16  ;;  %v938_v24 = vadd.f32 %v6906_v20, %v6905_v15  ;;  %v1068_v16 = vmul.f32 0.5, %v940_v29  ;;  %v6914_v15 = vld [vmem:[#allocation85_spill] sm:$0xff] }
 0x196   :  { %6894 = vst [vmem:[#allocation202_spill] sm:$0xff] %v4932_v17  ;;  %v1063_v22 = vmul.f32 0.5, %v935_v57 }
 0x197   :  { %v1066_v32 = vmul.f32 0.5, %v938_v24 }
 0x19a   :  { %1294 = vperm.xlu1 %3606, %v1060_v19   ;;  %1299 = vperm.xlu2 %3604, %v1061_v18   ;;  %v6903_v18 = vld [vmem:[#allocation4_spill] sm:$0xff] }
 0x19b   :  { %1304 = vperm.xlu0 %3605, %v1062_v23   ;;  %v6904_v19 = vld [vmem:[#allocation60_spill] sm:$0xff] }
 0x19c   :  { %v4938_v31 = vpop.permute.xlu2 %511  ;;  %v4940_v53 = vpop.permute.xlu1 %491  ;;  %v939_v23 = vadd.f32 %v6904_v19, %v6903_v18  ;;  %v6913_v18 = vld [vmem:[#allocation8_spill] sm:$0xff] }
 0x19d   :  { %6899 = vst [vmem:[#allocation2_spill] sm:$0xff] %v4938_v31  ;;  %v4944_v34 = vpop.permute.xlu0 %489  ;;  %v941_v19 = vadd.f32 %v6914_v15, %v6913_v18  ;;  %v6923_v18 = vld [vmem:[#allocation91_spill] sm:$0xff] }
 0x19e   :  { %6902 = vst [vmem:[#allocation3_spill] sm:$0xff] %v4944_v34  ;;  %v1067_v57 = vmul.f32 0.5, %v939_v23  ;;  %v1071_v23 = vmul.f32 0.5, %v943_v58 }
 0x19f   :  { %v1069_v29 = vmul.f32 0.5, %v941_v19 }
 0x1a2   :  { %1309 = vperm.xlu1 %3606, %v1063_v22   ;;  %1314 = vperm.xlu2 %3604, %v1064_v21   ;;  %v6911_v21 = vld [vmem:[#allocation7_spill] sm:$0xff]  ;;  %v6912_v22 = vld [vmem:[#allocation66_spill] sm:$0xff] }
 0x1a3   :  { %1319 = vperm.xlu0 %3605, %v1065_v26   ;;  %v942_v26 = vadd.f32 %v6912_v22, %v6911_v21  ;;  %v6922_v21 = vld [vmem:[#allocation11_spill] sm:$0xff] }
 0x1a4   :  { %v4950_v25 = vpop.permute.xlu2 %517  ;;  %v4952_v33 = vpop.permute.xlu1 %497  ;;  %v944_v22 = vadd.f32 %v6923_v18, %v6922_v21  ;;  %v6932_v21 = vld [vmem:[#allocation97_spill] sm:$0xff] }
 0x1a5   :  { %6907 = vst [vmem:[#allocation6_spill] sm:$0xff] %v4950_v25  ;;  %v4956_v38 = vpop.permute.xlu0 %495  ;;  %v1070_v24 = vmul.f32 0.5, %v942_v26  ;;  %v1074_v26 = vmul.f32 0.5, %v946_v59 }
 0x1a6   :  { %6910 = vst [vmem:[#allocation4_spill] sm:$0xff] %v4956_v38  ;;  %v1072_v58 = vmul.f32 0.5, %v944_v22 }
 0x1aa   :  { %1324 = vperm.xlu1 %3606, %v1066_v32   ;;  %1329 = vperm.xlu2 %3604, %v1067_v57   ;;  %v6920_v57 = vld [vmem:[#allocation10_spill] sm:$0xff]  ;;  %v6921_v32 = vld [vmem:[#allocation72_spill] sm:$0xff] }
 0x1ab   :  { %1334 = vperm.xlu0 %3605, %v1068_v16   ;;  %v945_v16 = vadd.f32 %v6921_v32, %v6920_v57  ;;  %v6931_v57 = vld [vmem:[#allocation14_spill] sm:$0xff] }
 0x1ac   :  { %v4962_v20 = vpop.permute.xlu1 %503  ;;  %v4964_v37 = vpop.permute.xlu2 %1169  ;;  %v947_v32 = vadd.f32 %v6932_v21, %v6931_v57  ;;  %v6941_v57 = vld [vmem:[#allocation103_spill] sm:$0xff] }
 0x1ad   :  { %6915 = vst [vmem:[#allocation5_spill] sm:$0xff] %v4962_v20  ;;  %v4968_v42 = vpop.permute.xlu0 %501  ;;  %v1073_v19 = vmul.f32 0.5, %v945_v16  ;;  %v1077_v16 = vmul.f32 0.5, %v949_v60 }
 0x1ae   :  { %6916 = vst [vmem:[#allocation9_spill] sm:$0xff] %v4964_v37  ;;  %v1075_v59 = vmul.f32 0.5, %v947_v32 }
 0x1af   :  { %6919 = vst [vmem:[#allocation7_spill] sm:$0xff] %v4968_v42 }
 0x1b2   :  { %1339 = vperm.xlu1 %3606, %v1069_v29   ;;  %1344 = vperm.xlu2 %3604, %v1070_v24   ;;  %v6929_v24 = vld [vmem:[#allocation13_spill] sm:$0xff]  ;;  %v6930_v29 = vld [vmem:[#allocation78_spill] sm:$0xff] }
 0x1b3   :  { %1349 = vperm.xlu0 %3605, %v1071_v23   ;;  %v948_v23 = vadd.f32 %v6930_v29, %v6929_v24  ;;  %v6940_v24 = vld [vmem:[#allocation18_spill] sm:$0xff] }
 0x1b4   :  { %v4974_v15 = vpop.permute.xlu1 %509  ;;  %v4976_v37 = vpop.permute.xlu2 %1184  ;;  %v950_v29 = vadd.f32 %v6941_v57, %v6940_v24  ;;  %v6950_v24 = vld [vmem:[#allocation109_spill] sm:$0xff] }
 0x1b5   :  { %6924 = vst [vmem:[#allocation8_spill] sm:$0xff] %v4974_v15  ;;  %v4980_v54 = vpop.permute.xlu0 %507  ;;  %v1076_v22 = vmul.f32 0.5, %v948_v23  ;;  %v1080_v23 = vmul.f32 0.5, %v952_v41 }
 0x1b6   :  { %6925 = vst [vmem:[#allocation12_spill] sm:$0xff] %v4976_v37  ;;  %v1078_v60 = vmul.f32 0.5, %v950_v29 }
 0x1b7   :  { %6928 = vst [vmem:[#allocation10_spill] sm:$0xff] %v4980_v54 }
 0x1ba   :  { %1354 = vperm.xlu1 %3606, %v1072_v58   ;;  %1359 = vperm.xlu2 %3604, %v1073_v19   ;;  %v6938_v19 = vld [vmem:[#allocation17_spill] sm:$0xff]  ;;  %v6939_v58 = vld [vmem:[#allocation84_spill] sm:$0xff] }
 0x1bb   :  { %1364 = vperm.xlu0 %3605, %v1074_v26   ;;  %v951_v26 = vadd.f32 %v6939_v58, %v6938_v19  ;;  %v6949_v19 = vld [vmem:[#allocation24_spill] sm:$0xff] }
 0x1bc   :  { %v4986_v18 = vpop.permute.xlu1 %515  ;;  %v4988_v37 = vpop.permute.xlu2 %1194  ;;  %v953_v58 = vadd.f32 %v6950_v24, %v6949_v19  ;;  %v6959_v19 = vld [vmem:[#allocation115_spill] sm:$0xff] }
 0x1bd   :  { %6933 = vst [vmem:[#allocation11_spill] sm:$0xff] %v4986_v18  ;;  %v4992_v45 = vpop.permute.xlu0 %513  ;;  %v1079_v32 = vmul.f32 0.5, %v951_v26  ;;  %v1083_v26 = vmul.f32 0.5, %v955_v46  ;;  %v6962_v24 = vld [vmem:[#allocation35_spill] sm:$0xff] }
 0x1be   :  { %6934 = vst [vmem:[#allocation15_spill] sm:$0xff] %v4988_v37  ;;  %v1081_v41 = vmul.f32 0.5, %v953_v58  ;;  %v958_v48 = vadd.f32 %v6963_v51, %v6962_v24  ;;  %v6972_v24 = vld [vmem:[#allocation128_spill] sm:$0xff] }
 0x1bf   :  { %6937 = vst [vmem:[#allocation13_spill] sm:$0xff] %v4992_v45 }
 0x1c2   :  { %1369 = vperm.xlu1 %3606, %v1075_v59   ;;  %1374 = vperm.xlu2 %3604, %v1076_v22   ;;  %v6947_v22 = vld [vmem:[#allocation23_spill] sm:$0xff]  ;;  %v6948_v59 = vld [vmem:[#allocation90_spill] sm:$0xff] }
 0x1c3   :  { %1379 = vperm.xlu0 %3605, %v1077_v16   ;;  %v954_v16 = vadd.f32 %v6948_v59, %v6947_v22  ;;  %v6958_v22 = vld [vmem:[#allocation30_spill] sm:$0xff] }
 0x1c4   :  { %v4998_v21 = vpop.permute.xlu1 %521  ;;  %v5000_v37 = vpop.permute.xlu2 %1209  ;;  %v956_v59 = vadd.f32 %v6959_v19, %v6958_v22  ;;  %v6968_v22 = vld [vmem:[#allocation121_spill] sm:$0xff] }
 0x1c5   :  { %6942 = vst [vmem:[#allocation14_spill] sm:$0xff] %v4998_v21  ;;  %v5004_v52 = vpop.permute.xlu0 %519  ;;  %v1082_v29 = vmul.f32 0.5, %v954_v16  ;;  %v1086_v16 = vmul.f32 0.5, %v958_v48  ;;  %v6971_v19 = vld [vmem:[#allocation41_spill] sm:$0xff] }
 0x1c6   :  { %6943 = vst [vmem:[#allocation19_spill] sm:$0xff] %v5000_v37  ;;  %v1084_v46 = vmul.f32 0.5, %v956_v59  ;;  %v961_v51 = vadd.f32 %v6972_v24, %v6971_v19  ;;  %v6981_v19 = vld [vmem:[#allocation134_spill] sm:$0xff] }
 0x1c7   :  { %6946 = vst [vmem:[#allocation17_spill] sm:$0xff] %v5004_v52 }
 0x1ca   :  { %1384 = vperm.xlu1 %3606, %v1078_v60   ;;  %1389 = vperm.xlu2 %3604, %v1079_v32   ;;  %v6956_v32 = vld [vmem:[#allocation29_spill] sm:$0xff]  ;;  %v6957_v60 = vld [vmem:[#allocation96_spill] sm:$0xff] }
 0x1cb   :  { %1394 = vperm.xlu0 %3605, %v1080_v23   ;;  %v957_v23 = vadd.f32 %v6957_v60, %v6956_v32  ;;  %v6967_v32 = vld [vmem:[#allocation34_spill] sm:$0xff] }
 0x1cc   :  { %v5010_v57 = vpop.permute.xlu1 %1179  ;;  %v5012_v37 = vpop.permute.xlu2 %1224  ;;  %v959_v60 = vadd.f32 %v6968_v22, %v6967_v32  ;;  %v6977_v32 = vld [vmem:[#allocation127_spill] sm:$0xff] }
 0x1cd   :  { %6951 = vst [vmem:[#allocation18_spill] sm:$0xff] %v5010_v57  ;;  %v5016_v44 = vpop.permute.xlu0 %1174  ;;  %v1085_v58 = vmul.f32 0.5, %v957_v23  ;;  %v1089_v23 = vmul.f32 0.5, %v961_v51 }
 0x1ce   :  { %6952 = vst [vmem:[#allocation25_spill] sm:$0xff] %v5012_v37  ;;  %v1087_v48 = vmul.f32 0.5, %v959_v60 }
 0x1cf   :  { %6955 = vst [vmem:[#allocation23_spill] sm:$0xff] %v5016_v44 }
 0x1d2   :  { %1399 = vperm.xlu1 %3606, %v1081_v41   ;;  %1404 = vperm.xlu2 %3604, %v1082_v29   ;;  %v6965_v29 = vld [vmem:[#allocation33_spill] sm:$0xff]  ;;  %v6966_v41 = vld [vmem:[#allocation102_spill] sm:$0xff] }
 0x1d3   :  { %1409 = vperm.xlu0 %3605, %v1083_v26   ;;  %v960_v26 = vadd.f32 %v6966_v41, %v6965_v29  ;;  %v6976_v29 = vld [vmem:[#allocation40_spill] sm:$0xff] }
 0x1d4   :  { %v5022_v57 = vpop.permute.xlu1 %1189  ;;  %v5024_v37 = vpop.permute.xlu2 %1239  ;;  %v962_v41 = vadd.f32 %v6977_v32, %v6976_v29  ;;  %v6986_v29 = vld [vmem:[#allocation133_spill] sm:$0xff] }
 0x1d5   :  { %6960 = vst [vmem:[#allocation24_spill] sm:$0xff] %v5022_v57  ;;  %v5028_v44 = vpop.permute.xlu0 %1199  ;;  %v1088_v59 = vmul.f32 0.5, %v960_v26  ;;  %v6989_v32 = vld [vmem:[#allocation53_spill] sm:$0xff] }
 0x1d6   :  { %6961 = vst [vmem:[#allocation31_spill] sm:$0xff] %v5024_v37  ;;  %v1090_v51 = vmul.f32 0.5, %v962_v41 }
 0x1d7   :  { %6964 = vst [vmem:[#allocation29_spill] sm:$0xff] %v5028_v44 }
 0x1da   :  { %1414 = vperm.xlu1 %3606, %v1084_v46   ;;  %1419 = vperm.xlu2 %3604, %v1085_v58   ;;  %v6974_v58 = vld [vmem:[#allocation39_spill] sm:$0xff]  ;;  %v6975_v46 = vld [vmem:[#allocation108_spill] sm:$0xff] }
 0x1db   :  { %1424 = vperm.xlu0 %3605, %v1086_v16   ;;  %v963_v16 = vadd.f32 %v6975_v46, %v6974_v58  ;;  %v6985_v58 = vld [vmem:[#allocation46_spill] sm:$0xff] }
 0x1dc   :  { %v5034_v57 = vpop.permute.xlu1 %1204  ;;  %v5036_v37 = vpop.permute.xlu2 %1254  ;;  %v965_v46 = vadd.f32 %v6986_v29, %v6985_v58  ;;  %v6995_v58 = vld [vmem:[#allocation139_spill] sm:$0xff] }
 0x1dd   :  { %6969 = vst [vmem:[#allocation30_spill] sm:$0xff] %v5034_v57  ;;  %v5040_v44 = vpop.permute.xlu0 %1214  ;;  %v6980_v57 = vld [vmem:[#allocation47_spill] sm:$0xff]  ;;  %v1091_v60 = vmul.f32 0.5, %v963_v16 }
 0x1de   :  { %6970 = vst [vmem:[#allocation35_spill] sm:$0xff] %v5036_v37  ;;  %v964_v24 = vadd.f32 %v6981_v19, %v6980_v57  ;;  %v6990_v57 = vld [vmem:[#allocation140_spill] sm:$0xff] }
 0x1df   :  { %6973 = vst [vmem:[#allocation33_spill] sm:$0xff] %v5040_v44  ;;  %v967_v19 = vadd.f32 %v6990_v57, %v6989_v32  ;;  %v6999_v32 = vld [vmem:[#allocation146_spill] sm:$0xff] }
 0x1e0   :  { %v1092_v26 = vmul.f32 0.5, %v964_v24  ;;  %v1093_v24 = vmul.f32 0.5, %v965_v46 }
 0x1e1   :  { %v1095_v16 = vmul.f32 0.5, %v967_v19 }
 0x1e2   :  { %1429 = vperm.xlu1 %3606, %v1087_v48   ;;  %1434 = vperm.xlu2 %3604, %v1088_v59   ;;  %v6983_v59 = vld [vmem:[#allocation45_spill] sm:$0xff]  ;;  %v6984_v48 = vld [vmem:[#allocation114_spill] sm:$0xff] }
 0x1e3   :  { %1439 = vperm.xlu0 %3605, %v1089_v23   ;;  %v966_v23 = vadd.f32 %v6984_v48, %v6983_v59  ;;  %v6994_v59 = vld [vmem:[#allocation52_spill] sm:$0xff] }
 0x1e4   :  { %v5046_v22 = vpop.permute.xlu1 %1219  ;;  %v5048_v37 = vpop.permute.xlu2 %1269  ;;  %v968_v48 = vadd.f32 %v6995_v58, %v6994_v59  ;;  %v7004_v59 = vld [vmem:[#allocation145_spill] sm:$0xff] }
 0x1e5   :  { %6978 = vst [vmem:[#allocation34_spill] sm:$0xff] %v5046_v22  ;;  %v5052_v44 = vpop.permute.xlu0 %1229  ;;  %v1094_v41 = vmul.f32 0.5, %v966_v23  ;;  %v7007_v58 = vld [vmem:[#allocation65_spill] sm:$0xff] }
 0x1e6   :  { %6979 = vst [vmem:[#allocation41_spill] sm:$0xff] %v5048_v37  ;;  %v1096_v19 = vmul.f32 0.5, %v968_v48 }
 0x1e7   :  { %6982 = vst [vmem:[#allocation39_spill] sm:$0xff] %v5052_v44 }
 0x1ea   :  { %1444 = vperm.xlu1 %3606, %v1090_v51   ;;  %1449 = vperm.xlu2 %3604, %v1091_v60   ;;  %v6992_v60 = vld [vmem:[#allocation51_spill] sm:$0xff]  ;;  %v6993_v51 = vld [vmem:[#allocation120_spill] sm:$0xff] }
 0x1eb   :  { %1454 = vperm.xlu0 %3605, %v1092_v26   ;;  %v969_v26 = vadd.f32 %v6993_v51, %v6992_v60  ;;  %v7003_v60 = vld [vmem:[#allocation58_spill] sm:$0xff] }
 0x1ec   :  { %v5058_v22 = vpop.permute.xlu1 %1234  ;;  %v5060_v37 = vpop.permute.xlu2 %1284  ;;  %v971_v51 = vadd.f32 %v7004_v59, %v7003_v60  ;;  %v7013_v60 = vld [vmem:[#allocation151_spill] sm:$0xff] }
 0x1ed   :  { %6987 = vst [vmem:[#allocation40_spill] sm:$0xff] %v5058_v22  ;;  %v5064_v44 = vpop.permute.xlu0 %1244  ;;  %v6998_v22 = vld [vmem:[#allocation59_spill] sm:$0xff]  ;;  %v1097_v46 = vmul.f32 0.5, %v969_v26 }
 0x1ee   :  { %6988 = vst [vmem:[#allocation47_spill] sm:$0xff] %v5060_v37  ;;  %v970_v57 = vadd.f32 %v6999_v32, %v6998_v22  ;;  %v7008_v22 = vld [vmem:[#allocation152_spill] sm:$0xff] }
 0x1ef   :  { %6991 = vst [vmem:[#allocation45_spill] sm:$0xff] %v5064_v44  ;;  %v973_v32 = vadd.f32 %v7008_v22, %v7007_v58  ;;  %v7017_v58 = vld [vmem:[#allocation158_spill] sm:$0xff] }
 0x1f0   :  { %v1098_v23 = vmul.f32 0.5, %v970_v57  ;;  %v1099_v57 = vmul.f32 0.5, %v971_v51 }
 0x1f1   :  { %v1101_v26 = vmul.f32 0.5, %v973_v32 }
 0x1f2   :  { %1459 = vperm.xlu1 %3606, %v1093_v24   ;;  %1464 = vperm.xlu2 %3604, %v1094_v41   ;;  %v7001_v41 = vld [vmem:[#allocation57_spill] sm:$0xff]  ;;  %v7002_v24 = vld [vmem:[#allocation126_spill] sm:$0xff] }
 0x1f3   :  { %1469 = vperm.xlu0 %3605, %v1095_v16   ;;  %v972_v16 = vadd.f32 %v7002_v24, %v7001_v41  ;;  %v7012_v41 = vld [vmem:[#allocation64_spill] sm:$0xff] }
 0x1f4   :  { %v5070_v29 = vpop.permute.xlu1 %1249  ;;  %v5072_v37 = vpop.permute.xlu2 %1299  ;;  %v974_v24 = vadd.f32 %v7013_v60, %v7012_v41  ;;  %v7022_v41 = vld [vmem:[#allocation157_spill] sm:$0xff] }
 0x1f5   :  { %6996 = vst [vmem:[#allocation46_spill] sm:$0xff] %v5070_v29  ;;  %v5076_v44 = vpop.permute.xlu0 %1259  ;;  %v1100_v48 = vmul.f32 0.5, %v972_v16  ;;  %v7025_v60 = vld [vmem:[#allocation77_spill] sm:$0xff] }
 0x1f6   :  { %6997 = vst [vmem:[#allocation53_spill] sm:$0xff] %v5072_v37  ;;  %v1102_v32 = vmul.f32 0.5, %v974_v24 }
 0x1f7   :  { %7000 = vst [vmem:[#allocation51_spill] sm:$0xff] %v5076_v44 }
 0x1fa   :  { %1474 = vperm.xlu1 %3606, %v1096_v19   ;;  %1479 = vperm.xlu2 %3604, %v1097_v46   ;;  %v7010_v46 = vld [vmem:[#allocation63_spill] sm:$0xff]  ;;  %v7011_v19 = vld [vmem:[#allocation132_spill] sm:$0xff] }
 0x1fb   :  { %1484 = vperm.xlu0 %3605, %v1098_v23   ;;  %v975_v23 = vadd.f32 %v7011_v19, %v7010_v46  ;;  %v7021_v46 = vld [vmem:[#allocation70_spill] sm:$0xff] }
 0x1fc   :  { %v5082_v29 = vpop.permute.xlu1 %1264  ;;  %v5084_v37 = vpop.permute.xlu2 %1314  ;;  %v977_v19 = vadd.f32 %v7022_v41, %v7021_v46  ;;  %v7031_v46 = vld [vmem:[#allocation163_spill] sm:$0xff] }
 0x1fd   :  { %7005 = vst [vmem:[#allocation52_spill] sm:$0xff] %v5082_v29  ;;  %v5088_v44 = vpop.permute.xlu0 %1274  ;;  %v7016_v29 = vld [vmem:[#allocation71_spill] sm:$0xff]  ;;  %v1103_v51 = vmul.f32 0.5, %v975_v23 }
 0x1fe   :  { %7006 = vst [vmem:[#allocation59_spill] sm:$0xff] %v5084_v37  ;;  %v976_v22 = vadd.f32 %v7017_v58, %v7016_v29  ;;  %v7026_v29 = vld [vmem:[#allocation164_spill] sm:$0xff] }
 0x1ff   :  { %7009 = vst [vmem:[#allocation57_spill] sm:$0xff] %v5088_v44  ;;  %v979_v58 = vadd.f32 %v7026_v29, %v7025_v60  ;;  %v7035_v60 = vld [vmem:[#allocation170_spill] sm:$0xff] }
 0x200   :  { %v1104_v16 = vmul.f32 0.5, %v976_v22  ;;  %v1105_v22 = vmul.f32 0.5, %v977_v19 }
 0x201   :  { %v1107_v23 = vmul.f32 0.5, %v979_v58 }
 0x202   :  { %1489 = vperm.xlu1 %3606, %v1099_v57   ;;  %1494 = vperm.xlu2 %3604, %v1100_v48   ;;  %v7019_v48 = vld [vmem:[#allocation69_spill] sm:$0xff]  ;;  %v7020_v57 = vld [vmem:[#allocation138_spill] sm:$0xff] }
 0x203   :  { %1499 = vperm.xlu0 %3605, %v1101_v26   ;;  %v978_v26 = vadd.f32 %v7020_v57, %v7019_v48  ;;  %v7030_v48 = vld [vmem:[#allocation76_spill] sm:$0xff] }
 0x204   :  { %v5094_v59 = vpop.permute.xlu1 %1279  ;;  %v5096_v37 = vpop.permute.xlu2 %1329  ;;  %v980_v57 = vadd.f32 %v7031_v46, %v7030_v48  ;;  %v7040_v48 = vld [vmem:[#allocation169_spill] sm:$0xff] }
 0x205   :  { %7014 = vst [vmem:[#allocation58_spill] sm:$0xff] %v5094_v59  ;;  %v5100_v44 = vpop.permute.xlu0 %1289  ;;  %v1106_v24 = vmul.f32 0.5, %v978_v26  ;;  %v7043_v46 = vld [vmem:[#allocation89_spill] sm:$0xff] }
 0x206   :  { %7015 = vst [vmem:[#allocation65_spill] sm:$0xff] %v5096_v37  ;;  %v1108_v58 = vmul.f32 0.5, %v980_v57 }
 0x207   :  { %7018 = vst [vmem:[#allocation63_spill] sm:$0xff] %v5100_v44 }
 0x20a   :  { %1504 = vperm.xlu1 %3606, %v1102_v32   ;;  %1509 = vperm.xlu2 %3604, %v1103_v51   ;;  %v7028_v51 = vld [vmem:[#allocation75_spill] sm:$0xff]  ;;  %v7029_v32 = vld [vmem:[#allocation144_spill] sm:$0xff] }
 0x20b   :  { %1514 = vperm.xlu0 %3605, %v1104_v16   ;;  %v981_v16 = vadd.f32 %v7029_v32, %v7028_v51  ;;  %v7039_v51 = vld [vmem:[#allocation82_spill] sm:$0xff] }
 0x20c   :  { %v5106_v59 = vpop.permute.xlu1 %1294  ;;  %v5108_v37 = vpop.permute.xlu2 %1344  ;;  %v983_v32 = vadd.f32 %v7040_v48, %v7039_v51  ;;  %v7049_v51 = vld [vmem:[#allocation175_spill] sm:$0xff] }
 0x20d   :  { %7023 = vst [vmem:[#allocation64_spill] sm:$0xff] %v5106_v59  ;;  %v5112_v44 = vpop.permute.xlu0 %1304  ;;  %v7034_v59 = vld [vmem:[#allocation83_spill] sm:$0xff]  ;;  %v1109_v19 = vmul.f32 0.5, %v981_v16 }
 0x20e   :  { %7024 = vst [vmem:[#allocation71_spill] sm:$0xff] %v5108_v37  ;;  %v982_v29 = vadd.f32 %v7035_v60, %v7034_v59  ;;  %v7044_v59 = vld [vmem:[#allocation176_spill] sm:$0xff] }
 0x20f   :  { %7027 = vst [vmem:[#allocation69_spill] sm:$0xff] %v5112_v44  ;;  %v985_v60 = vadd.f32 %v7044_v59, %v7043_v46  ;;  %v7053_v46 = vld [vmem:[#allocation182_spill] sm:$0xff] }
 0x210   :  { %v1110_v26 = vmul.f32 0.5, %v982_v29  ;;  %v1111_v29 = vmul.f32 0.5, %v983_v32 }
 0x211   :  { %v1113_v16 = vmul.f32 0.5, %v985_v60 }
 0x212   :  { %1519 = vperm.xlu1 %3606, %v1105_v22   ;;  %1524 = vperm.xlu2 %3604, %v1106_v24   ;;  %v7037_v24 = vld [vmem:[#allocation81_spill] sm:$0xff]  ;;  %v7038_v22 = vld [vmem:[#allocation150_spill] sm:$0xff] }
 0x213   :  { %1529 = vperm.xlu0 %3605, %v1107_v23   ;;  %v984_v23 = vadd.f32 %v7038_v22, %v7037_v24  ;;  %v7048_v24 = vld [vmem:[#allocation88_spill] sm:$0xff] }
 0x214   :  { %v5118_v41 = vpop.permute.xlu1 %1309  ;;  %v5120_v37 = vpop.permute.xlu2 %1359  ;;  %v986_v22 = vadd.f32 %v7049_v51, %v7048_v24  ;;  %v7057_v24 = vld [vmem:[#allocation181_spill] sm:$0xff] }
 0x215   :  { %7032 = vst [vmem:[#allocation70_spill] sm:$0xff] %v5118_v41  ;;  %v5124_v44 = vpop.permute.xlu0 %1319  ;;  %v1112_v57 = vmul.f32 0.5, %v984_v23  ;;  %v7059_v51 = vld [vmem:[#allocation101_spill] sm:$0xff] }
 0x216   :  { %7033 = vst [vmem:[#allocation77_spill] sm:$0xff] %v5120_v37  ;;  %v1114_v60 = vmul.f32 0.5, %v986_v22 }
 0x217   :  { %7036 = vst [vmem:[#allocation75_spill] sm:$0xff] %v5124_v44 }
 0x21a   :  { %1534 = vperm.xlu1 %3606, %v1108_v58   ;;  %1539 = vperm.xlu2 %3604, %v1109_v19   ;;  %v7046_v19 = vld [vmem:[#allocation87_spill] sm:$0xff]  ;;  %v7047_v58 = vld [vmem:[#allocation156_spill] sm:$0xff] }
 0x21b   :  { %1544 = vperm.xlu0 %3605, %v1110_v26   ;;  %v987_v26 = vadd.f32 %v7047_v58, %v7046_v19  ;;  %v7056_v19 = vld [vmem:[#allocation94_spill] sm:$0xff] }
 0x21c   :  { %v5130_v41 = vpop.permute.xlu1 %1324  ;;  %v5132_v37 = vpop.permute.xlu2 %1374  ;;  %v989_v58 = vadd.f32 %v7057_v24, %v7056_v19  ;;  %v7065_v24 = vld [vmem:[#allocation107_spill] sm:$0xff] }
 0x21d   :  { %7041 = vst [vmem:[#allocation76_spill] sm:$0xff] %v5130_v41  ;;  %v5136_v44 = vpop.permute.xlu0 %1334  ;;  %v7052_v41 = vld [vmem:[#allocation95_spill] sm:$0xff]  ;;  %v1115_v32 = vmul.f32 0.5, %v987_v26 }
 0x21e   :  { %7042 = vst [vmem:[#allocation83_spill] sm:$0xff] %v5132_v37  ;;  %v988_v59 = vadd.f32 %v7053_v46, %v7052_v41  ;;  %v991_v41 = vadd.f32 %v4836_v39, %v7059_v51  ;;  %v994_v51 = vadd.f32 %v4848_v56, %v7065_v24 }
 0x21f   :  { %7045 = vst [vmem:[#allocation81_spill] sm:$0xff] %v5136_v44 }
 0x220   :  { %v1116_v23 = vmul.f32 0.5, %v988_v59  ;;  %v1117_v59 = vmul.f32 0.5, %v989_v58  ;;  %v1119_v26 = vmul.f32 0.5, %v991_v41  ;;  %v1122_v41 = vmul.f32 0.5, %v994_v51 }
 0x222   :  { %1549 = vperm.xlu1 %3606, %v1111_v29   ;;  %1554 = vperm.xlu2 %3604, %v1112_v57   ;;  %v7054_v57 = vld [vmem:[#allocation93_spill] sm:$0xff]  ;;  %v7055_v29 = vld [vmem:[#allocation162_spill] sm:$0xff] }
 0x223   :  { %1559 = vperm.xlu0 %3605, %v1113_v16   ;;  %v990_v16 = vadd.f32 %v7055_v29, %v7054_v57  ;;  %v7062_v57 = vld [vmem:[#allocation100_spill] sm:$0xff] }
 0x224   :  { %v5142_v48 = vpop.permute.xlu1 %1339  ;;  %v5144_v37 = vpop.permute.xlu2 %1389  ;;  %v992_v19 = vadd.f32 %v4832_v30, %v7062_v57 }
 0x225   :  { %7050 = vst [vmem:[#allocation82_spill] sm:$0xff] %v5142_v48  ;;  %v5148_v44 = vpop.permute.xlu0 %1349  ;;  %v1118_v22 = vmul.f32 0.5, %v990_v16 }
 0x226   :  { %7051 = vst [vmem:[#allocation89_spill] sm:$0xff] %v5144_v37  ;;  %v1120_v16 = vmul.f32 0.5, %v992_v19 }
 0x22a   :  { %1564 = vperm.xlu1 %3606, %v1114_v60   ;;  %1569 = vperm.xlu2 %3604, %v1115_v32   ;;  %v7060_v32 = vld [vmem:[#allocation99_spill] sm:$0xff]  ;;  %v7061_v60 = vld [vmem:[#allocation168_spill] sm:$0xff] }
 0x22b   :  { %1574 = vperm.xlu0 %3605, %v1116_v23   ;;  %v993_v23 = vadd.f32 %v7061_v60, %v7060_v32  ;;  %v7068_v32 = vld [vmem:[#allocation106_spill] sm:$0xff] }
 0x22c   :  { %v5154_v48 = vpop.permute.xlu1 %1354  ;;  %v5156_v37 = vpop.permute.xlu2 %1404  ;;  %v995_v57 = vadd.f32 %v4844_v49, %v7068_v32  ;;  %v7075_v49 = vld [vmem:[#allocation119_spill] sm:$0xff] }
 0x22d   :  { %7058 = vst [vmem:[#allocation87_spill] sm:$0xff] %v5156_v37  ;;  %v5160_v46 = vpop.permute.xlu0 %1364  ;;  %v1121_v58 = vmul.f32 0.5, %v993_v23 }
 0x22e   :  { %v1123_v19 = vmul.f32 0.5, %v995_v57 }
 0x232   :  { %1579 = vperm.xlu1 %3606, %v1117_v59   ;;  %1584 = vperm.xlu2 %3604, %v1118_v22   ;;  %v7066_v22 = vld [vmem:[#allocation105_spill] sm:$0xff]  ;;  %v7067_v59 = vld [vmem:[#allocation174_spill] sm:$0xff] }
 0x233   :  { %1589 = vperm.xlu0 %3605, %v1119_v26   ;;  %v996_v26 = vadd.f32 %v7067_v59, %v7066_v22  ;;  %v7073_v22 = vld [vmem:[#allocation112_spill] sm:$0xff] }
 0x234   :  { %v5166_v29 = vpop.permute.xlu1 %1369  ;;  %v5168_v37 = vpop.permute.xlu2 %1419  ;;  %v998_v32 = vadd.f32 %v4856_v28, %v7073_v22 }
 0x235   :  { %7063 = vst [vmem:[#allocation88_spill] sm:$0xff] %v5166_v29  ;;  %v5172_v39 = vpop.permute.xlu0 %1379  ;;  %v7070_v29 = vld [vmem:[#allocation113_spill] sm:$0xff]  ;;  %v1124_v23 = vmul.f32 0.5, %v996_v26 }
 0x236   :  { %7064 = vst [vmem:[#allocation95_spill] sm:$0xff] %v5168_v37  ;;  %v997_v24 = vadd.f32 %v4860_v43, %v7070_v29  ;;  %v1000_v29 = vadd.f32 %v4872_v63, %v7075_v49  ;;  %v1126_v57 = vmul.f32 0.5, %v998_v32 }
 0x238   :  { %v1125_v51 = vmul.f32 0.5, %v997_v24  ;;  %v1128_v24 = vmul.f32 0.5, %v1000_v29 }
 0x23a   :  { %1594 = vperm.xlu1 %3606, %v1120_v16   ;;  %1599 = vperm.xlu2 %3604, %v1121_v58   ;;  %v7071_v58 = vld [vmem:[#allocation111_spill] sm:$0xff]  ;;  %v7072_v16 = vld [vmem:[#allocation180_spill] sm:$0xff] }
 0x23b   :  { %1604 = vperm.xlu0 %3605, %v1122_v41   ;;  %v999_v41 = vadd.f32 %v7072_v16, %v7071_v58  ;;  %v7079_v16 = vld [vmem:[#allocation125_spill] sm:$0xff] }
 0x23c   :  { %v5178_v60 = vpop.permute.xlu1 %1384  ;;  %v5180_v37 = vpop.permute.xlu2 %1434  ;;  %v1003_v49 = vadd.f32 %v4884_v5, %v7079_v16 }
 0x23d   :  { %7069 = vst [vmem:[#allocation93_spill] sm:$0xff] %v5180_v37  ;;  %v5184_v56 = vpop.permute.xlu0 %1394  ;;  %v1127_v26 = vmul.f32 0.5, %v999_v41 }
 0x23e   :  { %v1131_v29 = vmul.f32 0.5, %v1003_v49 }
 0x242   :  { %1609 = vperm.xlu1 %3606, %v1123_v19   ;;  %1614 = vperm.xlu2 %3604, %v1124_v23   ;;  %v7076_v23 = vld [vmem:[#allocation117_spill] sm:$0xff] }
 0x243   :  { %1619 = vperm.xlu0 %3605, %v1125_v51   ;;  %v1002_v19 = vadd.f32 %v4830_v27, %v7076_v23  ;;  %v7077_v51 = vld [vmem:[#allocation118_spill] sm:$0xff]  ;;  %v7083_v27 = vld [vmem:[#allocation131_spill] sm:$0xff] }
 0x244   :  { %v5190_v59 = vpop.permute.xlu1 %1399  ;;  %v5192_v37 = vpop.permute.xlu2 %1449  ;;  %v1001_v58 = vadd.f32 %v4868_v2, %v7077_v51  ;;  %v1006_v16 = vadd.f32 %v4896_v8, %v7083_v27 }
 0x245   :  { %7074 = vst [vmem:[#allocation94_spill] sm:$0xff] %v5192_v37  ;;  %v5196_v43 = vpop.permute.xlu0 %1409  ;;  %v1130_v41 = vmul.f32 0.5, %v1002_v19 }
 0x246   :  { %v1129_v32 = vmul.f32 0.5, %v1001_v58  ;;  %v1134_v49 = vmul.f32 0.5, %v1006_v16 }
 0x24a   :  { %1624 = vperm.xlu1 %3606, %v1126_v57   ;;  %1629 = vperm.xlu2 %3604, %v1127_v26   ;;  %v7080_v26 = vld [vmem:[#allocation123_spill] sm:$0xff] }
 0x24b   :  { %1634 = vperm.xlu0 %3605, %v1128_v24   ;;  %v1005_v57 = vadd.f32 %v4842_v55, %v7080_v26  ;;  %v7081_v24 = vld [vmem:[#allocation124_spill] sm:$0xff]  ;;  %v7087_v55 = vld [vmem:[#allocation137_spill] sm:$0xff] }
 0x24c   :  { %v5202_v22 = vpop.permute.xlu1 %1414  ;;  %v5204_v37 = vpop.permute.xlu2 %1464  ;;  %v1004_v23 = vadd.f32 %v4880_v4, %v7081_v24  ;;  %v1009_v27 = vadd.f32 %v4908_v11, %v7087_v55 }
 0x24d   :  { %7078 = vst [vmem:[#allocation101_spill] sm:$0xff] %v5204_v37  ;;  %v5208_v63 = vpop.permute.xlu0 %1424  ;;  %v1133_v19 = vmul.f32 0.5, %v1005_v57 }
 0x24e   :  { %v1132_v58 = vmul.f32 0.5, %v1004_v23  ;;  %v1137_v16 = vmul.f32 0.5, %v1009_v27 }
 0x252   :  { %1639 = vperm.xlu1 %3606, %v1129_v32   ;;  %1644 = vperm.xlu2 %3604, %v1130_v41   ;;  %v7084_v41 = vld [vmem:[#allocation129_spill] sm:$0xff] }
 0x253   :  { %1649 = vperm.xlu0 %3605, %v1131_v29   ;;  %v1008_v32 = vadd.f32 %v4854_v35, %v7084_v41  ;;  %v7085_v29 = vld [vmem:[#allocation130_spill] sm:$0xff]  ;;  %v7091_v35 = vld [vmem:[#allocation143_spill] sm:$0xff] }
 0x254   :  { %v5214_v51 = vpop.permute.xlu1 %1429  ;;  %v5216_v37 = vpop.permute.xlu2 %1479  ;;  %v1007_v26 = vadd.f32 %v4892_v3, %v7085_v29  ;;  %v1012_v55 = vadd.f32 %v4920_v14, %v7091_v35 }
 0x255   :  { %7082 = vst [vmem:[#allocation99_spill] sm:$0xff] %v5216_v37  ;;  %v5220_v5 = vpop.permute.xlu0 %1439  ;;  %v1136_v57 = vmul.f32 0.5, %v1008_v32 }
 0x256   :  { %v1135_v23 = vmul.f32 0.5, %v1007_v26  ;;  %v1140_v27 = vmul.f32 0.5, %v1012_v55 }
 0x25a   :  { %1654 = vperm.xlu1 %3606, %v1132_v58   ;;  %1659 = vperm.xlu2 %3604, %v1133_v19   ;;  %v7088_v19 = vld [vmem:[#allocation135_spill] sm:$0xff] }
 0x25b   :  { %1664 = vperm.xlu0 %3605, %v1134_v49   ;;  %v1011_v58 = vadd.f32 %v4866_v50, %v7088_v19  ;;  %v7089_v49 = vld [vmem:[#allocation136_spill] sm:$0xff]  ;;  %v7095_v50 = vld [vmem:[#allocation149_spill] sm:$0xff] }
 0x25c   :  { %v5226_v24 = vpop.permute.xlu1 %1444  ;;  %v5228_v37 = vpop.permute.xlu2 %1494  ;;  %v1010_v41 = vadd.f32 %v4904_v7, %v7089_v49  ;;  %v1015_v35 = vadd.f32 %v4932_v17, %v7095_v50 }
 0x25d   :  { %7086 = vst [vmem:[#allocation100_spill] sm:$0xff] %v5228_v37  ;;  %v5232_v8 = vpop.permute.xlu0 %1454  ;;  %v1139_v32 = vmul.f32 0.5, %v1011_v58 }
 0x25e   :  { %v1138_v26 = vmul.f32 0.5, %v1010_v41  ;;  %v1143_v55 = vmul.f32 0.5, %v1015_v35 }
 0x262   :  { %1669 = vperm.xlu1 %3606, %v1135_v23   ;;  %1674 = vperm.xlu2 %3604, %v1136_v57   ;;  %v7092_v57 = vld [vmem:[#allocation141_spill] sm:$0xff] }
 0x263   :  { %1679 = vperm.xlu0 %3605, %v1137_v16   ;;  %v1014_v23 = vadd.f32 %v4878_v1, %v7092_v57  ;;  %v7093_v16 = vld [vmem:[#allocation142_spill] sm:$0xff]  ;;  %v7099_v1 = vld [vmem:[#allocation155_spill] sm:$0xff] }
 0x264   :  { %v5238_v29 = vpop.permute.xlu1 %1459  ;;  %v5240_v37 = vpop.permute.xlu2 %1509  ;;  %v1013_v19 = vadd.f32 %v4916_v10, %v7093_v16  ;;  %v1018_v50 = vadd.f32 %v4944_v34, %v7099_v1 }
 0x265   :  { %7090 = vst [vmem:[#allocation107_spill] sm:$0xff] %v5240_v37  ;;  %v5244_v11 = vpop.permute.xlu0 %1469  ;;  %v1142_v58 = vmul.f32 0.5, %v1014_v23 }
 0x266   :  { %v1141_v41 = vmul.f32 0.5, %v1013_v19  ;;  %v1146_v35 = vmul.f32 0.5, %v1018_v50 }
 0x26a   :  { %1684 = vperm.xlu1 %3606, %v1138_v26   ;;  %1689 = vperm.xlu2 %3604, %v1139_v32   ;;  %v7096_v32 = vld [vmem:[#allocation147_spill] sm:$0xff] }
 0x26b   :  { %1694 = vperm.xlu0 %3605, %v1140_v27   ;;  %v1017_v26 = vadd.f32 %v4890_v0, %v7096_v32  ;;  %v7097_v27 = vld [vmem:[#allocation148_spill] sm:$0xff]  ;;  %v7103_v0 = vld [vmem:[#allocation161_spill] sm:$0xff] }
 0x26c   :  { %v5250_v49 = vpop.permute.xlu1 %1474  ;;  %v5252_v37 = vpop.permute.xlu2 %1524  ;;  %v1016_v57 = vadd.f32 %v4928_v13, %v7097_v27  ;;  %v1021_v1 = vadd.f32 %v4956_v38, %v7103_v0 }
 0x26d   :  { %7094 = vst [vmem:[#allocation105_spill] sm:$0xff] %v5252_v37  ;;  %v5256_v14 = vpop.permute.xlu0 %1484  ;;  %v1145_v23 = vmul.f32 0.5, %v1017_v26 }
 0x26e   :  { %v1144_v19 = vmul.f32 0.5, %v1016_v57  ;;  %v1149_v50 = vmul.f32 0.5, %v1021_v1 }
 0x272   :  { %1699 = vperm.xlu1 %3606, %v1141_v41   ;;  %1704 = vperm.xlu2 %3604, %v1142_v58   ;;  %v7100_v58 = vld [vmem:[#allocation153_spill] sm:$0xff] }
 0x273   :  { %1709 = vperm.xlu0 %3605, %v1143_v55   ;;  %v1020_v41 = vadd.f32 %v4902_v6, %v7100_v58  ;;  %v7101_v55 = vld [vmem:[#allocation154_spill] sm:$0xff]  ;;  %v7107_v6 = vld [vmem:[#allocation167_spill] sm:$0xff] }
 0x274   :  { %v5262_v16 = vpop.permute.xlu1 %1489  ;;  %v5264_v37 = vpop.permute.xlu2 %1539  ;;  %v1019_v32 = vadd.f32 %v4940_v53, %v7101_v55  ;;  %v1024_v0 = vadd.f32 %v4968_v42, %v7107_v6 }
 0x275   :  { %7098 = vst [vmem:[#allocation106_spill] sm:$0xff] %v5264_v37  ;;  %v5268_v17 = vpop.permute.xlu0 %1499  ;;  %v1148_v26 = vmul.f32 0.5, %v1020_v41 }
 0x276   :  { %v1147_v57 = vmul.f32 0.5, %v1019_v32  ;;  %v1152_v1 = vmul.f32 0.5, %v1024_v0 }
 0x27a   :  { %1714 = vperm.xlu1 %3606, %v1144_v19   ;;  %1719 = vperm.xlu2 %3604, %v1145_v23   ;;  %v7104_v23 = vld [vmem:[#allocation159_spill] sm:$0xff] }
 0x27b   :  { %1724 = vperm.xlu0 %3605, %v1146_v35   ;;  %v1023_v19 = vadd.f32 %v4914_v9, %v7104_v23  ;;  %v7105_v35 = vld [vmem:[#allocation160_spill] sm:$0xff]  ;;  %v7113_v9 = vld [vmem:[#allocation173_spill] sm:$0xff] }
 0x27c   :  { %v5274_v27 = vpop.permute.xlu1 %1504  ;;  %v5276_v37 = vpop.permute.xlu2 %1554  ;;  %v1022_v58 = vadd.f32 %v4952_v33, %v7105_v35  ;;  %v1027_v6 = vadd.f32 %v4980_v54, %v7113_v9 }
 0x27d   :  { %7102 = vst [vmem:[#allocation113_spill] sm:$0xff] %v5276_v37  ;;  %v5280_v34 = vpop.permute.xlu0 %1514  ;;  %v1151_v41 = vmul.f32 0.5, %v1023_v19 }
 0x27e   :  { %v1150_v32 = vmul.f32 0.5, %v1022_v58  ;;  %v1155_v0 = vmul.f32 0.5, %v1027_v6 }
 0x282   :  { %1729 = vperm.xlu1 %3606, %v1147_v57   ;;  %1734 = vperm.xlu2 %3604, %v1148_v26   ;;  %v7109_v26 = vld [vmem:[#allocation165_spill] sm:$0xff] }
 0x283   :  { %1739 = vperm.xlu0 %3605, %v1149_v50   ;;  %v1026_v57 = vadd.f32 %v4926_v12, %v7109_v26  ;;  %v7110_v50 = vld [vmem:[#allocation166_spill] sm:$0xff]  ;;  %v7119_v12 = vld [vmem:[#allocation179_spill] sm:$0xff] }
 0x284   :  { %v5286_v55 = vpop.permute.xlu1 %1519  ;;  %v5288_v37 = vpop.permute.xlu2 %1569  ;;  %v1025_v23 = vadd.f32 %v4962_v20, %v7110_v50  ;;  %v1030_v9 = vadd.f32 %v4992_v45, %v7119_v12  ;;  %v1033_v12 = vadd.f32 %v5004_v52, %v4820_v47 }
 0x285   :  { %7106 = vst [vmem:[#allocation111_spill] sm:$0xff] %v5288_v37  ;;  %v5292_v38 = vpop.permute.xlu0 %1529  ;;  %v1154_v19 = vmul.f32 0.5, %v1026_v57 }
 0x286   :  { %7108 = vst [vmem:[#allocation112_spill] sm:$0xff] %v5292_v38  ;;  %v1153_v58 = vmul.f32 0.5, %v1025_v23  ;;  %v1158_v6 = vmul.f32 0.5, %v1030_v9  ;;  %v1161_v9 = vmul.f32 0.5, %v1033_v12 }
 0x28a   :  { %1744 = vperm.xlu1 %3606, %v1150_v32   ;;  %1749 = vperm.xlu2 %3604, %v1151_v41   ;;  %v7115_v41 = vld [vmem:[#allocation171_spill] sm:$0xff] }
 0x28b   :  { %1754 = vperm.xlu0 %3605, %v1152_v1   ;;  %v1029_v32 = vadd.f32 %v4938_v31, %v7115_v41  ;;  %v7116_v1 = vld [vmem:[#allocation172_spill] sm:$0xff] }
 0x28c   :  { %v5298_v35 = vpop.permute.xlu1 %1534  ;;  %v5300_v37 = vpop.permute.xlu2 %1584  ;;  %v1028_v26 = vadd.f32 %v4974_v15, %v7116_v1 }
 0x28d   :  { %7111 = vst [vmem:[#allocation119_spill] sm:$0xff] %v5298_v35  ;;  %v5304_v42 = vpop.permute.xlu0 %1544  ;;  %v1157_v57 = vmul.f32 0.5, %v1029_v32 }
 0x28e   :  { %7112 = vst [vmem:[#allocation117_spill] sm:$0xff] %v5300_v37  ;;  %v1156_v23 = vmul.f32 0.5, %v1028_v26 }
 0x28f   :  { %7114 = vst [vmem:[#allocation118_spill] sm:$0xff] %v5304_v42 }
 0x292   :  { %1759 = vperm.xlu1 %3606, %v1153_v58   ;;  %1764 = vperm.xlu2 %3604, %v1154_v19   ;;  %v7121_v19 = vld [vmem:[#allocation177_spill] sm:$0xff] }
 0x293   :  { %1769 = vperm.xlu0 %3605, %v1155_v0   ;;  %v1032_v58 = vadd.f32 %v4950_v25, %v7121_v19  ;;  %v7122_v0 = vld [vmem:[#allocation178_spill] sm:$0xff]  ;;  %v7127_v19 = vld [vmem:[#allocation183_spill] sm:$0xff] }
 0x294   :  { %v5310_v50 = vpop.permute.xlu1 %1549  ;;  %v5312_v37 = vpop.permute.xlu2 %1599  ;;  %v1031_v41 = vadd.f32 %v4986_v18, %v7122_v0  ;;  %v1034_v0 = vadd.f32 %v4998_v21, %v7127_v19  ;;  %v3652_v21 = vld [vmem:[%s6478_s0 + $0x160] sm:$0xff] }
 0x295   :  { %7117 = vst [vmem:[#allocation125_spill] sm:$0xff] %v5310_v50  ;;  %v5316_v54 = vpop.permute.xlu0 %1559  ;;  %v1160_v32 = vmul.f32 0.5, %v1032_v58  ;;  %v3609_v58 = vld [vmem:[%s6478_s0 + $0x8] sm:$0xff]  ;;  %v7216_v18 = vld [vmem:[#allocation18_spill] sm:$0xff] }
 0x296   :  { %7118 = vst [vmem:[#allocation123_spill] sm:$0xff] %v5312_v37  ;;  %v1159_v26 = vmul.f32 0.5, %v1031_v41  ;;  %v7130_v41 = vld [vmem:[#allocation28_spill] sm:$0xff] }
 0x297   :  { %7120 = vst [vmem:[#allocation124_spill] sm:$0xff] %v5316_v54  ;;  %v652_v12 = vsub.f32 %v3609_v58, %v7130_v41 }
 0x299   :  { %v780_v52 = vmul.f32 0.5, %v652_v12 }
 0x29a   :  { %1774 = vperm.xlu1 %3606, %v1156_v23   ;;  %1779 = vperm.xlu2 %3604, %v1157_v57   ;;  %v3608_v57 = vld [vmem:[%s6478_s0] sm:$0xff] }
 0x29b   :  { %1784 = vperm.xlu0 %3605, %v1158_v6   ;;  %v7126_v23 = vld [vmem:[#allocation22_spill] sm:$0xff] }
 0x29c   :  { %v5322_v1 = vpop.permute.xlu1 %1564  ;;  %v5324_v37 = vpop.permute.xlu2 %1614  ;;  %v651_v6 = vsub.f32 %v3608_v57, %v7126_v23  ;;  %v3610_v57 = vld [vmem:[%s6478_s0 + $0x10] sm:$0xff]  ;;  %v7132_v23 = vld [vmem:[#allocation21_spill] sm:$0xff] }
 0x29d   :  { %7123 = vst [vmem:[#allocation131_spill] sm:$0xff] %v5322_v1  ;;  %v5328_v45 = vpop.permute.xlu0 %1574  ;;  %v653_v19 = vsub.f32 %v3610_v57, %v7132_v23  ;;  %v3614_v23 = vld [vmem:[%s6478_s0 + $0x30] sm:$0xff] }
 0x29e   :  { %7124 = vst [vmem:[#allocation129_spill] sm:$0xff] %v5324_v37 }
 0x29f   :  { %7125 = vst [vmem:[#allocation130_spill] sm:$0xff] %v5328_v45 }
 0x2a2   :  { %1789 = vperm.xlu1 %3606, %v1159_v26   ;;  %1794 = vperm.xlu2 %3604, %v1160_v32   ;;  %v779_v26 = vmul.f32 0.5, %v651_v6 }
 0x2a3   :  { %1799 = vperm.xlu0 %3605, %v1161_v9   ;;  %v1162_v9 = vmul.f32 0.5, %v1034_v0 }
 0x2a4   :  { %v5336_v37 = vpop.permute.xlu1 %1579  ;;  %v5338_v47 = vpop.permute.xlu2 %1629 }
 0x2a5   :  { %7128 = vst [vmem:[#allocation137_spill] sm:$0xff] %v5336_v37  ;;  %v5344_v32 = vpop.permute.xlu0 %1589  ;;  %v7133_v37 = vld [vmem:[#allocation27_spill] sm:$0xff] }
 0x2a6   :  { %7129 = vst [vmem:[#allocation135_spill] sm:$0xff] %v5338_v47  ;;  %v3611_v47 = vld [vmem:[%s6478_s0 + $0x18] sm:$0xff] }
 0x2a7   :  { %7131 = vst [vmem:[#allocation136_spill] sm:$0xff] %v5344_v32  ;;  %v654_v58 = vsub.f32 %v3611_v47, %v7133_v37  ;;  %v3613_v37 = vld [vmem:[%s6478_s0 + $0x28] sm:$0xff] }
 0x2a8   :  { %v656_v47 = vsub.f32 %v3613_v37, %v4029_v40  ;;  %v7140_v37 = vld [vmem:[#allocation16_spill] sm:$0xff]  ;;  %v7210_v32 = vld [vmem:[#allocation23_spill] sm:$0xff] }
 0x2aa   :  { %1804 = vperm.xlu1 %3606, %v1162_v9   ;;  %2065 = vperm.xlu2 %3604, %v779_v26   ;;  %v781_v26 = vmul.f32 0.5, %v653_v19  ;;  %v782_v9 = vmul.f32 0.5, %v654_v58  ;;  %v3615_v58 = vld [vmem:[%s6478_s0 + $0x38] sm:$0xff] }
 0x2ab   :  { %2070 = vperm.xlu0 %3605, %v780_v52   ;;  %v3612_v52 = vld [vmem:[%s6478_s0 + $0x20] sm:$0xff] }
 0x2ac   :  { %v5354_v41 = vpop.permute.xlu1 %1594  ;;  %v5356_v6 = vpop.permute.xlu2 %1644  ;;  %v655_v0 = vsub.f32 %v3612_v52, %v4006_v36  ;;  %v657_v36 = vsub.f32 %v3614_v23, %v4133_v62  ;;  %v3616_v62 = vld [vmem:[%s6478_s0 + $0x40] sm:$0xff] }
 0x2ad   :  { %7134 = vst [vmem:[#allocation143_spill] sm:$0xff] %v5354_v41  ;;  %v5362_v12 = vpop.permute.xlu0 %1604  ;;  %v659_v23 = vsub.f32 %v3616_v62, %v7140_v37 }
 0x2ae   :  { %7135 = vst [vmem:[#allocation141_spill] sm:$0xff] %v5356_v6  ;;  %v783_v57 = vmul.f32 0.5, %v655_v0  ;;  %v658_v0 = vsub.f32 %v3615_v58, %v4131_v61  ;;  %v785_v40 = vmul.f32 0.5, %v657_v36  ;;  %v7141_v6 = vld [vmem:[#allocation38_spill] sm:$0xff]  ;;  %v3618_v36 = vld [vmem:[%s6478_s0 + $0x50] sm:$0xff] }
 0x2af   :  { %7136 = vst [vmem:[#allocation142_spill] sm:$0xff] %v5362_v12  ;;  %v7209_v12 = vld [vmem:[#allocation9_spill] sm:$0xff] }
 0x2b2   :  { %2075 = vperm.xlu1 %3606, %v781_v26   ;;  %2080 = vperm.xlu2 %3604, %v782_v9   ;;  %v784_v9 = vmul.f32 0.5, %v656_v47 }
 0x2b3   :  { %2085 = vperm.xlu0 %3605, %v783_v57   ;;  %v786_v57 = vmul.f32 0.5, %v658_v0  ;;  %v7144_v0 = vld [vmem:[#allocation37_spill] sm:$0xff] }
 0x2b4   :  { %v5372_v52 = vpop.permute.xlu1 %1609  ;;  %v5374_v19 = vpop.permute.xlu2 %1659 }
 0x2b5   :  { %7137 = vst [vmem:[#allocation149_spill] sm:$0xff] %v5372_v52  ;;  %v5380_v26 = vpop.permute.xlu0 %1619  ;;  %v7200_v52 = vld [vmem:[#allocation98_spill] sm:$0xff] }
 0x2b6   :  { %7138 = vst [vmem:[#allocation147_spill] sm:$0xff] %v5374_v19  ;;  %v3617_v19 = vld [vmem:[%s6478_s0 + $0x48] sm:$0xff] }
 0x2b7   :  { %7139 = vst [vmem:[#allocation148_spill] sm:$0xff] %v5380_v26  ;;  %v660_v61 = vsub.f32 %v3617_v19, %v7141_v6  ;;  %v3619_v6 = vld [vmem:[%s6478_s0 + $0x58] sm:$0xff]  ;;  %v7146_v19 = vld [vmem:[#allocation20_spill] sm:$0xff] }
 0x2b8   :  { %v7147_v26 = vld [vmem:[#allocation44_spill] sm:$0xff] }
 0x2b9   :  { %v788_v62 = vmul.f32 0.5, %v660_v61  ;;  %v3621_v61 = vld [vmem:[%s6478_s0 + $0x68] sm:$0xff] }
 0x2ba   :  { %2090 = vperm.xlu1 %3606, %v784_v9   ;;  %2095 = vperm.xlu2 %3604, %v785_v40   ;;  %v661_v9 = vsub.f32 %v3618_v36, %v7144_v0 }
 0x2bb   :  { %2100 = vperm.xlu0 %3605, %v786_v57   ;;  %v787_v57 = vmul.f32 0.5, %v659_v23 }
 0x2bc   :  { %v5390_v58 = vpop.permute.xlu1 %1624  ;;  %v5392_v47 = vpop.permute.xlu2 %1674  ;;  %v789_v37 = vmul.f32 0.5, %v661_v9  ;;  %v7150_v9 = vld [vmem:[#allocation43_spill] sm:$0xff] }
 0x2bd   :  { %7142 = vst [vmem:[#allocation155_spill] sm:$0xff] %v5390_v58  ;;  %v5398_v40 = vpop.permute.xlu0 %1634  ;;  %v3620_v58 = vld [vmem:[%s6478_s0 + $0x60] sm:$0xff] }
 0x2be   :  { %7143 = vst [vmem:[#allocation153_spill] sm:$0xff] %v5392_v47  ;;  %v662_v47 = vsub.f32 %v3619_v6, %v7146_v19  ;;  %v663_v36 = vsub.f32 %v3620_v58, %v7147_v26  ;;  %v3622_v26 = vld [vmem:[%s6478_s0 + $0x70] sm:$0xff]  ;;  %v7152_v58 = vld [vmem:[#allocation26_spill] sm:$0xff] }
 0x2bf   :  { %7145 = vst [vmem:[#allocation154_spill] sm:$0xff] %v5398_v40  ;;  %v7153_v40 = vld [vmem:[#allocation50_spill] sm:$0xff] }
 0x2c0   :  { %v791_v6 = vmul.f32 0.5, %v663_v36  ;;  %v3624_v36 = vld [vmem:[%s6478_s0 + $0x80] sm:$0xff] }
 0x2c2   :  { %2105 = vperm.xlu1 %3606, %v787_v57   ;;  %2110 = vperm.xlu2 %3604, %v788_v62   ;;  %v664_v57 = vsub.f32 %v3621_v61, %v7150_v9 }
 0x2c3   :  { %2115 = vperm.xlu0 %3605, %v789_v37   ;;  %v790_v37 = vmul.f32 0.5, %v662_v47 }
 0x2c4   :  { %v5408_v0 = vpop.permute.xlu1 %1639  ;;  %v5410_v23 = vpop.permute.xlu2 %1689  ;;  %v792_v19 = vmul.f32 0.5, %v664_v57  ;;  %v7156_v57 = vld [vmem:[#allocation49_spill] sm:$0xff] }
 0x2c5   :  { %7148 = vst [vmem:[#allocation161_spill] sm:$0xff] %v5408_v0  ;;  %v5416_v62 = vpop.permute.xlu0 %1649  ;;  %v3623_v0 = vld [vmem:[%s6478_s0 + $0x78] sm:$0xff] }
 0x2c6   :  { %7149 = vst [vmem:[#allocation159_spill] sm:$0xff] %v5410_v23  ;;  %v665_v23 = vsub.f32 %v3622_v26, %v7152_v58  ;;  %v666_v61 = vsub.f32 %v3623_v0, %v7153_v40  ;;  %v3625_v40 = vld [vmem:[%s6478_s0 + $0x88] sm:$0xff]  ;;  %v7158_v0 = vld [vmem:[#allocation32_spill] sm:$0xff] }
 0x2c7   :  { %7151 = vst [vmem:[#allocation160_spill] sm:$0xff] %v5416_v62  ;;  %v7159_v62 = vld [vmem:[#allocation56_spill] sm:$0xff] }
 0x2c8   :  { %v794_v26 = vmul.f32 0.5, %v666_v61  ;;  %v3627_v61 = vld [vmem:[%s6478_s0 + $0x98] sm:$0xff] }
 0x2ca   :  { %2120 = vperm.xlu1 %3606, %v790_v37   ;;  %2125 = vperm.xlu2 %3604, %v791_v6   ;;  %v667_v37 = vsub.f32 %v3624_v36, %v7156_v57 }
 0x2cb   :  { %2130 = vperm.xlu0 %3605, %v792_v19   ;;  %v793_v19 = vmul.f32 0.5, %v665_v23 }
 0x2cc   :  { %v5426_v9 = vpop.permute.xlu1 %1654  ;;  %v5428_v47 = vpop.permute.xlu2 %1704  ;;  %v795_v58 = vmul.f32 0.5, %v667_v37  ;;  %v7162_v37 = vld [vmem:[#allocation55_spill] sm:$0xff] }
 0x2cd   :  { %7154 = vst [vmem:[#allocation167_spill] sm:$0xff] %v5426_v9  ;;  %v5434_v6 = vpop.permute.xlu0 %1664  ;;  %v3626_v9 = vld [vmem:[%s6478_s0 + $0x90] sm:$0xff] }
 0x2ce   :  { %7155 = vst [vmem:[#allocation165_spill] sm:$0xff] %v5428_v47  ;;  %v668_v47 = vsub.f32 %v3625_v40, %v7158_v0  ;;  %v669_v36 = vsub.f32 %v3626_v9, %v7159_v62  ;;  %v3628_v62 = vld [vmem:[%s6478_s0 + $0xa0] sm:$0xff]  ;;  %v7164_v9 = vld [vmem:[#allocation36_spill] sm:$0xff] }
 0x2cf   :  { %7157 = vst [vmem:[#allocation166_spill] sm:$0xff] %v5434_v6  ;;  %v7165_v6 = vld [vmem:[#allocation62_spill] sm:$0xff] }
 0x2d0   :  { %v797_v40 = vmul.f32 0.5, %v669_v36  ;;  %v3630_v36 = vld [vmem:[%s6478_s0 + $0xb0] sm:$0xff] }
 0x2d2   :  { %2135 = vperm.xlu1 %3606, %v793_v19   ;;  %2140 = vperm.xlu2 %3604, %v794_v26   ;;  %v670_v19 = vsub.f32 %v3627_v61, %v7162_v37 }
 0x2d3   :  { %2145 = vperm.xlu0 %3605, %v795_v58   ;;  %v796_v58 = vmul.f32 0.5, %v668_v47 }
 0x2d4   :  { %v5444_v57 = vpop.permute.xlu1 %1669  ;;  %v5446_v23 = vpop.permute.xlu2 %1719  ;;  %v798_v0 = vmul.f32 0.5, %v670_v19  ;;  %v7168_v19 = vld [vmem:[#allocation61_spill] sm:$0xff] }
 0x2d5   :  { %7160 = vst [vmem:[#allocation173_spill] sm:$0xff] %v5444_v57  ;;  %v5452_v26 = vpop.permute.xlu0 %1679  ;;  %v3629_v57 = vld [vmem:[%s6478_s0 + $0xa8] sm:$0xff] }
 0x2d6   :  { %7161 = vst [vmem:[#allocation171_spill] sm:$0xff] %v5446_v23  ;;  %v671_v23 = vsub.f32 %v3628_v62, %v7164_v9  ;;  %v672_v61 = vsub.f32 %v3629_v57, %v7165_v6  ;;  %v3631_v6 = vld [vmem:[%s6478_s0 + $0xb8] sm:$0xff]  ;;  %v7170_v57 = vld [vmem:[#allocation42_spill] sm:$0xff] }
 0x2d7   :  { %7163 = vst [vmem:[#allocation172_spill] sm:$0xff] %v5452_v26  ;;  %v7171_v26 = vld [vmem:[#allocation68_spill] sm:$0xff] }
 0x2d8   :  { %v800_v62 = vmul.f32 0.5, %v672_v61  ;;  %v3633_v61 = vld [vmem:[%s6478_s0 + $0xc8] sm:$0xff] }
 0x2da   :  { %2150 = vperm.xlu1 %3606, %v796_v58   ;;  %2155 = vperm.xlu2 %3604, %v797_v40   ;;  %v673_v58 = vsub.f32 %v3630_v36, %v7168_v19 }
 0x2db   :  { %2160 = vperm.xlu0 %3605, %v798_v0   ;;  %v799_v0 = vmul.f32 0.5, %v671_v23 }
 0x2dc   :  { %v5462_v37 = vpop.permute.xlu1 %1684  ;;  %v5464_v47 = vpop.permute.xlu2 %1734  ;;  %v801_v9 = vmul.f32 0.5, %v673_v58  ;;  %v7174_v58 = vld [vmem:[#allocation67_spill] sm:$0xff] }
 0x2dd   :  { %7166 = vst [vmem:[#allocation179_spill] sm:$0xff] %v5462_v37  ;;  %v5470_v40 = vpop.permute.xlu0 %1694  ;;  %v3632_v37 = vld [vmem:[%s6478_s0 + $0xc0] sm:$0xff] }
 0x2de   :  { %7167 = vst [vmem:[#allocation177_spill] sm:$0xff] %v5464_v47  ;;  %v674_v47 = vsub.f32 %v3631_v6, %v7170_v57  ;;  %v675_v36 = vsub.f32 %v3632_v37, %v7171_v26  ;;  %v3634_v26 = vld [vmem:[%s6478_s0 + $0xd0] sm:$0xff] }
 0x2df   :  { %7169 = vst [vmem:[#allocation178_spill] sm:$0xff] %v5470_v40  ;;  %v7176_v37 = vld [vmem:[#allocation48_spill] sm:$0xff]  ;;  %v7177_v40 = vld [vmem:[#allocation74_spill] sm:$0xff] }
 0x2e0   :  { %v803_v6 = vmul.f32 0.5, %v675_v36  ;;  %v3636_v36 = vld [vmem:[%s6478_s0 + $0xe0] sm:$0xff] }
 0x2e2   :  { %2165 = vperm.xlu1 %3606, %v799_v0   ;;  %2170 = vperm.xlu2 %3604, %v800_v62   ;;  %v676_v0 = vsub.f32 %v3633_v61, %v7174_v58 }
 0x2e3   :  { %2175 = vperm.xlu0 %3605, %v801_v9   ;;  %v802_v9 = vmul.f32 0.5, %v674_v47 }
 0x2e4   :  { %v5480_v19 = vpop.permute.xlu1 %1699  ;;  %v5482_v23 = vpop.permute.xlu2 %1749  ;;  %v804_v57 = vmul.f32 0.5, %v676_v0  ;;  %v7180_v0 = vld [vmem:[#allocation73_spill] sm:$0xff] }
 0x2e5   :  { %7172 = vst [vmem:[#allocation22_spill] sm:$0xff] %v5480_v19  ;;  %v5488_v62 = vpop.permute.xlu0 %1709  ;;  %v3635_v19 = vld [vmem:[%s6478_s0 + $0xd8] sm:$0xff] }
 0x2e6   :  { %7173 = vst [vmem:[#allocation183_spill] sm:$0xff] %v5482_v23  ;;  %v677_v23 = vsub.f32 %v3634_v26, %v7176_v37  ;;  %v678_v61 = vsub.f32 %v3635_v19, %v7177_v40  ;;  %v3637_v40 = vld [vmem:[%s6478_s0 + $0xe8] sm:$0xff]  ;;  %v7182_v19 = vld [vmem:[#allocation54_spill] sm:$0xff] }
 0x2e7   :  { %7175 = vst [vmem:[#allocation28_spill] sm:$0xff] %v5488_v62  ;;  %v7183_v62 = vld [vmem:[#allocation80_spill] sm:$0xff] }
 0x2e8   :  { %v806_v26 = vmul.f32 0.5, %v678_v61  ;;  %v3639_v61 = vld [vmem:[%s6478_s0 + $0xf8] sm:$0xff] }
 0x2ea   :  { %2180 = vperm.xlu1 %3606, %v802_v9   ;;  %2185 = vperm.xlu2 %3604, %v803_v6   ;;  %v679_v9 = vsub.f32 %v3636_v36, %v7180_v0 }
 0x2eb   :  { %2190 = vperm.xlu0 %3605, %v804_v57   ;;  %v805_v57 = vmul.f32 0.5, %v677_v23 }
 0x2ec   :  { %v5498_v58 = vpop.permute.xlu1 %1714  ;;  %v5500_v47 = vpop.permute.xlu2 %1764  ;;  %v807_v37 = vmul.f32 0.5, %v679_v9  ;;  %v7186_v9 = vld [vmem:[#allocation79_spill] sm:$0xff] }
 0x2ed   :  { %7178 = vst [vmem:[#allocation21_spill] sm:$0xff] %v5498_v58  ;;  %v5506_v6 = vpop.permute.xlu0 %1724  ;;  %v3638_v58 = vld [vmem:[%s6478_s0 + $0xf0] sm:$0xff] }
 0x2ee   :  { %7179 = vst [vmem:[#allocation27_spill] sm:$0xff] %v5500_v47  ;;  %v680_v47 = vsub.f32 %v3637_v40, %v7182_v19  ;;  %v681_v36 = vsub.f32 %v3638_v58, %v7183_v62  ;;  %v3640_v62 = vld [vmem:[%s6478_s0 + $0x100] sm:$0xff]  ;;  %v7188_v58 = vld [vmem:[#allocation60_spill] sm:$0xff] }
 0x2ef   :  { %7181 = vst [vmem:[#allocation16_spill] sm:$0xff] %v5506_v6  ;;  %v7189_v6 = vld [vmem:[#allocation86_spill] sm:$0xff] }
 0x2f0   :  { %v809_v40 = vmul.f32 0.5, %v681_v36  ;;  %v3642_v36 = vld [vmem:[%s6478_s0 + $0x110] sm:$0xff] }
 0x2f2   :  { %2195 = vperm.xlu1 %3606, %v805_v57   ;;  %2200 = vperm.xlu2 %3604, %v806_v26   ;;  %v682_v57 = vsub.f32 %v3639_v61, %v7186_v9 }
 0x2f3   :  { %2205 = vperm.xlu0 %3605, %v807_v37   ;;  %v808_v37 = vmul.f32 0.5, %v680_v47 }
 0x2f4   :  { %v5516_v0 = vpop.permute.xlu1 %1729  ;;  %v5518_v23 = vpop.permute.xlu2 %1779  ;;  %v810_v19 = vmul.f32 0.5, %v682_v57  ;;  %v7192_v57 = vld [vmem:[#allocation85_spill] sm:$0xff] }
 0x2f5   :  { %7184 = vst [vmem:[#allocation38_spill] sm:$0xff] %v5516_v0  ;;  %v5524_v26 = vpop.permute.xlu0 %1739  ;;  %v3641_v0 = vld [vmem:[%s6478_s0 + $0x108] sm:$0xff] }
 0x2f6   :  { %7185 = vst [vmem:[#allocation37_spill] sm:$0xff] %v5518_v23  ;;  %v683_v23 = vsub.f32 %v3640_v62, %v7188_v58  ;;  %v684_v61 = vsub.f32 %v3641_v0, %v7189_v6  ;;  %v3643_v6 = vld [vmem:[%s6478_s0 + $0x118] sm:$0xff]  ;;  %v7194_v0 = vld [vmem:[#allocation66_spill] sm:$0xff] }
 0x2f7   :  { %7187 = vst [vmem:[#allocation20_spill] sm:$0xff] %v5524_v26  ;;  %v7195_v26 = vld [vmem:[#allocation92_spill] sm:$0xff] }
 0x2f8   :  { %v812_v62 = vmul.f32 0.5, %v684_v61  ;;  %v3645_v61 = vld [vmem:[%s6478_s0 + $0x128] sm:$0xff] }
 0x2fa   :  { %2210 = vperm.xlu1 %3606, %v808_v37   ;;  %2215 = vperm.xlu2 %3604, %v809_v40   ;;  %v685_v37 = vsub.f32 %v3642_v36, %v7192_v57 }
 0x2fb   :  { %2220 = vperm.xlu0 %3605, %v810_v19   ;;  %v811_v19 = vmul.f32 0.5, %v683_v23 }
 0x2fc   :  { %v5534_v9 = vpop.permute.xlu1 %1744  ;;  %v5536_v47 = vpop.permute.xlu2 %1794  ;;  %v813_v58 = vmul.f32 0.5, %v685_v37  ;;  %v7197_v37 = vld [vmem:[#allocation91_spill] sm:$0xff] }
 0x2fd   :  { %7190 = vst [vmem:[#allocation44_spill] sm:$0xff] %v5534_v9  ;;  %v5542_v40 = vpop.permute.xlu0 %1754  ;;  %v3644_v9 = vld [vmem:[%s6478_s0 + $0x120] sm:$0xff] }
 0x2fe   :  { %7191 = vst [vmem:[#allocation43_spill] sm:$0xff] %v5536_v47  ;;  %v686_v47 = vsub.f32 %v3643_v6, %v7194_v0  ;;  %v687_v36 = vsub.f32 %v3644_v9, %v7195_v26  ;;  %v3646_v26 = vld [vmem:[%s6478_s0 + $0x130] sm:$0xff] }
 0x2ff   :  { %7193 = vst [vmem:[#allocation26_spill] sm:$0xff] %v5542_v40  ;;  %v7199_v9 = vld [vmem:[#allocation72_spill] sm:$0xff] }
 0x300   :  { %v815_v40 = vmul.f32 0.5, %v687_v36  ;;  %v689_v0 = vsub.f32 %v3646_v26, %v7199_v9  ;;  %v7202_v36 = vld [vmem:[#allocation97_spill] sm:$0xff] }
 0x302   :  { %2225 = vperm.xlu1 %3606, %v811_v19   ;;  %2230 = vperm.xlu2 %3604, %v812_v62   ;;  %v688_v19 = vsub.f32 %v3645_v61, %v7197_v37 }
 0x303   :  { %2235 = vperm.xlu0 %3605, %v813_v58   ;;  %v814_v58 = vmul.f32 0.5, %v686_v47 }
 0x304   :  { %v5552_v57 = vpop.permute.xlu1 %1759  ;;  %v2066_v23 = vpop.permute.xlu2 %2065  ;;  %v816_v6 = vmul.f32 0.5, %v688_v19 }
 0x305   :  { %7196 = vst [vmem:[#allocation50_spill] sm:$0xff] %v5552_v57  ;;  %v5558_v62 = vpop.permute.xlu0 %1769  ;;  %v3647_v57 = vld [vmem:[%s6478_s0 + $0x138] sm:$0xff] }
 0x306   :  { %7198 = vst [vmem:[#allocation49_spill] sm:$0xff] %v5558_v62  ;;  %v690_v61 = vsub.f32 %v3647_v57, %v7200_v52  ;;  %v5581_v62 = vld [vmem:[%s6479_s1] ss:$0 sm:$0xff]  ;;  %v3649_v52 = vld [vmem:[%s6478_s0 + $0x148] sm:$0xff] }
 0x307   :  { %v7204_v57 = vld [vmem:[#allocation78_spill] sm:$0xff] }
 0x308   :  { %v818_v26 = vmul.f32 0.5, %v690_v61  ;;  %v7205_v61 = vld [vmem:[#allocation104_spill] sm:$0xff] }
 0x30a   :  { %2240 = vperm.xlu1 %3606, %v814_v58   ;;  %2245 = vperm.xlu2 %3604, %v815_v40   ;;  %v3648_v40 = vld [vmem:[%s6478_s0 + $0x140] sm:$0xff] }
 0x30b   :  { %2250 = vperm.xlu0 %3605, %v816_v6   ;;  %v691_v19 = vsub.f32 %v3648_v40, %v7202_v36  ;;  %v817_v6 = vmul.f32 0.5, %v689_v0  ;;  %v3650_v0 = vld [vmem:[%s6478_s0 + $0x150] sm:$0xff] }
 0x30c   :  { %v5568_v37 = vpop.permute.xlu1 %1774  ;;  %v5570_v47 = vpop.permute.xlu2 %2080  ;;  %v693_v40 = vsub.f32 %v3650_v0, %v7205_v61  ;;  %v1808_v0 = vsub.f32 %v5581_v62, %v7210_v32 }
 0x30d   :  { %7201 = vst [vmem:[#allocation32_spill] sm:$0xff] %v5568_v37  ;;  %v5576_v58 = vpop.permute.xlu0 %1784  ;;  %v819_v9 = vmul.f32 0.5, %v691_v19  ;;  %v692_v37 = vsub.f32 %v3649_v52, %v7204_v57  ;;  %v1807_v52 = vsub.f32 %v5581_v62, %v7209_v12  ;;  %v3653_v12 = vld [vmem:[%s6478_s0 + $0x168] sm:$0xff] }
 0x30e   :  { %7203 = vst [vmem:[#allocation56_spill] sm:$0xff] %v5576_v58  ;;  %v821_v41 = vmul.f32 0.5, %v693_v40 }
 0x30f   :  { %v820_v57 = vmul.f32 0.5, %v692_v37  ;;  %v7212_v37 = vld [vmem:[#allocation110_spill] sm:$0xff] }
 0x310   :  { %v696_v40 = vsub.f32 %v3653_v12, %v7212_v37  ;;  %v1809_v12 = vsub.f32 %v5581_v62, %v7216_v18 }
 0x312   :  { %2255 = vperm.xlu1 %3606, %v817_v6   ;;  %2260 = vperm.xlu2 %3604, %v818_v26   ;;  %v3651_v6 = vld [vmem:[%s6478_s0 + $0x158] sm:$0xff]  ;;  %v7207_v26 = vld [vmem:[#allocation103_spill] sm:$0xff]  ;;  %v1937_v54 = vand.u32 2147483647, %v1809_v12 }
 0x313   :  { %2265 = vperm.xlu0 %3605, %v819_v9   ;;  %v694_v9 = vsub.f32 %v3651_v6, %v7207_v26  ;;  %v7211_v6 = vld [vmem:[#allocation84_spill] sm:$0xff] }
 0x314   :  { %v5591_v36 = vpop.permute.xlu1 %1789  ;;  %v5593_v19 = vpop.permute.xlu2 %2095  ;;  %v695_v26 = vsub.f32 %v3652_v21, %v7211_v6 }
 0x315   :  { %7206 = vst [vmem:[#allocation55_spill] sm:$0xff] %v5591_v36  ;;  %v5599_v58 = vpop.permute.xlu0 %1799  ;;  %v822_v61 = vmul.f32 0.5, %v694_v9  ;;  %v1935_v36 = vand.u32 2147483647, %v1807_v52  ;;  %v7214_v52 = vld [vmem:[#allocation109_spill] sm:$0xff] }
 0x316   :  { %7208 = vst [vmem:[#allocation36_spill] sm:$0xff] %v5599_v58  ;;  %v1936_v58 = vand.u32 2147483647, %v1808_v0  ;;  %v823_v0 = vmul.f32 0.5, %v695_v26 }
 0x317   :  { %v2703_v25 = vsub.f32 %v2066_v23, %v1935_v36  ;;  %v824_v23 = vmul.f32 0.5, %v696_v40 }
 0x319   :  { %v2831_v36 = vmax.f32 %v2703_v25, 0.0  ;;  %v3656_v25 = vld [vmem:[%s6478_s0 + $0x180] sm:$0xff] }
 0x31a   :  { %2270 = vperm.xlu1 %3606, %v820_v57   ;;  %2275 = vperm.xlu2 %3604, %v821_v41   ;;  %v3654_v41 = vld [vmem:[%s6478_s0 + $0x170] sm:$0xff] }
 0x31b   :  { %2280 = vperm.xlu0 %3605, %v822_v61   ;;  %v697_v57 = vsub.f32 %v3654_v41, %v7214_v52  ;;  %v7215_v61 = vld [vmem:[#allocation12_spill] sm:$0xff]  ;;  %v7217_v52 = vld [vmem:[#allocation90_spill] sm:$0xff] }
 0x31c   :  { %v5613_v32 = vpop.permute.xlu1 %1804  ;;  %v5615_v9 = vpop.permute.xlu2 %2110  ;;  %v1810_v21 = vsub.f32 %v5581_v62, %v7215_v61 }
 0x31d   :  { %7213 = vst [vmem:[#allocation62_spill] sm:$0xff] %v5613_v32  ;;  %v2071_v6 = vpop.permute.xlu0 %2070  ;;  %v825_v32 = vmul.f32 0.5, %v697_v57  ;;  %v7220_v57 = vld [vmem:[#allocation24_spill] sm:$0xff] }
 0x31e   :  { %v2704_v45 = vsub.f32 %v2071_v6, %v1936_v58  ;;  %v1938_v31 = vand.u32 2147483647, %v1810_v21  ;;  %v3655_v58 = vld [vmem:[%s6478_s0 + $0x178] sm:$0xff]  ;;  %v1811_v21 = vsub.f32 %v5581_v62, %v7220_v57  ;;  %v7225_v57 = vld [vmem:[#allocation122_spill] sm:$0xff] }
 0x31f   :  { %v698_v61 = vsub.f32 %v3655_v58, %v7217_v52 }
 0x320   :  { %v2832_v37 = vmax.f32 %v2704_v45, 0.0  ;;  %v2706_v41 = vsub.f32 %v5570_v47, %v1938_v31  ;;  %v7218_v45 = vld [vmem:[#allocation116_spill] sm:$0xff]  ;;  %v3657_v31 = vld [vmem:[%s6478_s0 + $0x188] sm:$0xff] }
 0x321   :  { %v699_v18 = vsub.f32 %v3656_v25, %v7218_v45  ;;  %v7219_v47 = vld [vmem:[#allocation115_spill] sm:$0xff]  ;;  %v826_v52 = vmul.f32 0.5, %v698_v61  ;;  %v7223_v45 = vld [vmem:[#allocation30_spill] sm:$0xff]  ;;  %v7224_v61 = vld [vmem:[#allocation96_spill] sm:$0xff] }
 0x322   :  { %v3222_v1 = vpack.c.bf16 %v2832_v37, %v2831_v36  ;;  %2285 = vperm.xlu1 %3606, %v823_v0   ;;  %2290 = vperm.xlu2 %3604, %v824_v23   ;;  %v7221_v0 = vld [vmem:[#allocation29_spill] sm:$0xff]  ;;  %v7222_v36 = vld [vmem:[#allocation15_spill] sm:$0xff]  ;;  %v2834_v37 = vmax.f32 %v2706_v41, 0.0  ;;  %v1814_v50 = vsub.f32 %v5581_v62, %v7223_v45  ;;  %v3658_v41 = vld [vmem:[%s6478_s0 + $0x190] sm:$0xff] }
 0x323   :  { %2295 = vperm.xlu0 %3605, %v825_v32   ;;  %v700_v32 = vsub.f32 %v3657_v31, %v7219_v47  ;;  %v1813_v23 = vsub.f32 %v5581_v62, %v7221_v0  ;;  %v827_v25 = vmul.f32 0.5, %v699_v18  ;;  %v1939_v31 = vand.u32 2147483647, %v1811_v21 }
 0x324   :  { %3223 = vst [vmem:[%s6480_s2] sm:$0xff] %v3222_v1   ;;  %v2076_v26 = vpop.permute.xlu1 %2075  ;;  %v5637_v40 = vpop.permute.xlu2 %2125  ;;  %v1812_v1 = vsub.f32 %v5581_v62, %v7222_v36  ;;  %v701_v18 = vsub.f32 %v3658_v41, %v7224_v61 }
 0x325   :  { %v2705_v6 = vsub.f32 %v2076_v26, %v1937_v54  ;;  %v2086_v12 = vpop.permute.xlu0 %2085  ;;  %v828_v15 = vmul.f32 0.5, %v700_v32  ;;  %v1941_v42 = vand.u32 2147483647, %v1813_v23  ;;  %v3659_v32 = vld [vmem:[%s6478_s0 + $0x198] sm:$0xff] }
 0x326   :  { %v1940_v54 = vand.u32 2147483647, %v1812_v1  ;;  %v2707_v26 = vsub.f32 %v2086_v12, %v1939_v31  ;;  %v702_v21 = vsub.f32 %v3659_v32, %v7225_v57  ;;  %v7226_v12 = vld [vmem:[#allocation121_spill] sm:$0xff]  ;;  %v7228_v31 = vld [vmem:[#allocation19_spill] sm:$0xff] }
 0x327   :  { %v2833_v58 = vmax.f32 %v2705_v6, 0.0  ;;  %v1942_v6 = vand.u32 2147483647, %v1814_v50  ;;  %v2709_v0 = vsub.f32 %v5593_v19, %v1941_v42  ;;  %v1815_v50 = vsub.f32 %v5581_v62, %v7228_v31 }
 0x328   :  { %v829_v19 = vmul.f32 0.5, %v701_v18  ;;  %v830_v41 = vmul.f32 0.5, %v702_v21  ;;  %v7229_v18 = vld [vmem:[#allocation102_spill] sm:$0xff] }
 0x329   :  { %v3227_v47 = vpack.c.bf16 %v2834_v37, %v2833_v58  ;;  %v7227_v37 = vld [vmem:[#allocation33_spill] sm:$0xff]  ;;  %v2837_v61 = vmax.f32 %v2709_v0, 0.0  ;;  %v7230_v0 = vld [vmem:[#allocation128_spill] sm:$0xff] }
 0x32a   :  { %2300 = vperm.xlu1 %3606, %v826_v52   ;;  %2305 = vperm.xlu2 %3604, %v827_v25   ;;  %v1816_v58 = vsub.f32 %v5581_v62, %v7227_v37  ;;  %v7232_v37 = vld [vmem:[#allocation34_spill] sm:$0xff] }
 0x32b   :  { %3539 = vst [vmem:[%s6480_s2 + $0x8] sm:$0xff] %v3227_v47   ;;  %2310 = vperm.xlu0 %3605, %v828_v15   ;;  %v3660_v15 = vld [vmem:[%s6478_s0 + $0x1a0] sm:$0xff]  ;;  %v2835_v47 = vmax.f32 %v2707_v26, 0.0  ;;  %v3661_v26 = vld [vmem:[%s6478_s0 + $0x1a8] sm:$0xff] }
 0x32c   :  { %v2091_v23 = vpop.permute.xlu1 %2090  ;;  %v5663_v36 = vpop.permute.xlu2 %2140  ;;  %v703_v1 = vsub.f32 %v3660_v15, %v7226_v12  ;;  %v1944_v20 = vand.u32 2147483647, %v1816_v58  ;;  %v1943_v15 = vand.u32 2147483647, %v1815_v50  ;;  %v704_v21 = vsub.f32 %v3661_v26, %v7229_v18  ;;  %v7231_v12 = vld [vmem:[#allocation127_spill] sm:$0xff]  ;;  %v7234_v50 = vld [vmem:[#allocation25_spill] sm:$0xff] }
 0x32d   :  { %v2708_v52 = vsub.f32 %v2091_v23, %v1940_v54  ;;  %v2101_v25 = vpop.permute.xlu0 %2100  ;;  %v1817_v58 = vsub.f32 %v5581_v62, %v7232_v37 }
 0x32e   :  { %v2710_v45 = vsub.f32 %v2101_v25, %v1942_v6  ;;  %v831_v57 = vmul.f32 0.5, %v703_v1  ;;  %v2712_v54 = vsub.f32 %v5615_v9, %v1944_v20  ;;  %v3662_v6 = vld [vmem:[%s6478_s0 + $0x1b0] sm:$0xff] }
 0x32f   :  { %v2836_v42 = vmax.f32 %v2708_v52, 0.0  ;;  %v705_v23 = vsub.f32 %v3662_v6, %v7230_v0  ;;  %v1945_v26 = vand.u32 2147483647, %v1817_v58 }
 0x330   :  { %v2838_v32 = vmax.f32 %v2710_v45, 0.0  ;;  %v7233_v45 = vld [vmem:[#allocation39_spill] sm:$0xff] }
 0x331   :  { %v3232_v35 = vpack.c.bf16 %v2836_v42, %v2835_v47  ;;  %v1819_v31 = vsub.f32 %v5581_v62, %v7233_v45  ;;  %v2840_v47 = vmax.f32 %v2712_v54, 0.0  ;;  %v3664_v54 = vld [vmem:[%s6478_s0 + $0x1c0] sm:$0xff]  ;;  %v7238_v45 = vld [vmem:[#allocation133_spill] sm:$0xff] }
 0x332   :  { %v3237_v38 = vpack.c.bf16 %v2838_v32, %v2837_v61  ;;  %2315 = vperm.xlu1 %3606, %v829_v19   ;;  %2320 = vperm.xlu2 %3604, %v830_v41   ;;  %v832_v19 = vmul.f32 0.5, %v704_v21  ;;  %v833_v41 = vmul.f32 0.5, %v705_v23  ;;  %v7235_v61 = vld [vmem:[#allocation40_spill] sm:$0xff] }
 0x333   :  { %3540 = vst [vmem:[%s6480_s2 + $0x10] sm:$0xff] %v3232_v35   ;;  %2325 = vperm.xlu0 %3605, %v831_v57   ;;  %v3663_v35 = vld [vmem:[%s6478_s0 + $0x1b8] sm:$0xff]  ;;  %v1820_v32 = vsub.f32 %v5581_v62, %v7235_v61  ;;  %v1947_v6 = vand.u32 2147483647, %v1819_v31  ;;  %v7236_v21 = vld [vmem:[#allocation108_spill] sm:$0xff] }
 0x334   :  { %3541 = vst [vmem:[%s6480_s2 + $0x18] sm:$0xff] %v3237_v38   ;;  %v2106_v20 = vpop.permute.xlu1 %2105  ;;  %v5688_v9 = vpop.permute.xlu2 %2155  ;;  %v706_v1 = vsub.f32 %v3663_v35, %v7231_v12  ;;  %v1818_v38 = vsub.f32 %v5581_v62, %v7234_v50  ;;  %v707_v23 = vsub.f32 %v3664_v54, %v7236_v21  ;;  %v7237_v35 = vld [vmem:[#allocation134_spill] sm:$0xff]  ;;  %v7239_v50 = vld [vmem:[#allocation45_spill] sm:$0xff] }
 0x335   :  { %v2711_v52 = vsub.f32 %v2106_v20, %v1943_v15  ;;  %v2116_v25 = vpop.permute.xlu0 %2115  ;;  %v3665_v20 = vld [vmem:[%s6478_s0 + $0x1c8] sm:$0xff]  ;;  %v2715_v37 = vsub.f32 %v5637_v40, %v1947_v6 }
 0x336   :  { %v834_v57 = vmul.f32 0.5, %v706_v1  ;;  %v1946_v15 = vand.u32 2147483647, %v1818_v38  ;;  %v2713_v0 = vsub.f32 %v2116_v25, %v1945_v26  ;;  %v708_v12 = vsub.f32 %v3665_v20, %v7237_v35  ;;  %v3666_v25 = vld [vmem:[%s6478_s0 + $0x1d0] sm:$0xff] }
 0x337   :  { %v2839_v42 = vmax.f32 %v2711_v52, 0.0  ;;  %v1948_v1 = vand.u32 2147483647, %v1820_v32  ;;  %v709_v31 = vsub.f32 %v3666_v25, %v7238_v45  ;;  %v1822_v38 = vsub.f32 %v5581_v62, %v7239_v50  ;;  %v7243_v50 = vld [vmem:[#allocation139_spill] sm:$0xff] }
 0x338   :  { %v2841_v32 = vmax.f32 %v2713_v0, 0.0  ;;  %v836_v26 = vmul.f32 0.5, %v708_v12  ;;  %v3667_v0 = vld [vmem:[%s6478_s0 + $0x1d8] sm:$0xff] }
 0x339   :  { %v3242_v18 = vpack.c.bf16 %v2840_v47, %v2839_v42  ;;  %v837_v54 = vmul.f32 0.5, %v709_v31  ;;  %v1950_v21 = vand.u32 2147483647, %v1822_v38  ;;  %v3669_v31 = vld [vmem:[%s6478_s0 + $0x1e8] sm:$0xff] }
 0x33a   :  { %2330 = vperm.xlu1 %3606, %v832_v19   ;;  %2335 = vperm.xlu2 %3604, %v833_v41   ;;  %v7240_v41 = vld [vmem:[#allocation31_spill] sm:$0xff]  ;;  %v712_v38 = vsub.f32 %v3669_v31, %v7243_v50  ;;  %v7249_v31 = vld [vmem:[#allocation146_spill] sm:$0xff] }
 0x33b   :  { %3542 = vst [vmem:[%s6480_s2 + $0x20] sm:$0xff] %v3242_v18   ;;  %2340 = vperm.xlu0 %3605, %v834_v57   ;;  %v1821_v61 = vsub.f32 %v5581_v62, %v7240_v41  ;;  %v835_v57 = vmul.f32 0.5, %v707_v23  ;;  %v2843_v18 = vmax.f32 %v2715_v37, 0.0  ;;  %v7241_v23 = vld [vmem:[#allocation114_spill] sm:$0xff]  ;;  %v7242_v37 = vld [vmem:[#allocation140_spill] sm:$0xff] }
 0x33c   :  { %v2121_v58 = vpop.permute.xlu1 %2120  ;;  %v5714_v52 = vpop.permute.xlu2 %2170  ;;  %v710_v12 = vsub.f32 %v3667_v0, %v7241_v23 }
 0x33d   :  { %v2714_v47 = vsub.f32 %v2121_v58, %v1946_v15  ;;  %v2131_v42 = vpop.permute.xlu0 %2130  ;;  %v1949_v25 = vand.u32 2147483647, %v1821_v61  ;;  %v2718_v15 = vsub.f32 %v5663_v36, %v1950_v21  ;;  %v7245_v61 = vld [vmem:[#allocation51_spill] sm:$0xff]  ;;  %v7247_v21 = vld [vmem:[#allocation52_spill] sm:$0xff] }
 0x33e   :  { %v2716_v19 = vsub.f32 %v2131_v42, %v1948_v1  ;;  %v3668_v1 = vld [vmem:[%s6478_s0 + $0x1e0] sm:$0xff] }
 0x33f   :  { %v2842_v40 = vmax.f32 %v2714_v47, 0.0  ;;  %v711_v58 = vsub.f32 %v3668_v1, %v7242_v37  ;;  %v7244_v47 = vld [vmem:[#allocation46_spill] sm:$0xff] }
 0x340   :  { %v2844_v6 = vmax.f32 %v2716_v19, 0.0  ;;  %v1823_v42 = vsub.f32 %v5581_v62, %v7244_v47 }
 0x341   :  { %v3247_v20 = vpack.c.bf16 %v2842_v40, %v2841_v32  ;;  %v1825_v32 = vsub.f32 %v5581_v62, %v7245_v61  ;;  %v7246_v40 = vld [vmem:[#allocation35_spill] sm:$0xff]  ;;  %v7250_v61 = vld [vmem:[#allocation145_spill] sm:$0xff] }
 0x342   :  { %v3252_v35 = vpack.c.bf16 %v2844_v6, %v2843_v18  ;;  %2345 = vperm.xlu1 %3606, %v835_v57   ;;  %2350 = vperm.xlu2 %3604, %v836_v26   ;;  %v1824_v57 = vsub.f32 %v5581_v62, %v7246_v40  ;;  %v2846_v26 = vmax.f32 %v2718_v15, 0.0  ;;  %v838_v6 = vmul.f32 0.5, %v710_v12  ;;  %v3670_v15 = vld [vmem:[%s6478_s0 + $0x1f0] sm:$0xff]  ;;  %v7251_v40 = vld [vmem:[#allocation57_spill] sm:$0xff] }
 0x343   :  { %3543 = vst [vmem:[%s6480_s2 + $0x28] sm:$0xff] %v3247_v20   ;;  %2355 = vperm.xlu0 %3605, %v837_v54   ;;  %v839_v54 = vmul.f32 0.5, %v711_v58  ;;  %v1826_v20 = vsub.f32 %v5581_v62, %v7247_v21  ;;  %v1951_v0 = vand.u32 2147483647, %v1823_v42  ;;  %v1953_v1 = vand.u32 2147483647, %v1825_v32 }
 0x344   :  { %3544 = vst [vmem:[%s6480_s2 + $0x30] sm:$0xff] %v3252_v35   ;;  %v2136_v36 = vpop.permute.xlu1 %2135  ;;  %v5739_v45 = vpop.permute.xlu2 %2185  ;;  %v840_v35 = vmul.f32 0.5, %v712_v38  ;;  %v7248_v12 = vld [vmem:[#allocation120_spill] sm:$0xff] }
 0x345   :  { %v2717_v19 = vsub.f32 %v2136_v36, %v1949_v25  ;;  %v2146_v41 = vpop.permute.xlu0 %2145  ;;  %v1952_v25 = vand.u32 2147483647, %v1824_v57  ;;  %v713_v58 = vsub.f32 %v3670_v15, %v7248_v12  ;;  %v3671_v36 = vld [vmem:[%s6478_s0 + $0x1f8] sm:$0xff]  ;;  %v1954_v38 = vand.u32 2147483647, %v1826_v20 }
 0x346   :  { %v2719_v37 = vsub.f32 %v2146_v41, %v1951_v0  ;;  %v714_v50 = vsub.f32 %v3671_v36, %v7249_v31  ;;  %v2721_v47 = vsub.f32 %v5688_v9, %v1953_v1  ;;  %v3672_v41 = vld [vmem:[%s6478_s0 + $0x200] sm:$0xff]  ;;  %v1828_v57 = vsub.f32 %v5581_v62, %v7251_v40  ;;  %v7255_v40 = vld [vmem:[#allocation151_spill] sm:$0xff] }
 0x347   :  { %v2845_v18 = vmax.f32 %v2717_v19, 0.0  ;;  %v715_v32 = vsub.f32 %v3672_v41, %v7250_v61 }
 0x348   :  { %v2847_v20 = vmax.f32 %v2719_v37, 0.0  ;;  %v842_v0 = vmul.f32 0.5, %v714_v50  ;;  %v1956_v12 = vand.u32 2147483647, %v1828_v57  ;;  %v3673_v37 = vld [vmem:[%s6478_s0 + $0x208] sm:$0xff] }
 0x349   :  { %v3257_v23 = vpack.c.bf16 %v2846_v26, %v2845_v18  ;;  %v843_v15 = vmul.f32 0.5, %v715_v32  ;;  %v3675_v32 = vld [vmem:[%s6478_s0 + $0x218] sm:$0xff] }
 0x34a   :  { %2360 = vperm.xlu1 %3606, %v838_v6   ;;  %2365 = vperm.xlu2 %3604, %v839_v54   ;;  %v7252_v54 = vld [vmem:[#allocation41_spill] sm:$0xff]  ;;  %v718_v57 = vsub.f32 %v3675_v32, %v7255_v40  ;;  %v7261_v32 = vld [vmem:[#allocation158_spill] sm:$0xff] }
 0x34b   :  { %3545 = vst [vmem:[%s6480_s2 + $0x38] sm:$0xff] %v3257_v23   ;;  %2370 = vperm.xlu0 %3605, %v840_v35   ;;  %v1827_v21 = vsub.f32 %v5581_v62, %v7252_v54  ;;  %v841_v35 = vmul.f32 0.5, %v713_v58  ;;  %v2849_v23 = vmax.f32 %v2721_v47, 0.0  ;;  %v7253_v58 = vld [vmem:[#allocation126_spill] sm:$0xff]  ;;  %v7254_v47 = vld [vmem:[#allocation152_spill] sm:$0xff] }
 0x34c   :  { %v2151_v42 = vpop.permute.xlu1 %2150  ;;  %v5765_v19 = vpop.permute.xlu2 %2200  ;;  %v716_v50 = vsub.f32 %v3673_v37, %v7253_v58 }
 0x34d   :  { %v2720_v26 = vsub.f32 %v2151_v42, %v1952_v25  ;;  %v2161_v18 = vpop.permute.xlu0 %2160  ;;  %v1955_v41 = vand.u32 2147483647, %v1827_v21  ;;  %v2724_v25 = vsub.f32 %v5714_v52, %v1956_v12  ;;  %v7257_v21 = vld [vmem:[#allocation63_spill] sm:$0xff]  ;;  %v7259_v12 = vld [vmem:[#allocation64_spill] sm:$0xff] }
 0x34e   :  { %v2722_v6 = vsub.f32 %v2161_v18, %v1954_v38  ;;  %v3674_v38 = vld [vmem:[%s6478_s0 + $0x210] sm:$0xff] }
 0x34f   :  { %v2848_v9 = vmax.f32 %v2720_v26, 0.0  ;;  %v717_v42 = vsub.f32 %v3674_v38, %v7254_v47  ;;  %v7256_v26 = vld [vmem:[#allocation58_spill] sm:$0xff] }
 0x350   :  { %v2850_v1 = vmax.f32 %v2722_v6, 0.0  ;;  %v1829_v18 = vsub.f32 %v5581_v62, %v7256_v26 }
 0x351   :  { %v3262_v36 = vpack.c.bf16 %v2848_v9, %v2847_v20  ;;  %v1831_v20 = vsub.f32 %v5581_v62, %v7257_v21  ;;  %v7258_v9 = vld [vmem:[#allocation47_spill] sm:$0xff]  ;;  %v7262_v21 = vld [vmem:[#allocation157_spill] sm:$0xff] }
 0x352   :  { %v3267_v31 = vpack.c.bf16 %v2850_v1, %v2849_v23  ;;  %2375 = vperm.xlu1 %3606, %v841_v35   ;;  %2380 = vperm.xlu2 %3604, %v842_v0   ;;  %v1830_v35 = vsub.f32 %v5581_v62, %v7258_v9  ;;  %v2852_v0 = vmax.f32 %v2724_v25, 0.0  ;;  %v844_v1 = vmul.f32 0.5, %v716_v50  ;;  %v3676_v25 = vld [vmem:[%s6478_s0 + $0x220] sm:$0xff]  ;;  %v7260_v50 = vld [vmem:[#allocation132_spill] sm:$0xff]  ;;  %v7263_v9 = vld [vmem:[#allocation69_spill] sm:$0xff] }
 0x353   :  { %3546 = vst [vmem:[%s6480_s2 + $0x40] sm:$0xff] %v3262_v36   ;;  %2385 = vperm.xlu0 %3605, %v843_v15   ;;  %v845_v15 = vmul.f32 0.5, %v717_v42  ;;  %v1832_v36 = vsub.f32 %v5581_v62, %v7259_v12  ;;  %v1957_v37 = vand.u32 2147483647, %v1829_v18  ;;  %v1959_v38 = vand.u32 2147483647, %v1831_v20 }
 0x354   :  { %3547 = vst [vmem:[%s6480_s2 + $0x48] sm:$0xff] %v3267_v31   ;;  %v2166_v52 = vpop.permute.xlu1 %2165  ;;  %v5790_v61 = vpop.permute.xlu2 %2215  ;;  %v846_v31 = vmul.f32 0.5, %v718_v57  ;;  %v719_v42 = vsub.f32 %v3676_v25, %v7260_v50 }
 0x355   :  { %v2723_v6 = vsub.f32 %v2166_v52, %v1955_v41  ;;  %v2176_v54 = vpop.permute.xlu0 %2175  ;;  %v1958_v41 = vand.u32 2147483647, %v1830_v35  ;;  %v3677_v52 = vld [vmem:[%s6478_s0 + $0x228] sm:$0xff]  ;;  %v1960_v57 = vand.u32 2147483647, %v1832_v36  ;;  %v2727_v26 = vsub.f32 %v5739_v45, %v1959_v38 }
 0x356   :  { %v2725_v47 = vsub.f32 %v2176_v54, %v1957_v37  ;;  %v720_v40 = vsub.f32 %v3677_v52, %v7261_v32  ;;  %v3678_v54 = vld [vmem:[%s6478_s0 + $0x230] sm:$0xff]  ;;  %v1834_v35 = vsub.f32 %v5581_v62, %v7263_v9  ;;  %v7267_v9 = vld [vmem:[#allocation163_spill] sm:$0xff] }
 0x357   :  { %v2851_v23 = vmax.f32 %v2723_v6, 0.0  ;;  %v721_v20 = vsub.f32 %v3678_v54, %v7262_v21 }
 0x358   :  { %v2853_v36 = vmax.f32 %v2725_v47, 0.0  ;;  %v848_v37 = vmul.f32 0.5, %v720_v40  ;;  %v1962_v50 = vand.u32 2147483647, %v1834_v35  ;;  %v3679_v47 = vld [vmem:[%s6478_s0 + $0x238] sm:$0xff] }
 0x359   :  { %v3272_v58 = vpack.c.bf16 %v2852_v0, %v2851_v23  ;;  %v849_v25 = vmul.f32 0.5, %v721_v20  ;;  %v3681_v20 = vld [vmem:[%s6478_s0 + $0x248] sm:$0xff] }
 0x35a   :  { %2390 = vperm.xlu1 %3606, %v844_v1   ;;  %2395 = vperm.xlu2 %3604, %v845_v15   ;;  %v7264_v15 = vld [vmem:[#allocation53_spill] sm:$0xff]  ;;  %v724_v35 = vsub.f32 %v3681_v20, %v7267_v9  ;;  %v7273_v20 = vld [vmem:[#allocation170_spill] sm:$0xff] }
 0x35b   :  { %3548 = vst [vmem:[%s6480_s2 + $0x50] sm:$0xff] %v3272_v58   ;;  %2400 = vperm.xlu0 %3605, %v846_v31   ;;  %v1833_v12 = vsub.f32 %v5581_v62, %v7264_v15  ;;  %v847_v31 = vmul.f32 0.5, %v719_v42  ;;  %v2855_v58 = vmax.f32 %v2727_v26, 0.0  ;;  %v7265_v42 = vld [vmem:[#allocation138_spill] sm:$0xff]  ;;  %v7266_v26 = vld [vmem:[#allocation164_spill] sm:$0xff] }
 0x35c   :  { %v2181_v18 = vpop.permute.xlu1 %2180  ;;  %v5816_v6 = vpop.permute.xlu2 %2230  ;;  %v722_v40 = vsub.f32 %v3679_v47, %v7265_v42 }
 0x35d   :  { %v2726_v0 = vsub.f32 %v2181_v18, %v1958_v41  ;;  %v2191_v23 = vpop.permute.xlu0 %2190  ;;  %v1961_v54 = vand.u32 2147483647, %v1833_v12  ;;  %v2730_v41 = vsub.f32 %v5765_v19, %v1962_v50  ;;  %v7269_v12 = vld [vmem:[#allocation75_spill] sm:$0xff]  ;;  %v7271_v50 = vld [vmem:[#allocation76_spill] sm:$0xff] }
 0x35e   :  { %v2728_v1 = vsub.f32 %v2191_v23, %v1960_v57  ;;  %v3680_v57 = vld [vmem:[%s6478_s0 + $0x240] sm:$0xff] }
 0x35f   :  { %v2854_v45 = vmax.f32 %v2726_v0, 0.0  ;;  %v723_v18 = vsub.f32 %v3680_v57, %v7266_v26  ;;  %v7268_v0 = vld [vmem:[#allocation70_spill] sm:$0xff] }
 0x360   :  { %v2856_v38 = vmax.f32 %v2728_v1, 0.0  ;;  %v1835_v23 = vsub.f32 %v5581_v62, %v7268_v0 }
 0x361   :  { %v3277_v52 = vpack.c.bf16 %v2854_v45, %v2853_v36  ;;  %v1837_v36 = vsub.f32 %v5581_v62, %v7269_v12  ;;  %v7270_v45 = vld [vmem:[#allocation59_spill] sm:$0xff]  ;;  %v7274_v12 = vld [vmem:[#allocation169_spill] sm:$0xff] }
 0x362   :  { %v3282_v32 = vpack.c.bf16 %v2856_v38, %v2855_v58  ;;  %2405 = vperm.xlu1 %3606, %v847_v31   ;;  %2410 = vperm.xlu2 %3604, %v848_v37   ;;  %v1836_v31 = vsub.f32 %v5581_v62, %v7270_v45  ;;  %v2858_v37 = vmax.f32 %v2730_v41, 0.0  ;;  %v850_v38 = vmul.f32 0.5, %v722_v40  ;;  %v3682_v41 = vld [vmem:[%s6478_s0 + $0x250] sm:$0xff]  ;;  %v7275_v45 = vld [vmem:[#allocation81_spill] sm:$0xff] }
 0x363   :  { %3549 = vst [vmem:[%s6480_s2 + $0x58] sm:$0xff] %v3277_v52   ;;  %2415 = vperm.xlu0 %3605, %v849_v25   ;;  %v851_v25 = vmul.f32 0.5, %v723_v18  ;;  %v1838_v52 = vsub.f32 %v5581_v62, %v7271_v50  ;;  %v1963_v47 = vand.u32 2147483647, %v1835_v23  ;;  %v1965_v57 = vand.u32 2147483647, %v1837_v36 }
 0x364   :  { %3550 = vst [vmem:[%s6480_s2 + $0x60] sm:$0xff] %v3282_v32   ;;  %v2196_v19 = vpop.permute.xlu1 %2195  ;;  %v5841_v21 = vpop.permute.xlu2 %2245  ;;  %v852_v32 = vmul.f32 0.5, %v724_v35  ;;  %v7272_v40 = vld [vmem:[#allocation144_spill] sm:$0xff] }
 0x365   :  { %v2729_v1 = vsub.f32 %v2196_v19, %v1961_v54  ;;  %v2206_v15 = vpop.permute.xlu0 %2205  ;;  %v1964_v54 = vand.u32 2147483647, %v1836_v31  ;;  %v725_v18 = vsub.f32 %v3682_v41, %v7272_v40  ;;  %v3683_v19 = vld [vmem:[%s6478_s0 + $0x258] sm:$0xff]  ;;  %v1966_v35 = vand.u32 2147483647, %v1838_v52 }
 0x366   :  { %v2731_v26 = vsub.f32 %v2206_v15, %v1963_v47  ;;  %v726_v9 = vsub.f32 %v3683_v19, %v7273_v20  ;;  %v2733_v0 = vsub.f32 %v5790_v61, %v1965_v57  ;;  %v3684_v15 = vld [vmem:[%s6478_s0 + $0x260] sm:$0xff]  ;;  %v1840_v31 = vsub.f32 %v5581_v62, %v7275_v45  ;;  %v7279_v45 = vld [vmem:[#allocation175_spill] sm:$0xff] }
 0x367   :  { %v2857_v58 = vmax.f32 %v2729_v1, 0.0  ;;  %v727_v36 = vsub.f32 %v3684_v15, %v7274_v12 }
 0x368   :  { %v2859_v52 = vmax.f32 %v2731_v26, 0.0  ;;  %v854_v47 = vmul.f32 0.5, %v726_v9  ;;  %v1968_v40 = vand.u32 2147483647, %v1840_v31  ;;  %v3685_v26 = vld [vmem:[%s6478_s0 + $0x268] sm:$0xff] }
 0x369   :  { %v3287_v42 = vpack.c.bf16 %v2858_v37, %v2857_v58  ;;  %v855_v41 = vmul.f32 0.5, %v727_v36  ;;  %v3687_v36 = vld [vmem:[%s6478_s0 + $0x278] sm:$0xff] }
 0x36a   :  { %2420 = vperm.xlu1 %3606, %v850_v38   ;;  %2425 = vperm.xlu2 %3604, %v851_v25   ;;  %v7276_v25 = vld [vmem:[#allocation65_spill] sm:$0xff]  ;;  %v730_v31 = vsub.f32 %v3687_v36, %v7279_v45 }
 0x36b   :  { %3551 = vst [vmem:[%s6480_s2 + $0x68] sm:$0xff] %v3287_v42   ;;  %2430 = vperm.xlu0 %3605, %v852_v32   ;;  %v1839_v50 = vsub.f32 %v5581_v62, %v7276_v25  ;;  %v853_v32 = vmul.f32 0.5, %v725_v18  ;;  %v2861_v42 = vmax.f32 %v2733_v0, 0.0  ;;  %v7277_v18 = vld [vmem:[#allocation150_spill] sm:$0xff]  ;;  %v7278_v0 = vld [vmem:[#allocation176_spill] sm:$0xff] }
 0x36c   :  { %v2211_v23 = vpop.permute.xlu1 %2210  ;;  %v5867_v1 = vpop.permute.xlu2 %2260  ;;  %v728_v9 = vsub.f32 %v3685_v26, %v7277_v18  ;;  %v7282_v18 = vld [vmem:[#allocation156_spill] sm:$0xff] }
 0x36d   :  { %v2732_v37 = vsub.f32 %v2211_v23, %v1964_v54  ;;  %v2221_v58 = vpop.permute.xlu0 %2220  ;;  %v1967_v15 = vand.u32 2147483647, %v1839_v50  ;;  %v2736_v54 = vsub.f32 %v5816_v6, %v1968_v40  ;;  %v1843_v50 = vsub.f32 %v5581_v62, %v5148_v44 }
 0x36e   :  { %v2734_v38 = vsub.f32 %v2221_v58, %v1966_v35  ;;  %v3686_v35 = vld [vmem:[%s6478_s0 + $0x270] sm:$0xff]  ;;  %v858_v40 = vmul.f32 0.5, %v730_v31 }
 0x36f   :  { %v2860_v61 = vmax.f32 %v2732_v37, 0.0  ;;  %v729_v23 = vsub.f32 %v3686_v35, %v7278_v0  ;;  %v7280_v37 = vld [vmem:[#allocation82_spill] sm:$0xff]  ;;  %v1971_v26 = vand.u32 2147483647, %v1843_v50  ;;  %v3690_v31 = vld [vmem:[%s6478_s0 + $0x290] sm:$0xff] }
 0x370   :  { %v2862_v57 = vmax.f32 %v2734_v38, 0.0  ;;  %v1841_v58 = vsub.f32 %v5581_v62, %v7280_v37  ;;  %v7283_v35 = vld [vmem:[#allocation182_spill] sm:$0xff]  ;;  %v7284_v37 = vld [vmem:[#allocation181_spill] sm:$0xff] }
 0x371   :  { %v3292_v19 = vpack.c.bf16 %v2860_v61, %v2859_v52  ;;  %v7281_v52 = vld [vmem:[#allocation71_spill] sm:$0xff] }
 0x372   :  { %v3297_v20 = vpack.c.bf16 %v2862_v57, %v2861_v42  ;;  %2435 = vperm.xlu1 %3606, %v853_v32   ;;  %2440 = vperm.xlu2 %3604, %v854_v47   ;;  %v1842_v61 = vsub.f32 %v5581_v62, %v7281_v52  ;;  %v2864_v32 = vmax.f32 %v2736_v54, 0.0  ;;  %v856_v42 = vmul.f32 0.5, %v728_v9  ;;  %v3688_v54 = vld [vmem:[%s6478_s0 + $0x280] sm:$0xff] }
 0x373   :  { %3552 = vst [vmem:[%s6480_s2 + $0x70] sm:$0xff] %v3292_v19   ;;  %2445 = vperm.xlu0 %3605, %v855_v41   ;;  %v857_v57 = vmul.f32 0.5, %v729_v23  ;;  %v1844_v41 = vsub.f32 %v5581_v62, %v5154_v48  ;;  %v1969_v19 = vand.u32 2147483647, %v1841_v58  ;;  %v731_v9 = vsub.f32 %v3688_v54, %v7282_v18  ;;  %v3689_v48 = vld [vmem:[%s6478_s0 + $0x288] sm:$0xff] }
 0x374   :  { %3553 = vst [vmem:[%s6480_s2 + $0x78] sm:$0xff] %v3297_v20   ;;  %v2226_v6 = vpop.permute.xlu1 %2225  ;;  %v5892_v12 = vpop.permute.xlu2 %2275  ;;  %v732_v0 = vsub.f32 %v3689_v48, %v7283_v35  ;;  %v733_v58 = vsub.f32 %v3690_v31, %v7284_v37  ;;  %v3692_v48 = vld [vmem:[%s6478_s0 + $0x2a0] sm:$0xff]  ;;  %v7287_v35 = vld [vmem:[#allocation185_spill] sm:$0xff]  ;;  %v7288_v31 = vld [vmem:[#allocation88_spill] sm:$0xff] }
 0x375   :  { %v2735_v38 = vsub.f32 %v2226_v6, %v1967_v15  ;;  %v2236_v25 = vpop.permute.xlu0 %2235  ;;  %v1970_v15 = vand.u32 2147483647, %v1842_v61  ;;  %v1972_v23 = vand.u32 2147483647, %v1844_v41  ;;  %v2739_v6 = vsub.f32 %v5841_v21, %v1971_v26  ;;  %v7285_v61 = vld [vmem:[#allocation77_spill] sm:$0xff] }
 0x376   :  { %v2737_v44 = vsub.f32 %v2236_v25, %v1969_v19  ;;  %v861_v19 = vmul.f32 0.5, %v733_v58  ;;  %v1847_v37 = vsub.f32 %v5581_v62, %v7288_v31 }
 0x377   :  { %v2863_v47 = vmax.f32 %v2735_v38, 0.0  ;;  %v1846_v38 = vsub.f32 %v5581_v62, %v5160_v46  ;;  %v2867_v41 = vmax.f32 %v2739_v6, 0.0  ;;  %v3693_v6 = vld [vmem:[%s6478_s0 + $0x2a8] sm:$0xff] }
 0x379   :  { %v3302_v20 = vpack.c.bf16 %v2864_v32, %v2863_v47  ;;  %v1845_v32 = vsub.f32 %v5581_v62, %v7285_v61  ;;  %v2865_v47 = vmax.f32 %v2737_v44, 0.0  ;;  %v7286_v44 = vld [vmem:[#allocation162_spill] sm:$0xff] }
 0x37a   :  { %2450 = vperm.xlu1 %3606, %v856_v42   ;;  %2455 = vperm.xlu2 %3604, %v857_v57   ;;  %v859_v42 = vmul.f32 0.5, %v731_v9  ;;  %v860_v57 = vmul.f32 0.5, %v732_v0  ;;  %v735_v0 = vsub.f32 %v3692_v48, %v7287_v35  ;;  %v3696_v35 = vld [vmem:[%s6478_s0 + $0x2c0] sm:$0xff] }
 0x37b   :  { %3554 = vst [vmem:[%s6480_s2 + $0x80] sm:$0xff] %v3302_v20   ;;  %2460 = vperm.xlu0 %3605, %v858_v40   ;;  %v1974_v20 = vand.u32 2147483647, %v1846_v38  ;;  %v1973_v18 = vand.u32 2147483647, %v1845_v32 }
 0x37c   :  { %v2241_v36 = vpop.permute.xlu1 %2240  ;;  %v5918_v45 = vpop.permute.xlu2 %2290 }
 0x37d   :  { %v2738_v25 = vsub.f32 %v2241_v36, %v1970_v15  ;;  %v2251_v50 = vpop.permute.xlu0 %2250  ;;  %v2742_v46 = vsub.f32 %v5867_v1, %v1974_v20  ;;  %v3691_v15 = vld [vmem:[%s6478_s0 + $0x298] sm:$0xff]  ;;  %v736_v36 = vsub.f32 %v3693_v6, %v4832_v30  ;;  %v1975_v30 = vand.u32 2147483647, %v1847_v37  ;;  %v3694_v20 = vld [vmem:[%s6478_s0 + $0x2b0] sm:$0xff] }
 0x37e   :  { %v2740_v52 = vsub.f32 %v2251_v50, %v1972_v23  ;;  %v734_v9 = vsub.f32 %v3691_v15, %v7286_v44  ;;  %v7289_v50 = vld [vmem:[#allocation83_spill] sm:$0xff]  ;;  %v1852_v6 = vsub.f32 %v5581_v62, %v5184_v56 }
 0x37f   :  { %v2866_v21 = vmax.f32 %v2738_v25, 0.0  ;;  %v1849_v25 = vsub.f32 %v5581_v62, %v5172_v39  ;;  %v2870_v61 = vmax.f32 %v2742_v46, 0.0 }
 0x380   :  { %v2868_v40 = vmax.f32 %v2740_v52, 0.0  ;;  %v1848_v52 = vsub.f32 %v5581_v62, %v7289_v50 }
 0x381   :  { %v3307_v26 = vpack.c.bf16 %v2866_v21, %v2865_v47  ;;  %v862_v47 = vmul.f32 0.5, %v734_v9  ;;  %v863_v21 = vmul.f32 0.5, %v735_v0  ;;  %v7292_v0 = vld [vmem:[#allocation187_spill] sm:$0xff] }
 0x382   :  { %v3312_v54 = vpack.c.bf16 %v2868_v40, %v2867_v41  ;;  %2465 = vperm.xlu1 %3606, %v859_v42   ;;  %2470 = vperm.xlu2 %3604, %v860_v57   ;;  %v1850_v42 = vsub.f32 %v5581_v62, %v5178_v60  ;;  %v864_v57 = vmul.f32 0.5, %v736_v36  ;;  %v1977_v40 = vand.u32 2147483647, %v1849_v25  ;;  %v3695_v60 = vld [vmem:[%s6478_s0 + $0x2b8] sm:$0xff] }
 0x383   :  { %3555 = vst [vmem:[%s6480_s2 + $0x88] sm:$0xff] %v3307_v26   ;;  %2475 = vperm.xlu0 %3605, %v861_v19   ;;  %v1976_v19 = vand.u32 2147483647, %v1848_v52  ;;  %v7290_v26 = vld [vmem:[#allocation168_spill] sm:$0xff] }
 0x384   :  { %3556 = vst [vmem:[%s6480_s2 + $0x90] sm:$0xff] %v3312_v54   ;;  %v2256_v1 = vpop.permute.xlu1 %2255  ;;  %v5943_v23 = vpop.permute.xlu2 %2305  ;;  %v737_v54 = vsub.f32 %v3694_v20, %v7290_v26  ;;  %v1978_v15 = vand.u32 2147483647, %v1850_v42  ;;  %v2745_v44 = vsub.f32 %v5892_v12, %v1977_v40  ;;  %v7294_v40 = vld [vmem:[#allocation174_spill] sm:$0xff] }
 0x385   :  { %v2741_v58 = vsub.f32 %v2256_v1, %v1973_v18  ;;  %v2266_v38 = vpop.permute.xlu0 %2265  ;;  %v7291_v18 = vld [vmem:[#allocation188_spill] sm:$0xff]  ;;  %v739_v1 = vsub.f32 %v3696_v35, %v7292_v0  ;;  %v7295_v20 = vld [vmem:[#allocation190_spill] sm:$0xff]  ;;  %v7296_v35 = vld [vmem:[#allocation87_spill] sm:$0xff] }
 0x386   :  { %v2743_v39 = vsub.f32 %v2266_v38, %v1975_v30  ;;  %v738_v46 = vsub.f32 %v3695_v60, %v7291_v18  ;;  %v865_v50 = vmul.f32 0.5, %v737_v54  ;;  %v3699_v60 = vld [vmem:[%s6478_s0 + $0x2d8] sm:$0xff]  ;;  %v1854_v0 = vsub.f32 %v5581_v62, %v7296_v35 }
 0x387   :  { %v2869_v32 = vmax.f32 %v2741_v58, 0.0  ;;  %v7293_v58 = vld [vmem:[#allocation89_spill] sm:$0xff]  ;;  %v742_v18 = vsub.f32 %v3699_v60, %v4856_v28 }
 0x388   :  { %v1851_v38 = vsub.f32 %v5581_v62, %v7293_v58  ;;  %v2871_v25 = vmax.f32 %v2743_v39, 0.0  ;;  %v866_v52 = vmul.f32 0.5, %v738_v46  ;;  %v3698_v39 = vld [vmem:[%s6478_s0 + $0x2d0] sm:$0xff]  ;;  %v1853_v46 = vsub.f32 %v5581_v62, %v5190_v59 }
 0x389   :  { %v3317_v41 = vpack.c.bf16 %v2870_v61, %v2869_v32  ;;  %v2873_v61 = vmax.f32 %v2745_v44, 0.0  ;;  %v741_v26 = vsub.f32 %v3698_v39, %v7295_v20  ;;  %v870_v58 = vmul.f32 0.5, %v742_v18  ;;  %v7299_v20 = vld [vmem:[#allocation95_spill] sm:$0xff] }
 0x38a   :  { %2480 = vperm.xlu1 %3606, %v862_v47   ;;  %2485 = vperm.xlu2 %3604, %v863_v21   ;;  %v867_v47 = vmul.f32 0.5, %v739_v1  ;;  %v1980_v21 = vand.u32 2147483647, %v1852_v6  ;;  %v1979_v30 = vand.u32 2147483647, %v1851_v38 }
 0x38b   :  { %3557 = vst [vmem:[%s6480_s2 + $0x98] sm:$0xff] %v3317_v41   ;;  %2490 = vperm.xlu0 %3605, %v864_v57   ;;  %v3697_v41 = vld [vmem:[%s6478_s0 + $0x2c8] sm:$0xff]  ;;  %v1981_v28 = vand.u32 2147483647, %v1853_v46  ;;  %v1982_v59 = vand.u32 2147483647, %v1854_v0 }
 0x38c   :  { %v2271_v9 = vpop.permute.xlu1 %2270  ;;  %v5969_v48 = vpop.permute.xlu2 %2320  ;;  %v2748_v56 = vsub.f32 %v5918_v45, %v1980_v21 }
 0x38d   :  { %v2744_v36 = vsub.f32 %v2271_v9, %v1976_v19  ;;  %v2281_v31 = vpop.permute.xlu0 %2280  ;;  %v740_v19 = vsub.f32 %v3697_v41, %v7294_v40  ;;  %v1855_v9 = vsub.f32 %v5581_v62, %v5196_v43  ;;  %v1858_v41 = vsub.f32 %v5581_v62, %v5208_v63 }
 0x38e   :  { %v2746_v37 = vsub.f32 %v2281_v31, %v1978_v15  ;;  %v2876_v1 = vmax.f32 %v2748_v56, 0.0  ;;  %v869_v31 = vmul.f32 0.5, %v741_v26  ;;  %v1857_v26 = vsub.f32 %v5581_v62, %v7299_v20  ;;  %v7304_v20 = vld [vmem:[#allocation196_spill] sm:$0xff] }
 0x38f   :  { %v2872_v12 = vmax.f32 %v2744_v36, 0.0  ;;  %v868_v36 = vmul.f32 0.5, %v740_v19 }
 0x390   :  { %v2874_v32 = vmax.f32 %v2746_v37, 0.0  ;;  %v1856_v37 = vsub.f32 %v5581_v62, %v5202_v22  ;;  %v3701_v22 = vld [vmem:[%s6478_s0 + $0x2e8] sm:$0xff] }
 0x391   :  { %v3322_v42 = vpack.c.bf16 %v2872_v12, %v2871_v25  ;;  %v1983_v25 = vand.u32 2147483647, %v1855_v9  ;;  %v3700_v12 = vld [vmem:[%s6478_s0 + $0x2e0] sm:$0xff]  ;;  %v1986_v9 = vand.u32 2147483647, %v1858_v41 }
 0x392   :  { %v3327_v57 = vpack.c.bf16 %v2874_v32, %v2873_v61  ;;  %2495 = vperm.xlu1 %3606, %v865_v50   ;;  %2500 = vperm.xlu2 %3604, %v866_v52   ;;  %v7297_v50 = vld [vmem:[#allocation180_spill] sm:$0xff] }
 0x393   :  { %3558 = vst [vmem:[%s6480_s2 + $0xa0] sm:$0xff] %v3322_v42   ;;  %2505 = vperm.xlu0 %3605, %v867_v47   ;;  %v743_v52 = vsub.f32 %v3700_v12, %v7297_v50  ;;  %v7298_v61 = vld [vmem:[#allocation192_spill] sm:$0xff]  ;;  %v1984_v47 = vand.u32 2147483647, %v1856_v37  ;;  %v2751_v21 = vsub.f32 %v5943_v23, %v1983_v25  ;;  %v2754_v63 = vsub.f32 %v5969_v48, %v1986_v9  ;;  %v7301_v37 = vld [vmem:[#allocation194_spill] sm:$0xff] }
 0x394   :  { %3559 = vst [vmem:[%s6480_s2 + $0xa8] sm:$0xff] %v3327_v57   ;;  %v2286_v45 = vpop.permute.xlu1 %2285  ;;  %v5994_v54 = vpop.permute.xlu2 %2335  ;;  %v744_v32 = vsub.f32 %v3701_v22, %v7298_v61  ;;  %v1861_v50 = vsub.f32 %v5581_v62, %v5220_v5 }
 0x395   :  { %v2747_v15 = vsub.f32 %v2286_v45, %v1979_v30  ;;  %v2296_v44 = vpop.permute.xlu0 %2295  ;;  %v3702_v30 = vld [vmem:[%s6478_s0 + $0x2f0] sm:$0xff]  ;;  %v871_v60 = vmul.f32 0.5, %v743_v52  ;;  %v2879_v46 = vmax.f32 %v2751_v21, 0.0  ;;  %v7302_v52 = vld [vmem:[#allocation93_spill] sm:$0xff]  ;;  %v2882_v61 = vmax.f32 %v2754_v63, 0.0 }
 0x396   :  { %v2749_v43 = vsub.f32 %v2296_v44, %v1981_v28  ;;  %v745_v56 = vsub.f32 %v3702_v30, %v4868_v2  ;;  %v872_v18 = vmul.f32 0.5, %v744_v32  ;;  %v1985_v2 = vand.u32 2147483647, %v1857_v26 }
 0x397   :  { %v2875_v6 = vmax.f32 %v2747_v15, 0.0  ;;  %v1860_v22 = vsub.f32 %v5581_v62, %v7302_v52  ;;  %v1989_v41 = vand.u32 2147483647, %v1861_v50  ;;  %v3711_v50 = vld [vmem:[%s6478_s0 + $0x330] sm:$0xff]  ;;  %v7307_v52 = vld [vmem:[#allocation198_spill] sm:$0xff] }
 0x398   :  { %v2877_v45 = vmax.f32 %v2749_v43, 0.0  ;;  %v873_v44 = vmul.f32 0.5, %v745_v56 }
 0x399   :  { %v3332_v38 = vpack.c.bf16 %v2876_v1, %v2875_v6  ;;  %v3703_v1 = vld [vmem:[%s6478_s0 + $0x2f8] sm:$0xff]  ;;  %v7300_v6 = vld [vmem:[#allocation184_spill] sm:$0xff] }
 0x39a   :  { %2510 = vperm.xlu1 %3606, %v868_v36   ;;  %2515 = vperm.xlu2 %3604, %v869_v31   ;;  %v746_v36 = vsub.f32 %v3703_v1, %v7300_v6  ;;  %v3704_v31 = vld [vmem:[%s6478_s0 + $0x300] sm:$0xff] }
 0x39b   :  { %3560 = vst [vmem:[%s6480_s2 + $0xb0] sm:$0xff] %v3332_v38   ;;  %2520 = vperm.xlu0 %3605, %v870_v58   ;;  %v747_v58 = vsub.f32 %v3704_v31, %v7301_v37  ;;  %v3705_v38 = vld [vmem:[%s6478_s0 + $0x308] sm:$0xff] }
 0x39c   :  { %v2301_v42 = vpop.permute.xlu1 %2300  ;;  %v6020_v57 = vpop.permute.xlu2 %2350  ;;  %v748_v25 = vsub.f32 %v3705_v38, %v4880_v4 }
 0x39d   :  { %v2750_v40 = vsub.f32 %v2301_v42, %v1982_v59  ;;  %v2311_v19 = vpop.permute.xlu0 %2310  ;;  %v1859_v59 = vsub.f32 %v5581_v62, %v5214_v51  ;;  %v875_v21 = vmul.f32 0.5, %v747_v58  ;;  %v1862_v42 = vsub.f32 %v5581_v62, %v5226_v24  ;;  %v3707_v24 = vld [vmem:[%s6478_s0 + $0x318] sm:$0xff] }
 0x39e   :  { %v2752_v39 = vsub.f32 %v2311_v19, %v1984_v47  ;;  %v874_v47 = vmul.f32 0.5, %v746_v36  ;;  %v876_v30 = vmul.f32 0.5, %v748_v25  ;;  %v1988_v51 = vand.u32 2147483647, %v1860_v22  ;;  %v7303_v19 = vld [vmem:[#allocation186_spill] sm:$0xff] }
 0x39f   :  { %v2878_v23 = vmax.f32 %v2750_v40, 0.0  ;;  %v1987_v4 = vand.u32 2147483647, %v1859_v59  ;;  %v3706_v40 = vld [vmem:[%s6478_s0 + $0x310] sm:$0xff]  ;;  %v750_v26 = vsub.f32 %v3707_v24, %v7304_v20  ;;  %v3710_v59 = vld [vmem:[%s6478_s0 + $0x328] sm:$0xff]  ;;  %v753_v22 = vsub.f32 %v3711_v50, %v7307_v52  ;;  %v3716_v50 = vld [vmem:[%s6478_s0 + $0x358] sm:$0xff] }
 0x3a0   :  { %v2880_v15 = vmax.f32 %v2752_v39, 0.0  ;;  %v749_v39 = vsub.f32 %v3706_v40, %v7303_v19  ;;  %v7312_v52 = vld [vmem:[#allocation193_spill] sm:$0xff] }
 0x3a1   :  { %v3337_v35 = vpack.c.bf16 %v2878_v23, %v2877_v45  ;;  %v1990_v45 = vand.u32 2147483647, %v1862_v42  ;;  %v2757_v23 = vsub.f32 %v5994_v54, %v1989_v41  ;;  %v7305_v54 = vld [vmem:[#allocation94_spill] sm:$0xff]  ;;  %v878_v31 = vmul.f32 0.5, %v750_v26 }
 0x3a2   :  { %v3342_v0 = vpack.c.bf16 %v2880_v15, %v2879_v46  ;;  %2525 = vperm.xlu1 %3606, %v871_v60   ;;  %2530 = vperm.xlu2 %3604, %v872_v18   ;;  %v3708_v46 = vld [vmem:[%s6478_s0 + $0x320] sm:$0xff]  ;;  %v877_v36 = vmul.f32 0.5, %v749_v39  ;;  %v881_v19 = vmul.f32 0.5, %v753_v22  ;;  %v758_v22 = vsub.f32 %v3716_v50, %v7312_v52  ;;  %v3723_v50 = vld [vmem:[%s6478_s0 + $0x390] sm:$0xff] }
 0x3a3   :  { %3561 = vst [vmem:[%s6480_s2 + $0xb8] sm:$0xff] %v3337_v35   ;;  %2535 = vperm.xlu0 %3605, %v873_v44   ;;  %v751_v15 = vsub.f32 %v3708_v46, %v4892_v3  ;;  %v1864_v44 = vsub.f32 %v5581_v62, %v5232_v8  ;;  %v2885_v37 = vmax.f32 %v2757_v23, 0.0  ;;  %v7309_v23 = vld [vmem:[#allocation191_spill] sm:$0xff]  ;;  %v7310_v46 = vld [vmem:[#allocation200_spill] sm:$0xff] }
 0x3a4   :  { %3562 = vst [vmem:[%s6480_s2 + $0xc0] sm:$0xff] %v3342_v0   ;;  %v2316_v48 = vpop.permute.xlu1 %2315  ;;  %v6045_v28 = vpop.permute.xlu2 %2365  ;;  %v7319_v52 = vld [vmem:[#allocation4_spill] sm:$0xff] }
 0x3a5   :  { %v2753_v43 = vsub.f32 %v2316_v48, %v1985_v2  ;;  %v2326_v12 = vpop.permute.xlu0 %2325  ;;  %v6082_v2 = vld [vmem:[%s6479_s1] ss:$0 sm:$0xff]  ;;  %v879_v58 = vmul.f32 0.5, %v751_v15  ;;  %v1992_v48 = vand.u32 2147483647, %v1864_v44 }
 0x3a6   :  { %v2755_v5 = vsub.f32 %v2326_v12, %v1987_v4  ;;  %v1863_v63 = vsub.f32 %v6082_v2, %v7305_v54  ;;  %v1867_v4 = vsub.f32 %v6082_v2, %v5244_v11  ;;  %v1868_v39 = vsub.f32 %v6082_v2, %v5250_v49  ;;  %v3714_v49 = vld [vmem:[%s6478_s0 + $0x348] sm:$0xff]  ;;  %v3715_v54 = vld [vmem:[%s6478_s0 + $0x350] sm:$0xff] }
 0x3a7   :  { %v2881_v32 = vmax.f32 %v2753_v43, 0.0  ;;  %v2760_v25 = vsub.f32 %v6020_v57, %v1992_v48  ;;  %v7306_v43 = vld [vmem:[#allocation189_spill] sm:$0xff]  ;;  %v756_v15 = vsub.f32 %v3714_v49, %v7310_v46  ;;  %v7316_v49 = vld [vmem:[#allocation3_spill] sm:$0xff] }
 0x3a8   :  { %v2883_v1 = vmax.f32 %v2755_v5, 0.0  ;;  %v1991_v38 = vand.u32 2147483647, %v1863_v63  ;;  %v752_v12 = vsub.f32 %v3710_v59, %v7306_v43  ;;  %v1995_v26 = vand.u32 2147483647, %v1867_v4 }
 0x3a9   :  { %v3347_v56 = vpack.c.bf16 %v2882_v61, %v2881_v32  ;;  %v3712_v32 = vld [vmem:[%s6478_s0 + $0x338] sm:$0xff]  ;;  %v1996_v44 = vand.u32 2147483647, %v1868_v39  ;;  %v757_v63 = vsub.f32 %v3715_v54, %v4916_v10  ;;  %v1871_v4 = vsub.f32 %v6082_v2, %v5262_v16  ;;  %v3721_v54 = vld [vmem:[%s6478_s0 + $0x380] sm:$0xff] }
 0x3aa   :  { %2540 = vperm.xlu1 %3606, %v874_v47   ;;  %2545 = vperm.xlu2 %3604, %v875_v21   ;;  %v754_v47 = vsub.f32 %v3712_v32, %v4904_v7  ;;  %v1865_v21 = vsub.f32 %v6082_v2, %v5238_v29  ;;  %v880_v40 = vmul.f32 0.5, %v752_v12  ;;  %v7313_v32 = vld [vmem:[#allocation202_spill] sm:$0xff] }
 0x3ab   :  { %3563 = vst [vmem:[%s6480_s2 + $0xc8] sm:$0xff] %v3347_v56   ;;  %2550 = vperm.xlu0 %3605, %v876_v30   ;;  %v7308_v56 = vld [vmem:[#allocation101_spill] sm:$0xff] }
 0x3ac   :  { %v2331_v60 = vpop.permute.xlu1 %2330  ;;  %v6071_v18 = vpop.permute.xlu2 %2380  ;;  %v1866_v41 = vsub.f32 %v6082_v2, %v7308_v56  ;;  %v882_v24 = vmul.f32 0.5, %v754_v47  ;;  %v1993_v7 = vand.u32 2147483647, %v1865_v21 }
 0x3ad   :  { %v2756_v9 = vsub.f32 %v2331_v60, %v1988_v51  ;;  %v2341_v35 = vpop.permute.xlu0 %2340  ;;  %v2888_v51 = vmax.f32 %v2760_v25, 0.0  ;;  %v885_v25 = vmul.f32 0.5, %v757_v63  ;;  %v763_v63 = vsub.f32 %v3721_v54, %v4940_v53 }
 0x3ae   :  { %v2758_v0 = vsub.f32 %v2341_v35, %v1990_v45  ;;  %v1994_v29 = vand.u32 2147483647, %v1866_v41  ;;  %v3713_v45 = vld [vmem:[%s6478_s0 + $0x340] sm:$0xff] }
 0x3af   :  { %v2884_v6 = vmax.f32 %v2756_v9, 0.0  ;;  %v755_v60 = vsub.f32 %v3713_v45, %v7309_v23  ;;  %v2763_v9 = vsub.f32 %v6045_v28, %v1995_v26  ;;  %v3719_v45 = vld [vmem:[%s6478_s0 + $0x370] sm:$0xff]  ;;  %v7315_v23 = vld [vmem:[#allocation195_spill] sm:$0xff] }
 0x3b0   :  { %v2886_v3 = vmax.f32 %v2758_v0, 0.0 }
 0x3b1   :  { %v3352_v8 = vpack.c.bf16 %v2884_v6, %v2883_v1  ;;  %v1870_v1 = vsub.f32 %v6082_v2, %v5256_v14  ;;  %v883_v48 = vmul.f32 0.5, %v755_v60  ;;  %v761_v60 = vsub.f32 %v3719_v45, %v7315_v23  ;;  %v3726_v45 = vld [vmem:[%s6478_s0 + $0x3a8] sm:$0xff] }
 0x3b2   :  { %v3357_v62 = vpack.c.bf16 %v2886_v3, %v2885_v37  ;;  %2555 = vperm.xlu1 %3606, %v877_v36   ;;  %2560 = vperm.xlu2 %3604, %v878_v31   ;;  %v7311_v37 = vld [vmem:[#allocation99_spill] sm:$0xff] }
 0x3b3   :  { %3564 = vst [vmem:[%s6480_s2 + $0xd0] sm:$0xff] %v3352_v8   ;;  %2565 = vperm.xlu0 %3605, %v879_v58   ;;  %v1869_v3 = vsub.f32 %v6082_v2, %v7311_v37  ;;  %v884_v8 = vmul.f32 0.5, %v756_v15  ;;  %v1998_v59 = vand.u32 2147483647, %v1870_v1  ;;  %v1876_v1 = vsub.f32 %v6082_v2, %v5280_v34  ;;  %v7317_v37 = vld [vmem:[#allocation107_spill] sm:$0xff] }
 0x3b4   :  { %3565 = vst [vmem:[%s6480_s2 + $0xd8] sm:$0xff] %v3357_v62   ;;  %v2346_v57 = vpop.permute.xlu1 %2345  ;;  %v6101_v61 = vpop.permute.xlu2 %2395  ;;  %v2891_v62 = vmax.f32 %v2763_v9, 0.0  ;;  %v7324_v23 = vld [vmem:[#allocation7_spill] sm:$0xff] }
 0x3b5   :  { %v2759_v42 = vsub.f32 %v2346_v57, %v1991_v38  ;;  %v2356_v30 = vpop.permute.xlu0 %2355  ;;  %v1997_v10 = vand.u32 2147483647, %v1869_v3  ;;  %v2766_v14 = vsub.f32 %v6071_v18, %v1998_v59  ;;  %v3717_v57 = vld [vmem:[%s6478_s0 + $0x360] sm:$0xff]  ;;  %v1875_v3 = vsub.f32 %v6082_v2, %v7317_v37 }
 0x3b6   :  { %v2761_v11 = vsub.f32 %v2356_v30, %v1993_v7  ;;  %v759_v47 = vsub.f32 %v3717_v57, %v7313_v32  ;;  %v3724_v32 = vld [vmem:[%s6478_s0 + $0x398] sm:$0xff]  ;;  %v7327_v37 = vld [vmem:[#allocation106_spill] sm:$0xff] }
 0x3b7   :  { %v2887_v5 = vmax.f32 %v2759_v42, 0.0  ;;  %v3718_v42 = vld [vmem:[%s6478_s0 + $0x368] sm:$0xff]  ;;  %v2003_v53 = vand.u32 2147483647, %v1875_v3  ;;  %v1881_v3 = vsub.f32 %v6082_v2, %v7327_v37 }
 0x3b8   :  { %v2889_v58 = vmax.f32 %v2761_v11, 0.0  ;;  %v760_v30 = vsub.f32 %v3718_v42, %v4928_v13  ;;  %v887_v7 = vmul.f32 0.5, %v759_v47  ;;  %v1999_v13 = vand.u32 2147483647, %v1871_v4  ;;  %v7320_v4 = vld [vmem:[#allocation112_spill] sm:$0xff] }
 0x3b9   :  { %v3362_v20 = vpack.c.bf16 %v2888_v51, %v2887_v5  ;;  %v1873_v51 = vsub.f32 %v6082_v2, %v5268_v17  ;;  %v7314_v5 = vld [vmem:[#allocation100_spill] sm:$0xff]  ;;  %v766_v47 = vsub.f32 %v3724_v32, %v4952_v33 }
 0x3ba   :  { %2570 = vperm.xlu1 %3606, %v880_v40   ;;  %2575 = vperm.xlu2 %3604, %v881_v19   ;;  %v1872_v40 = vsub.f32 %v6082_v2, %v7314_v5  ;;  %v2894_v19 = vmax.f32 %v2766_v14, 0.0  ;;  %v888_v26 = vmul.f32 0.5, %v760_v30  ;;  %v7330_v32 = vld [vmem:[#allocation8_spill] sm:$0xff] }
 0x3bb   :  { %3566 = vst [vmem:[%s6480_s2 + $0xe0] sm:$0xff] %v3362_v20   ;;  %2580 = vperm.xlu0 %3605, %v882_v24   ;;  %v886_v24 = vmul.f32 0.5, %v758_v22  ;;  %v1874_v20 = vsub.f32 %v6082_v2, %v5274_v27  ;;  %v2001_v11 = vand.u32 2147483647, %v1873_v51  ;;  %v3720_v27 = vld [vmem:[%s6478_s0 + $0x378] sm:$0xff]  ;;  %v765_v22 = vsub.f32 %v3723_v50, %v7319_v52  ;;  %v7329_v50 = vld [vmem:[#allocation10_spill] sm:$0xff] }
 0x3bc   :  { %v2361_v35 = vpop.permute.xlu1 %2360  ;;  %v6127_v0 = vpop.permute.xlu2 %2410  ;;  %v2000_v16 = vand.u32 2147483647, %v1872_v40  ;;  %v762_v46 = vsub.f32 %v3720_v27, %v7316_v49 }
 0x3bd   :  { %v2762_v6 = vsub.f32 %v2361_v35, %v1994_v29  ;;  %v2371_v36 = vpop.permute.xlu0 %2370  ;;  %v2002_v15 = vand.u32 2147483647, %v1874_v20  ;;  %v894_v20 = vmul.f32 0.5, %v766_v47 }
 0x3be   :  { %v2764_v31 = vsub.f32 %v2371_v36, %v1996_v44  ;;  %v2769_v44 = vsub.f32 %v6101_v61, %v2001_v11  ;;  %v3725_v11 = vld [vmem:[%s6478_s0 + $0x3a0] sm:$0xff] }
 0x3bf   :  { %v2890_v28 = vmax.f32 %v2762_v6, 0.0 }
 0x3c0   :  { %v2892_v38 = vmax.f32 %v2764_v31, 0.0 }
 0x3c1   :  { %v3367_v43 = vpack.c.bf16 %v2890_v28, %v2889_v58  ;;  %v889_v28 = vmul.f32 0.5, %v761_v60  ;;  %v768_v60 = vsub.f32 %v3726_v45, %v7324_v23  ;;  %v3732_v23 = vld [vmem:[%s6478_s0 + $0x3d8] sm:$0xff] }
 0x3c2   :  { %v3372_v12 = vpack.c.bf16 %v2892_v38, %v2891_v62  ;;  %2585 = vperm.xlu1 %3606, %v883_v48   ;;  %2590 = vperm.xlu2 %3604, %v884_v8   ;;  %v890_v48 = vmul.f32 0.5, %v762_v46  ;;  %v2897_v8 = vmax.f32 %v2769_v44, 0.0  ;;  %v891_v38 = vmul.f32 0.5, %v763_v63  ;;  %v3727_v44 = vld [vmem:[%s6478_s0 + $0x3b0] sm:$0xff]  ;;  %v7326_v63 = vld [vmem:[#allocation118_spill] sm:$0xff] }
 0x3c3   :  { %3567 = vst [vmem:[%s6480_s2 + $0xe8] sm:$0xff] %v3367_v43   ;;  %2595 = vperm.xlu0 %3605, %v885_v25   ;;  %v2004_v25 = vand.u32 2147483647, %v1876_v1  ;;  %v1882_v1 = vsub.f32 %v6082_v2, %v7326_v63  ;;  %v7337_v63 = vld [vmem:[#allocation11_spill] sm:$0xff] }
 0x3c4   :  { %3568 = vst [vmem:[%s6480_s2 + $0xf0] sm:$0xff] %v3372_v12   ;;  %v2376_v18 = vpop.permute.xlu1 %2375  ;;  %v6152_v21 = vpop.permute.xlu2 %2425  ;;  %v3722_v12 = vld [vmem:[%s6478_s0 + $0x388] sm:$0xff] }
 0x3c5   :  { %v2765_v56 = vsub.f32 %v2376_v18, %v1997_v10  ;;  %v2386_v41 = vpop.permute.xlu0 %2385  ;;  %v2772_v34 = vsub.f32 %v6127_v0, %v2004_v25  ;;  %v7318_v10 = vld [vmem:[#allocation197_spill] sm:$0xff]  ;;  %v1877_v18 = vsub.f32 %v6082_v2, %v5286_v55 }
 0x3c6   :  { %v2767_v17 = vsub.f32 %v2386_v41, %v1999_v13  ;;  %v764_v14 = vsub.f32 %v3722_v12, %v7318_v10  ;;  %v7321_v41 = vld [vmem:[#allocation105_spill] sm:$0xff] }
 0x3c7   :  { %v2893_v39 = vmax.f32 %v2765_v56, 0.0  ;;  %v1879_v56 = vsub.f32 %v6082_v2, %v7320_v4  ;;  %v1878_v51 = vsub.f32 %v6082_v2, %v7321_v41  ;;  %v2900_v5 = vmax.f32 %v2772_v34, 0.0  ;;  %v3728_v34 = vld [vmem:[%s6478_s0 + $0x3b8] sm:$0xff] }
 0x3c8   :  { %v2895_v58 = vmax.f32 %v2767_v17, 0.0  ;;  %v2005_v33 = vand.u32 2147483647, %v1877_v18  ;;  %v7328_v12 = vld [vmem:[#allocation201_spill] sm:$0xff] }
 0x3c9   :  { %v3377_v29 = vpack.c.bf16 %v2894_v19, %v2893_v39  ;;  %v892_v19 = vmul.f32 0.5, %v764_v14  ;;  %v893_v39 = vmul.f32 0.5, %v765_v22  ;;  %v2007_v13 = vand.u32 2147483647, %v1879_v56  ;;  %v3729_v14 = vld [vmem:[%s6478_s0 + $0x3c0] sm:$0xff]  ;;  %v7331_v18 = vld [vmem:[#allocation125_spill] sm:$0xff] }
 0x3ca   :  { %2600 = vperm.xlu1 %3606, %v886_v24   ;;  %2605 = vperm.xlu2 %3604, %v887_v7   ;;  %v7322_v24 = vld [vmem:[#allocation119_spill] sm:$0xff]  ;;  %v2006_v55 = vand.u32 2147483647, %v1878_v51  ;;  %v770_v10 = vsub.f32 %v3728_v34, %v7328_v12  ;;  %v771_v52 = vsub.f32 %v3729_v14, %v7329_v50  ;;  %v7332_v56 = vld [vmem:[#allocation124_spill] sm:$0xff]  ;;  %v7333_v51 = vld [vmem:[#allocation113_spill] sm:$0xff] }
 0x3cb   :  { %3569 = vst [vmem:[%s6480_s2 + $0xf8] sm:$0xff] %v3377_v29   ;;  %2610 = vperm.xlu0 %3605, %v888_v26   ;;  %v1880_v7 = vsub.f32 %v6082_v2, %v7322_v24  ;;  %v2775_v49 = vsub.f32 %v6152_v21, %v2007_v13  ;;  %v1885_v41 = vsub.f32 %v6082_v2, %v7332_v56  ;;  %v3734_v12 = vld [vmem:[%s6478_s0 + $0x3e8] sm:$0xff]  ;;  %v3735_v50 = vld [vmem:[%s6478_s0 + $0x3f0] sm:$0xff] }
 0x3cc   :  { %v2391_v9 = vpop.permute.xlu1 %2390  ;;  %v6178_v35 = vpop.permute.xlu2 %2440  ;;  %v899_v24 = vmul.f32 0.5, %v771_v52  ;;  %v7341_v52 = vld [vmem:[#allocation17_spill] sm:$0xff] }
 0x3cd   :  { %v2768_v6 = vsub.f32 %v2391_v9, %v2000_v16  ;;  %v2401_v36 = vpop.permute.xlu0 %2400  ;;  %v7323_v16 = vld [vmem:[#allocation199_spill] sm:$0xff]  ;;  %v2008_v27 = vand.u32 2147483647, %v1880_v7  ;;  %v7325_v9 = vld [vmem:[#allocation5_spill] sm:$0xff] }
 0x3ce   :  { %v2770_v31 = vsub.f32 %v2401_v36, %v2002_v15  ;;  %v767_v17 = vsub.f32 %v3725_v11, %v7323_v16  ;;  %v769_v54 = vsub.f32 %v3727_v44, %v7325_v9  ;;  %v7334_v7 = vld [vmem:[#allocation131_spill] sm:$0xff]  ;;  %v3731_v16 = vld [vmem:[%s6478_s0 + $0x3d0] sm:$0xff] }
 0x3cf   :  { %v2896_v61 = vmax.f32 %v2768_v6, 0.0 }
 0x3d0   :  { %v2898_v62 = vmax.f32 %v2770_v31, 0.0 }
 0x3d1   :  { %v3382_v59 = vpack.c.bf16 %v2896_v61, %v2895_v58  ;;  %v895_v61 = vmul.f32 0.5, %v767_v17  ;;  %v7335_v17 = vld [vmem:[#allocation2_spill] sm:$0xff] }
 0x3d2   :  { %v3387_v43 = vpack.c.bf16 %v2898_v62, %v2897_v8  ;;  %2615 = vperm.xlu1 %3606, %v889_v28   ;;  %2620 = vperm.xlu2 %3604, %v890_v48   ;;  %v896_v28 = vmul.f32 0.5, %v768_v60  ;;  %v2903_v48 = vmax.f32 %v2775_v49, 0.0  ;;  %v897_v62 = vmul.f32 0.5, %v769_v54  ;;  %v7336_v60 = vld [vmem:[#allocation13_spill] sm:$0xff]  ;;  %v3733_v54 = vld [vmem:[%s6478_s0 + $0x3e0] sm:$0xff] }
 0x3d3   :  { %3570 = vst [vmem:[%s6480_s2 + $0x100] sm:$0xff] %v3382_v59   ;;  %2625 = vperm.xlu0 %3605, %v891_v38   ;;  %v2010_v38 = vand.u32 2147483647, %v1882_v1  ;;  %v773_v45 = vsub.f32 %v3731_v16, %v7335_v17  ;;  %v775_v1 = vsub.f32 %v3733_v54, %v7337_v63  ;;  %v7348_v63 = vld [vmem:[#allocation123_spill] sm:$0xff] }
 0x3d4   :  { %3571 = vst [vmem:[%s6480_s2 + $0x108] sm:$0xff] %v3387_v43   ;;  %v2406_v0 = vpop.permute.xlu1 %2405  ;;  %v6203_v57 = vpop.permute.xlu2 %2455  ;;  %v2009_v43 = vand.u32 2147483647, %v1881_v3 }
 0x3d5   :  { %v2771_v42 = vsub.f32 %v2406_v0, %v2003_v53  ;;  %v2416_v30 = vpop.permute.xlu0 %2415  ;;  %v2778_v53 = vsub.f32 %v6178_v35, %v2010_v38  ;;  %v3730_v0 = vld [vmem:[%s6478_s0 + $0x3c8] sm:$0xff]  ;;  %v903_v38 = vmul.f32 0.5, %v775_v1  ;;  %v1893_v1 = vsub.f32 %v6082_v2, %v7348_v63 }
 0x3d6   :  { %v2773_v29 = vsub.f32 %v2416_v30, %v2005_v33  ;;  %v772_v47 = vsub.f32 %v3730_v0, %v7330_v32  ;;  %v3736_v32 = vld [vmem:[%s6478_s0 + $0x3f8] sm:$0xff] }
 0x3d7   :  { %v2899_v40 = vmax.f32 %v2771_v42, 0.0  ;;  %v1883_v42 = vsub.f32 %v6082_v2, %v7331_v18 }
 0x3d8   :  { %v2901_v58 = vmax.f32 %v2773_v29, 0.0  ;;  %v900_v33 = vmul.f32 0.5, %v772_v47  ;;  %v7342_v47 = vld [vmem:[#allocation14_spill] sm:$0xff] }
 0x3d9   :  { %v3392_v26 = vpack.c.bf16 %v2900_v5, %v2899_v40  ;;  %v1884_v5 = vsub.f32 %v6082_v2, %v7333_v51  ;;  %v2906_v40 = vmax.f32 %v2778_v53, 0.0  ;;  %v778_v18 = vsub.f32 %v3736_v32, %v7342_v47 }
 0x3da   :  { %2630 = vperm.xlu1 %3606, %v892_v19   ;;  %2635 = vperm.xlu2 %3604, %v893_v39   ;;  %v898_v39 = vmul.f32 0.5, %v770_v10  ;;  %v7340_v10 = vld [vmem:[#allocation6_spill] sm:$0xff] }
 0x3db   :  { %3572 = vst [vmem:[%s6480_s2 + $0x110] sm:$0xff] %v3392_v26   ;;  %2640 = vperm.xlu0 %3605, %v894_v20   ;;  %v1886_v20 = vsub.f32 %v6082_v2, %v7334_v7  ;;  %v2011_v26 = vand.u32 2147483647, %v1883_v42  ;;  %v2012_v29 = vand.u32 2147483647, %v1884_v5  ;;  %v776_v14 = vsub.f32 %v3734_v12, %v7340_v10  ;;  %v7343_v42 = vld [vmem:[#allocation137_spill] sm:$0xff] }
 0x3dc   :  { %v2421_v46 = vpop.permute.xlu1 %2420  ;;  %v6229_v15 = vpop.permute.xlu2 %2470  ;;  %v7345_v5 = vld [vmem:[#allocation117_spill] sm:$0xff]  ;;  %v7352_v12 = vld [vmem:[#allocation155_spill] sm:$0xff] }
 0x3dd   :  { %v2774_v6 = vsub.f32 %v2421_v46, %v2006_v55  ;;  %v2431_v36 = vpop.permute.xlu0 %2430  ;;  %v2013_v55 = vand.u32 2147483647, %v1885_v41  ;;  %v2014_v49 = vand.u32 2147483647, %v1886_v20  ;;  %v7344_v41 = vld [vmem:[#allocation136_spill] sm:$0xff]  ;;  %v7346_v20 = vld [vmem:[#allocation143_spill] sm:$0xff]  ;;  %v1898_v10 = vsub.f32 %v6082_v2, %v7352_v12 }
 0x3de   :  { %v2776_v31 = vsub.f32 %v2431_v36, %v2008_v27  ;;  %v774_v27 = vsub.f32 %v3732_v23, %v7336_v60  ;;  %v1891_v51 = vsub.f32 %v6082_v2, %v7344_v41 }
 0x3df   :  { %v2902_v21 = vmax.f32 %v2774_v6, 0.0  ;;  %v2781_v46 = vsub.f32 %v6203_v57, %v2013_v55  ;;  %v7338_v6 = vld [vmem:[#allocation130_spill] sm:$0xff]  ;;  %v2026_v32 = vand.u32 2147483647, %v1898_v10 }
 0x3e0   :  { %v2904_v8 = vmax.f32 %v2776_v31, 0.0  ;;  %v1888_v36 = vsub.f32 %v6082_v2, %v7338_v6 }
 0x3e1   :  { %v3397_v25 = vpack.c.bf16 %v2902_v21, %v2901_v58  ;;  %v7339_v58 = vld [vmem:[#allocation111_spill] sm:$0xff] }
 0x3e2   :  { %v3402_v59 = vpack.c.bf16 %v2904_v8, %v2903_v48  ;;  %2645 = vperm.xlu1 %3606, %v895_v61   ;;  %2650 = vperm.xlu2 %3604, %v896_v28   ;;  %v1887_v21 = vsub.f32 %v6082_v2, %v7339_v58  ;;  %v901_v28 = vmul.f32 0.5, %v773_v45  ;;  %v902_v48 = vmul.f32 0.5, %v774_v27  ;;  %v7347_v27 = vld [vmem:[#allocation142_spill] sm:$0xff] }
 0x3e3   :  { %3573 = vst [vmem:[%s6480_s2 + $0x118] sm:$0xff] %v3397_v25   ;;  %2655 = vperm.xlu0 %3605, %v897_v62   ;;  %v2909_v8 = vmax.f32 %v2781_v46, 0.0  ;;  %v2016_v25 = vand.u32 2147483647, %v1888_v36 }
 0x3e4   :  { %3574 = vst [vmem:[%s6480_s2 + $0x120] sm:$0xff] %v3402_v59   ;;  %v2436_v35 = vpop.permute.xlu1 %2435  ;;  %v6254_v22 = vpop.permute.xlu2 %2485  ;;  %v2015_v53 = vand.u32 2147483647, %v1887_v21 }
 0x3e5   :  { %v2777_v30 = vsub.f32 %v2436_v35, %v2009_v43  ;;  %v2446_v4 = vpop.permute.xlu0 %2445  ;;  %v2784_v34 = vsub.f32 %v6229_v15, %v2016_v25  ;;  %v777_v35 = vsub.f32 %v3735_v50, %v7341_v52  ;;  %v7350_v25 = vld [vmem:[#allocation148_spill] sm:$0xff] }
 0x3e6   :  { %v2779_v11 = vsub.f32 %v2446_v4, %v2011_v26  ;;  %v906_v26 = vmul.f32 0.5, %v778_v18 }
 0x3e7   :  { %v2905_v19 = vmax.f32 %v2777_v30, 0.0  ;;  %v1889_v30 = vsub.f32 %v6082_v2, %v7343_v42  ;;  %v905_v7 = vmul.f32 0.5, %v777_v35  ;;  %v7353_v42 = vld [vmem:[#allocation154_spill] sm:$0xff] }
 0x3e8   :  { %v2907_v61 = vmax.f32 %v2779_v11, 0.0 }
 0x3e9   :  { %v3407_v13 = vpack.c.bf16 %v2906_v40, %v2905_v19  ;;  %v1890_v40 = vsub.f32 %v6082_v2, %v7345_v5  ;;  %v2912_v19 = vmax.f32 %v2784_v34, 0.0 }
 0x3ea   :  { %2660 = vperm.xlu1 %3606, %v898_v39   ;;  %2665 = vperm.xlu2 %3604, %v899_v24   ;;  %v904_v24 = vmul.f32 0.5, %v776_v14 }
 0x3eb   :  { %3575 = vst [vmem:[%s6480_s2 + $0x128] sm:$0xff] %v3407_v13   ;;  %2670 = vperm.xlu0 %3605, %v900_v33   ;;  %v1892_v33 = vsub.f32 %v6082_v2, %v7346_v20  ;;  %v2017_v13 = vand.u32 2147483647, %v1889_v30  ;;  %v2018_v11 = vand.u32 2147483647, %v1890_v40  ;;  %v1900_v30 = vsub.f32 %v6082_v2, %v7353_v42  ;;  %v7363_v42 = vld [vmem:[#allocation153_spill] sm:$0xff] }
 0x3ec   :  { %v2451_v44 = vpop.permute.xlu1 %2450  ;;  %v6280_v9 = vpop.permute.xlu2 %2500 }
 0x3ed   :  { %v2780_v31 = vsub.f32 %v2451_v44, %v2012_v29  ;;  %v2461_v37 = vpop.permute.xlu0 %2460  ;;  %v2019_v29 = vand.u32 2147483647, %v1891_v51  ;;  %v2020_v17 = vand.u32 2147483647, %v1892_v33  ;;  %v7354_v51 = vld [vmem:[#allocation135_spill] sm:$0xff] }
 0x3ee   :  { %v2782_v3 = vsub.f32 %v2461_v37, %v2014_v49  ;;  %v1894_v49 = vsub.f32 %v6082_v2, %v7347_v27  ;;  %v1899_v5 = vsub.f32 %v6082_v2, %v7354_v51  ;;  %v2028_v20 = vand.u32 2147483647, %v1900_v30  ;;  %v7357_v27 = vld [vmem:[#allocation141_spill] sm:$0xff] }
 0x3ef   :  { %v2908_v57 = vmax.f32 %v2780_v31, 0.0  ;;  %v2787_v45 = vsub.f32 %v6254_v22, %v2019_v29  ;;  %v7355_v29 = vld [vmem:[#allocation161_spill] sm:$0xff]  ;;  %v1908_v30 = vsub.f32 %v6082_v2, %v7363_v42 }
 0x3f0   :  { %v2910_v62 = vmax.f32 %v2782_v3, 0.0  ;;  %v2022_v3 = vand.u32 2147483647, %v1894_v49 }
 0x3f1   :  { %v3412_v59 = vpack.c.bf16 %v2908_v57, %v2907_v61  ;;  %v2915_v31 = vmax.f32 %v2787_v45, 0.0  ;;  %v2021_v61 = vand.u32 2147483647, %v1893_v1  ;;  %v7356_v45 = vld [vmem:[#allocation160_spill] sm:$0xff] }
 0x3f2   :  { %v3417_v43 = vpack.c.bf16 %v2910_v62, %v2909_v8  ;;  %2675 = vperm.xlu1 %3606, %v901_v28   ;;  %2680 = vperm.xlu2 %3604, %v902_v48   ;;  %v2790_v22 = vsub.f32 %v6280_v9, %v2022_v3  ;;  %v7349_v28 = vld [vmem:[#allocation149_spill] sm:$0xff] }
 0x3f3   :  { %3576 = vst [vmem:[%s6480_s2 + $0x130] sm:$0xff] %v3412_v59   ;;  %2685 = vperm.xlu0 %3605, %v903_v38   ;;  %v1895_v48 = vsub.f32 %v6082_v2, %v7349_v28  ;;  %v1897_v59 = vsub.f32 %v6082_v2, %v7350_v25 }
 0x3f4   :  { %3577 = vst [vmem:[%s6480_s2 + $0x138] sm:$0xff] %v3417_v43   ;;  %v2466_v15 = vpop.permute.xlu1 %2465  ;;  %v6305_v0 = vpop.permute.xlu2 %2515  ;;  %v7351_v43 = vld [vmem:[#allocation129_spill] sm:$0xff] }
 0x3f5   :  { %v2783_v4 = vsub.f32 %v2466_v15, %v2015_v53  ;;  %v2476_v56 = vpop.permute.xlu0 %2475  ;;  %v1896_v9 = vsub.f32 %v6082_v2, %v7351_v43  ;;  %v2918_v53 = vmax.f32 %v2790_v22, 0.0  ;;  %v2023_v14 = vand.u32 2147483647, %v1895_v48 }
 0x3f6   :  { %v2785_v16 = vsub.f32 %v2476_v56, %v2017_v13  ;;  %v2025_v52 = vand.u32 2147483647, %v1897_v59  ;;  %v2027_v13 = vand.u32 2147483647, %v1899_v5 }
 0x3f7   :  { %v2911_v39 = vmax.f32 %v2783_v4, 0.0  ;;  %v2024_v35 = vand.u32 2147483647, %v1896_v9 }
 0x3f8   :  { %v2913_v6 = vmax.f32 %v2785_v16, 0.0  ;;  %v2793_v47 = vsub.f32 %v6305_v0, %v2025_v52  ;;  %v7361_v52 = vld [vmem:[#allocation173_spill] sm:$0xff] }
 0x3f9   :  { %v3422_v55 = vpack.c.bf16 %v2912_v19, %v2911_v39 }
 0x3fa   :  { %2690 = vperm.xlu1 %3606, %v904_v24   ;;  %2695 = vperm.xlu2 %3604, %v905_v7   ;;  %v2921_v24 = vmax.f32 %v2793_v47, 0.0  ;;  %v7362_v47 = vld [vmem:[#allocation172_spill] sm:$0xff] }
 0x3fb   :  { %3578 = vst [vmem:[%s6480_s2 + $0x140] sm:$0xff] %v3422_v55   ;;  %2700 = vperm.xlu0 %3605, %v906_v26  }
 0x3fc   :  { %v2481_v23 = vpop.permute.xlu1 %2480  ;;  %v2531_v60 = vpop.permute.xlu2 %2530 }
 0x3fd   :  { %v2786_v46 = vsub.f32 %v2481_v23, %v2018_v11  ;;  %v2491_v44 = vpop.permute.xlu0 %2490  ;;  %v2796_v0 = vsub.f32 %v2531_v60, %v2028_v20  ;;  %v1901_v11 = vsub.f32 %v6082_v2, %v7355_v29  ;;  %v1903_v23 = vsub.f32 %v6082_v2, %v7356_v45 }
 0x3fe   :  { %v2788_v54 = vsub.f32 %v2491_v44, %v2020_v17  ;;  %v1902_v60 = vsub.f32 %v6082_v2, %v7357_v27  ;;  %v7358_v44 = vld [vmem:[#allocation167_spill] sm:$0xff] }
 0x3ff   :  { %v2914_v36 = vmax.f32 %v2786_v46, 0.0  ;;  %v2924_v49 = vmax.f32 %v2796_v0, 0.0  ;;  %v2029_v63 = vand.u32 2147483647, %v1901_v11 }
 0x400   :  { %v2916_v37 = vmax.f32 %v2788_v54, 0.0  ;;  %v1904_v54 = vsub.f32 %v6082_v2, %v7358_v44 }
 0x401   :  { %v3427_v58 = vpack.c.bf16 %v2914_v36, %v2913_v6  ;;  %v2031_v36 = vand.u32 2147483647, %v1903_v23 }
 0x402   :  { %v3432_v21 = vpack.c.bf16 %v2916_v37, %v2915_v31  ;;  %v2030_v31 = vand.u32 2147483647, %v1902_v60  ;;  %v2032_v3 = vand.u32 2147483647, %v1904_v54 }
 0x403   :  { %3579 = vst [vmem:[%s6480_s2 + $0x148] sm:$0xff] %v3427_v58  }
 0x404   :  { %3580 = vst [vmem:[%s6480_s2 + $0x150] sm:$0xff] %v3432_v21   ;;  %v2496_v57 = vpop.permute.xlu1 %2495  ;;  %v2546_v62 = vpop.permute.xlu2 %2545 }
 0x405   :  { %v2789_v8 = vsub.f32 %v2496_v57, %v2021_v61  ;;  %v2506_v38 = vpop.permute.xlu0 %2505  ;;  %v2799_v58 = vsub.f32 %v2546_v62, %v2031_v36  ;;  %v7359_v61 = vld [vmem:[#allocation166_spill] sm:$0xff] }
 0x406   :  { %v2791_v15 = vsub.f32 %v2506_v38, %v2023_v14  ;;  %v1906_v22 = vsub.f32 %v6082_v2, %v7359_v61 }
 0x407   :  { %v2917_v34 = vmax.f32 %v2789_v8, 0.0  ;;  %v7360_v8 = vld [vmem:[#allocation147_spill] sm:$0xff]  ;;  %v2927_v43 = vmax.f32 %v2799_v58, 0.0 }
 0x408   :  { %v2919_v40 = vmax.f32 %v2791_v15, 0.0  ;;  %v1905_v38 = vsub.f32 %v6082_v2, %v7360_v8 }
 0x409   :  { %v3437_v50 = vpack.c.bf16 %v2918_v53, %v2917_v34  ;;  %v2034_v53 = vand.u32 2147483647, %v1906_v22 }
 0x40a   :  { %v2033_v10 = vand.u32 2147483647, %v1905_v38 }
 0x40b   :  { %3581 = vst [vmem:[%s6480_s2 + $0x158] sm:$0xff] %v3437_v50  }
 0x40c   :  { %v2511_v18 = vpop.permute.xlu1 %2510  ;;  %v2561_v39 = vpop.permute.xlu2 %2560 }
 0x40d   :  { %v2792_v4 = vsub.f32 %v2511_v18, %v2024_v35  ;;  %v2521_v56 = vpop.permute.xlu0 %2520  ;;  %v2802_v14 = vsub.f32 %v2561_v39, %v2034_v53  ;;  %v1907_v35 = vsub.f32 %v6082_v2, %v7361_v52  ;;  %v1909_v18 = vsub.f32 %v6082_v2, %v7362_v47 }
 0x40e   :  { %v2794_v41 = vsub.f32 %v2521_v56, %v2026_v32  ;;  %v2036_v39 = vand.u32 2147483647, %v1908_v30 }
 0x40f   :  { %v2920_v19 = vmax.f32 %v2792_v4, 0.0  ;;  %v2930_v4 = vmax.f32 %v2802_v14, 0.0  ;;  %v2035_v5 = vand.u32 2147483647, %v1907_v35  ;;  %v7372_v35 = vld [vmem:[#allocation171_spill] sm:$0xff] }
 0x410   :  { %v2922_v7 = vmax.f32 %v2794_v41, 0.0  ;;  %v7364_v41 = vld [vmem:[#allocation179_spill] sm:$0xff] }
 0x411   :  { %v3442_v33 = vpack.c.bf16 %v2920_v19, %v2919_v40  ;;  %v1910_v51 = vsub.f32 %v6082_v2, %v7364_v41  ;;  %v2037_v19 = vand.u32 2147483647, %v1909_v18 }
 0x412   :  { %v3447_v26 = vpack.c.bf16 %v2922_v7, %v2921_v24 }
 0x413   :  { %3582 = vst [vmem:[%s6480_s2 + $0x160] sm:$0xff] %v3442_v33   ;;  %v2038_v7 = vand.u32 2147483647, %v1910_v51 }
 0x414   :  { %3583 = vst [vmem:[%s6480_s2 + $0x168] sm:$0xff] %v3447_v26   ;;  %v2526_v55 = vpop.permute.xlu1 %2525  ;;  %v2576_v6 = vpop.permute.xlu2 %2575  ;;  %v7365_v26 = vld [vmem:[#allocation178_spill] sm:$0xff] }
 0x415   :  { %v2795_v16 = vsub.f32 %v2526_v55, %v2027_v13  ;;  %v2536_v17 = vpop.permute.xlu0 %2535  ;;  %v2805_v20 = vsub.f32 %v2576_v6, %v2037_v19  ;;  %v1912_v13 = vsub.f32 %v6082_v2, %v7365_v26  ;;  %v7367_v6 = vld [vmem:[#allocation22_spill] sm:$0xff]  ;;  %v7375_v26 = vld [vmem:[#allocation177_spill] sm:$0xff] }
 0x416   :  { %v2797_v37 = vsub.f32 %v2536_v17, %v2029_v63  ;;  %v1913_v36 = vsub.f32 %v6082_v2, %v7367_v6  ;;  %v7373_v19 = vld [vmem:[#allocation38_spill] sm:$0xff] }
 0x417   :  { %v2923_v46 = vmax.f32 %v2795_v16, 0.0  ;;  %v7366_v16 = vld [vmem:[#allocation159_spill] sm:$0xff]  ;;  %v2933_v27 = vmax.f32 %v2805_v20, 0.0  ;;  %v7374_v20 = vld [vmem:[#allocation20_spill] sm:$0xff] }
 0x418   :  { %v2925_v25 = vmax.f32 %v2797_v37, 0.0  ;;  %v1911_v17 = vsub.f32 %v6082_v2, %v7366_v16  ;;  %v2041_v38 = vand.u32 2147483647, %v1913_v36 }
 0x419   :  { %v3452_v1 = vpack.c.bf16 %v2924_v49, %v2923_v46  ;;  %v2040_v49 = vand.u32 2147483647, %v1912_v13  ;;  %v1920_v13 = vsub.f32 %v6082_v2, %v7375_v26 }
 0x41a   :  { %v2039_v54 = vand.u32 2147483647, %v1911_v17 }
 0x41b   :  { %3584 = vst [vmem:[%s6480_s2 + $0x170] sm:$0xff] %v3452_v1  }
 0x41c   :  { %v2541_v21 = vpop.permute.xlu1 %2540  ;;  %v2591_v62 = vpop.permute.xlu2 %2590 }
 0x41d   :  { %v2798_v57 = vsub.f32 %v2541_v21, %v2030_v31  ;;  %v2551_v28 = vpop.permute.xlu0 %2550  ;;  %v2808_v63 = vsub.f32 %v2591_v62, %v2040_v49  ;;  %v7369_v21 = vld [vmem:[#allocation165_spill] sm:$0xff] }
 0x41e   :  { %v2800_v48 = vsub.f32 %v2551_v28, %v2032_v3  ;;  %v7368_v3 = vld [vmem:[#allocation28_spill] sm:$0xff]  ;;  %v1914_v61 = vsub.f32 %v6082_v2, %v7369_v21 }
 0x41f   :  { %v2926_v59 = vmax.f32 %v2798_v57, 0.0  ;;  %v1915_v58 = vsub.f32 %v6082_v2, %v7368_v3  ;;  %v2936_v22 = vmax.f32 %v2808_v63, 0.0 }
 0x420   :  { %v2928_v9 = vmax.f32 %v2800_v48, 0.0  ;;  %v7370_v48 = vld [vmem:[#allocation21_spill] sm:$0xff] }
 0x421   :  { %v3457_v34 = vpack.c.bf16 %v2926_v59, %v2925_v25  ;;  %v1916_v8 = vsub.f32 %v6082_v2, %v7370_v48  ;;  %v2043_v59 = vand.u32 2147483647, %v1915_v58 }
 0x422   :  { %v3462_v12 = vpack.c.bf16 %v2928_v9, %v2927_v43  ;;  %v2042_v43 = vand.u32 2147483647, %v1914_v61 }
 0x423   :  { %3585 = vst [vmem:[%s6480_s2 + $0x178] sm:$0xff] %v3457_v34   ;;  %v2044_v53 = vand.u32 2147483647, %v1916_v8 }
 0x424   :  { %3586 = vst [vmem:[%s6480_s2 + $0x180] sm:$0xff] %v3462_v12   ;;  %v2556_v50 = vpop.permute.xlu1 %2555  ;;  %v2606_v0 = vpop.permute.xlu2 %2605 }
 0x425   :  { %v2801_v15 = vsub.f32 %v2556_v50, %v2033_v10  ;;  %v2566_v32 = vpop.permute.xlu0 %2565  ;;  %v2811_v34 = vsub.f32 %v2606_v0, %v2043_v59  ;;  %v7371_v10 = vld [vmem:[#allocation16_spill] sm:$0xff] }
 0x426   :  { %v2803_v24 = vsub.f32 %v2566_v32, %v2035_v5  ;;  %v1918_v14 = vsub.f32 %v6082_v2, %v7371_v10  ;;  %v7381_v10 = vld [vmem:[#allocation27_spill] sm:$0xff] }
 0x427   :  { %v2929_v56 = vmax.f32 %v2801_v15, 0.0  ;;  %v1917_v15 = vsub.f32 %v6082_v2, %v7372_v35  ;;  %v2939_v18 = vmax.f32 %v2811_v34, 0.0  ;;  %v7380_v34 = vld [vmem:[#allocation49_spill] sm:$0xff] }
 0x428   :  { %v2931_v45 = vmax.f32 %v2803_v24, 0.0  ;;  %v2046_v30 = vand.u32 2147483647, %v1918_v14  ;;  %v1926_v14 = vsub.f32 %v6082_v2, %v7381_v10 }
 0x429   :  { %v3467_v40 = vpack.c.bf16 %v2930_v4, %v2929_v56  ;;  %v2045_v51 = vand.u32 2147483647, %v1917_v15 }
 0x42b   :  { %3587 = vst [vmem:[%s6480_s2 + $0x188] sm:$0xff] %v3467_v40  }
 0x42c   :  { %v2571_v33 = vpop.permute.xlu1 %2570  ;;  %v2621_v57 = vpop.permute.xlu2 %2620 }
 0x42d   :  { %v2804_v55 = vsub.f32 %v2571_v33, %v2036_v39  ;;  %v2581_v29 = vpop.permute.xlu0 %2580  ;;  %v2814_v5 = vsub.f32 %v2621_v57, %v2046_v30  ;;  %v1919_v39 = vsub.f32 %v6082_v2, %v7373_v19  ;;  %v1921_v33 = vsub.f32 %v6082_v2, %v7374_v20 }
 0x42e   :  { %v2806_v11 = vsub.f32 %v2581_v29, %v2038_v7  ;;  %v7376_v29 = vld [vmem:[#allocation44_spill] sm:$0xff] }
 0x42f   :  { %v2932_v23 = vmax.f32 %v2804_v55, 0.0  ;;  %v2942_v0 = vmax.f32 %v2814_v5, 0.0  ;;  %v2047_v16 = vand.u32 2147483647, %v1919_v39  ;;  %v7384_v39 = vld [vmem:[#allocation37_spill] sm:$0xff] }
 0x430   :  { %v2934_v60 = vmax.f32 %v2806_v11, 0.0  ;;  %v1922_v11 = vsub.f32 %v6082_v2, %v7376_v29 }
 0x431   :  { %v3472_v46 = vpack.c.bf16 %v2932_v23, %v2931_v45  ;;  %v2049_v45 = vand.u32 2147483647, %v1921_v33  ;;  %v2048_v23 = vand.u32 2147483647, %v1920_v13 }
 0x432   :  { %v3477_v44 = vpack.c.bf16 %v2934_v60, %v2933_v27  ;;  %v2050_v49 = vand.u32 2147483647, %v1922_v11 }
 0x433   :  { %3588 = vst [vmem:[%s6480_s2 + $0x190] sm:$0xff] %v3472_v46  }
 0x434   :  { %3589 = vst [vmem:[%s6480_s2 + $0x198] sm:$0xff] %v3477_v44   ;;  %v2586_v1 = vpop.permute.xlu1 %2585  ;;  %v2636_v4 = vpop.permute.xlu2 %2635 }
 0x435   :  { %v2807_v31 = vsub.f32 %v2586_v1, %v2039_v54  ;;  %v2596_v37 = vpop.permute.xlu0 %2595  ;;  %v2817_v46 = vsub.f32 %v2636_v4, %v2049_v45  ;;  %v7377_v54 = vld [vmem:[#allocation26_spill] sm:$0xff]  ;;  %v7385_v45 = vld [vmem:[#allocation55_spill] sm:$0xff] }
 0x436   :  { %v2809_v9 = vsub.f32 %v2596_v37, %v2041_v38  ;;  %v1924_v63 = vsub.f32 %v6082_v2, %v7377_v54 }
 0x437   :  { %v2935_v28 = vmax.f32 %v2807_v31, 0.0  ;;  %v7378_v31 = vld [vmem:[#allocation183_spill] sm:$0xff]  ;;  %v2945_v21 = vmax.f32 %v2817_v46, 0.0 }
 0x438   :  { %v2937_v32 = vmax.f32 %v2809_v9, 0.0  ;;  %v1923_v37 = vsub.f32 %v6082_v2, %v7378_v31 }
 0x439   :  { %v3482_v25 = vpack.c.bf16 %v2936_v22, %v2935_v28  ;;  %v2052_v22 = vand.u32 2147483647, %v1924_v63 }
 0x43a   :  { %v2051_v48 = vand.u32 2147483647, %v1923_v37 }
 0x43b   :  { %3590 = vst [vmem:[%s6480_s2 + $0x1a0] sm:$0xff] %v3482_v25   ;;  %v7379_v25 = vld [vmem:[#allocation50_spill] sm:$0xff] }
 0x43c   :  { %v2601_v12 = vpop.permute.xlu1 %2600  ;;  %v2651_v27 = vpop.permute.xlu2 %2650  ;;  %v1925_v59 = vsub.f32 %v6082_v2, %v7379_v25 }
 0x43d   :  { %v2810_v62 = vsub.f32 %v2601_v12, %v2042_v43  ;;  %v2611_v50 = vpop.permute.xlu0 %2610  ;;  %v2820_v8 = vsub.f32 %v2651_v27, %v2052_v22  ;;  %v1927_v12 = vsub.f32 %v6082_v2, %v7380_v34 }
 0x43e   :  { %v2812_v52 = vsub.f32 %v2611_v50, %v2044_v53  ;;  %v2053_v15 = vand.u32 2147483647, %v1925_v59 }
 0x43f   :  { %v2938_v47 = vmax.f32 %v2810_v62, 0.0  ;;  %v2948_v62 = vmax.f32 %v2820_v8, 0.0 }
 0x440   :  { %v2940_v42 = vmax.f32 %v2812_v52, 0.0  ;;  %v7382_v52 = vld [vmem:[#allocation32_spill] sm:$0xff] }
 0x441   :  { %v3487_v56 = vpack.c.bf16 %v2938_v47, %v2937_v32  ;;  %v1928_v35 = vsub.f32 %v6082_v2, %v7382_v52  ;;  %v2055_v47 = vand.u32 2147483647, %v1927_v12 }
 0x442   :  { %v3492_v41 = vpack.c.bf16 %v2940_v42, %v2939_v18  ;;  %v2054_v18 = vand.u32 2147483647, %v1926_v14 }
 0x443   :  { %3591 = vst [vmem:[%s6480_s2 + $0x1a8] sm:$0xff] %v3487_v56   ;;  %v2056_v30 = vand.u32 2147483647, %v1928_v35 }
 0x444   :  { %3592 = vst [vmem:[%s6480_s2 + $0x1b0] sm:$0xff] %v3492_v41   ;;  %v2616_v40 = vpop.permute.xlu1 %2615  ;;  %v2666_v43 = vpop.permute.xlu2 %2665  ;;  %v7383_v41 = vld [vmem:[#allocation56_spill] sm:$0xff] }
 0x445   :  { %v2813_v24 = vsub.f32 %v2616_v40, %v2045_v51  ;;  %v2626_v7 = vpop.permute.xlu0 %2625  ;;  %v2823_v4 = vsub.f32 %v2666_v43, %v2055_v47  ;;  %v1930_v51 = vsub.f32 %v6082_v2, %v7383_v41 }
 0x446   :  { %v2815_v60 = vsub.f32 %v2626_v7, %v2047_v16 }
 0x447   :  { %v2941_v55 = vmax.f32 %v2813_v24, 0.0  ;;  %v1929_v24 = vsub.f32 %v6082_v2, %v7384_v39  ;;  %v2951_v26 = vmax.f32 %v2823_v4, 0.0 }
 0x448   :  { %v2943_v3 = vmax.f32 %v2815_v60, 0.0 }
 0x449   :  { %v3497_v17 = vpack.c.bf16 %v2942_v0, %v2941_v55  ;;  %v2058_v0 = vand.u32 2147483647, %v1930_v51  ;;  %v2057_v11 = vand.u32 2147483647, %v1929_v24 }
 0x44b   :  { %3593 = vst [vmem:[%s6480_s2 + $0x1b8] sm:$0xff] %v3497_v17  }
 0x44c   :  { %v2631_v44 = vpop.permute.xlu1 %2630  ;;  %v2681_v7 = vpop.permute.xlu2 %2680 }
 0x44d   :  { %v2816_v1 = vsub.f32 %v2631_v44, %v2048_v23  ;;  %v2641_v6 = vpop.permute.xlu0 %2640  ;;  %v2826_v16 = vsub.f32 %v2681_v7, %v2058_v0  ;;  %v1931_v23 = vsub.f32 %v6082_v2, %v7385_v45  ;;  %v7387_v44 = vld [vmem:[#allocation43_spill] sm:$0xff] }
 0x44e   :  { %v2818_v36 = vsub.f32 %v2641_v6, %v2050_v49  ;;  %v7386_v49 = vld [vmem:[#allocation36_spill] sm:$0xff]  ;;  %v1932_v54 = vsub.f32 %v6082_v2, %v7387_v44  ;;  %v7388_v6 = vld [vmem:[#allocation62_spill] sm:$0xff] }
 0x44f   :  { %v2944_v58 = vmax.f32 %v2816_v1, 0.0  ;;  %v1933_v46 = vsub.f32 %v6082_v2, %v7386_v49  ;;  %v2954_v63 = vmax.f32 %v2826_v16, 0.0  ;;  %v2059_v31 = vand.u32 2147483647, %v1931_v23 }
 0x450   :  { %v2946_v61 = vmax.f32 %v2818_v36, 0.0  ;;  %v1934_v36 = vsub.f32 %v6082_v2, %v7388_v6 }
 0x451   :  { %v3502_v57 = vpack.c.bf16 %v2944_v58, %v2943_v3  ;;  %v2061_v58 = vand.u32 2147483647, %v1933_v46 }
 0x452   :  { %v3507_v28 = vpack.c.bf16 %v2946_v61, %v2945_v21  ;;  %v2060_v21 = vand.u32 2147483647, %v1932_v54  ;;  %v2062_v22 = vand.u32 2147483647, %v1934_v36 }
 0x453   :  { %3594 = vst [vmem:[%s6480_s2 + $0x1c0] sm:$0xff] %v3502_v57  }
 0x454   :  { %3595 = vst [vmem:[%s6480_s2 + $0x1c8] sm:$0xff] %v3507_v28   ;;  %v2646_v38 = vpop.permute.xlu1 %2645  ;;  %v2696_v37 = vpop.permute.xlu2 %2695 }
 0x455   :  { %v2819_v9 = vsub.f32 %v2646_v38, %v2051_v48  ;;  %v2656_v53 = vpop.permute.xlu0 %2655  ;;  %v2829_v57 = vsub.f32 %v2696_v37, %v2061_v58 }
 0x456   :  { %v2821_v42 = vsub.f32 %v2656_v53, %v2053_v15 }
 0x457   :  { %v2947_v50 = vmax.f32 %v2819_v9, 0.0  ;;  %v2957_v43 = vmax.f32 %v2829_v57, 0.0 }
 0x458   :  { %v2949_v20 = vmax.f32 %v2821_v42, 0.0 }
 0x459   :  { %v3512_v32 = vpack.c.bf16 %v2948_v62, %v2947_v50 }
 0x45b   :  { %3596 = vst [vmem:[%s6480_s2 + $0x1d0] sm:$0xff] %v3512_v32  }
 0x45c   :  { %v2661_v56 = vpop.permute.xlu1 %2660 }
 0x45d   :  { %v2822_v5 = vsub.f32 %v2661_v56, %v2054_v18  ;;  %v2671_v40 = vpop.permute.xlu0 %2670 }
 0x45e   :  { %v2824_v19 = vsub.f32 %v2671_v40, %v2056_v30 }
 0x45f   :  { %v2950_v33 = vmax.f32 %v2822_v5, 0.0 }
 0x460   :  { %v2952_v13 = vmax.f32 %v2824_v19, 0.0 }
 0x461   :  { %v3517_v55 = vpack.c.bf16 %v2950_v33, %v2949_v20 }
 0x462   :  { %v3522_v29 = vpack.c.bf16 %v2952_v13, %v2951_v26 }
 0x463   :  { %3597 = vst [vmem:[%s6480_s2 + $0x1d8] sm:$0xff] %v3517_v55  }
 0x464   :  { %3598 = vst [vmem:[%s6480_s2 + $0x1e0] sm:$0xff] %v3522_v29   ;;  %v2676_v17 = vpop.permute.xlu1 %2675 }
 0x465   :  { %v2825_v27 = vsub.f32 %v2676_v17, %v2057_v11  ;;  %v2686_v60 = vpop.permute.xlu0 %2685 }
 0x466   :  { %v2827_v61 = vsub.f32 %v2686_v60, %v2059_v31 }
 0x467   :  { %v2953_v1 = vmax.f32 %v2825_v27, 0.0 }
 0x468   :  { %v2955_v25 = vmax.f32 %v2827_v61, 0.0 }
 0x469   :  { %v3527_v3 = vpack.c.bf16 %v2954_v63, %v2953_v1 }
 0x46b   :  { %3599 = vst [vmem:[%s6480_s2 + $0x1e8] sm:$0xff] %v3527_v3  }
 0x46c   :  { %v2691_v28 = vpop.permute.xlu1 %2690 }
 0x46d   :  { %v2828_v48 = vsub.f32 %v2691_v28, %v2060_v21  ;;  %v2701_v8 = vpop.permute.xlu0 %2700 }
 0x46e   :  { %v2830_v38 = vsub.f32 %v2701_v8, %v2062_v22 }
 0x46f   :  { %v2956_v59 = vmax.f32 %v2828_v48, 0.0 }
 0x470   :  { %v2958_v2 = vmax.f32 %v2830_v38, 0.0 }
 0x471   :  { %v3532_v9 = vpack.c.bf16 %v2956_v59, %v2955_v25 }
 0x472   :  { %v3537_v53 = vpack.c.bf16 %v2958_v2, %v2957_v43 }
 0x473   :  { %3600 = vst [vmem:[%s6480_s2 + $0x1f0] sm:$0xff] %v3532_v9  }
 0x474   :  { %3601 = vst [vmem:[%s6480_s2 + $0x1f8] sm:$0xff] %v3537_v53  }

</bundles_post_ra>
